<compile_context>
chip_gen: v6e
topology: v6e:2x2x1
jax: 0.10.0
libtpu: 0.0.40
codegen_flags: <defaults>
</compile_context>

<pallas_src>
import functools

import jax
import jax.numpy as jnp
from jax.experimental import pallas as pl
from jax.experimental.pallas import tpu as pltpu

BN_EPS = 1e-5
LANE = 128

_PARALLEL2 = pltpu.CompilerParams(dimension_semantics=("parallel", "parallel"))


def _round_up(n, m):
    return ((n + m - 1) // m) * m


# ---------------------------------------------------------------------------
# Kernels
# ---------------------------------------------------------------------------
def _col_stats(acc):
    """Per-channel [sum, sumsq] of an (M, TN) tile.

    Row reduction done as a (1, M) @ (M, TN) ones-matmul so it rides the MXU
    stream instead of the XLU (which would otherwise bind for large M tiles).
    """
    ones = jnp.ones((1, acc.shape[0]), jnp.float32)
    s1 = jnp.dot(ones, acc, preferred_element_type=jnp.float32)
    s2 = jnp.dot(ones, acc * acc, preferred_element_type=jnp.float32)
    return jnp.concatenate([s1, s2], axis=0)  # (2, TN)


def _conv_stats_kernel(xph_ref, w_ref, y_ref, st_ref, *, kh, kw, phases, out_hw):
    """Raw conv (kh x kw taps) + partial BN stats for one (image, Cout-tile).

    xph_ref: (1, phases*phases, Hpp, Wpp, Cin_p)  phase-decomposed padded input
    w_ref  : (kh*kw, Cin_p, TN)
    y_ref  : (1, Ho, Wo, TN)   raw (pre-BN) conv output
    st_ref : (1, 2, TN)        [sum, sumsq] over this image's Ho*Wo positions
    """
    ho, wo = out_hw
    m = ho * wo
    cin = w_ref.shape[1]
    tn = w_ref.shape[2]
    acc = jnp.zeros((m, tn), jnp.float32)
    for dh in range(kh):
        for dw in range(kw):
            p = (dh % phases) * phases + (dw % phases)
            r0 = dh // phases
            c0 = dw // phases
            patch = xph_ref[0, p, r0:r0 + ho, c0:c0 + wo, :]      # (Ho, Wo, Cin_p)
            acc = acc + jnp.dot(patch.reshape(m, cin), w_ref[dh * kw + dw],
                                preferred_element_type=jnp.float32)
    y_ref[0] = acc.reshape(ho, wo, tn)
    st_ref[0] = _col_stats(acc)


def _conv_affine_in_stats_kernel(x_ref, w_ref, sc_ref, sh_ref, y_ref, st_ref,
                                 a_ref, *, out_hw):
    """3x3 / stride-1 conv whose input is BN(prev)+ReLU applied on the fly.

    x_ref : (1, Ho, Wo, Cin_p)   raw (pre-BN) output of the previous conv
    sc/sh : (1, Cin_p)           folded BN scale / shift of the previous conv
    a_ref : (Ho+2, Wo+2, Cin_p)  VMEM scratch: activated input with zero halo
    """
    ho, wo = out_hw
    m = ho * wo
    cin = w_ref.shape[1]
    tn = w_ref.shape[2]
    # Stage BN+ReLU(input) into a zero-padded scratch; the halo stays 0, which is
    # exactly the conv's zero padding in the *activated* domain.
    a_ref[...] = jnp.zeros_like(a_ref)
    a_ref[1:ho + 1, 1:wo + 1, :] = jnp.maximum(
        x_ref[0] * sc_ref[0] + sh_ref[0], 0.0)
    acc = jnp.zeros((m, tn), jnp.float32)
    for dh in range(3):
        for dw in range(3):
            patch = a_ref[dh:dh + ho, dw:dw + wo, :]              # (Ho, Wo, Cin_p)
            acc = acc + jnp.dot(patch.reshape(m, cin), w_ref[dh * 3 + dw],
                                preferred_element_type=jnp.float32)
    y_ref[0] = acc.reshape(ho, wo, tn)
    st_ref[0] = _col_stats(acc)


def _bn_add_relu_kernel(y_ref, r_ref, scy_ref, shy_ref, scr_ref, shr_ref, o_ref):
    """out = ReLU(BN2(y) + BN_s(res)) with each BN folded to a per-channel FMA."""
    y = y_ref[0] * scy_ref[0] + shy_ref[0]
    r = r_ref[0] * scr_ref[0] + shr_ref[0]
    o_ref[0] = jnp.maximum(y + r, 0.0)


# ---------------------------------------------------------------------------
# pallas_call wrappers
# ---------------------------------------------------------------------------
def _conv_raw_stats(xph, w, *, kh, kw, phases, out_hw, tn):
    n = xph.shape[0]
    hpp, wpp, cin_p = xph.shape[2], xph.shape[3], xph.shape[4]
    cout_p = w.shape[-1]
    ho, wo = out_hw
    kernel = functools.partial(_conv_stats_kernel, kh=kh, kw=kw,
                               phases=phases, out_hw=out_hw)
    return pl.pallas_call(
        kernel,
        grid=(n, cout_p // tn),
        in_specs=[
            pl.BlockSpec((1, phases * phases, hpp, wpp, cin_p),
                         lambda b, j: (b, 0, 0, 0, 0)),
            pl.BlockSpec((kh * kw, cin_p, tn), lambda b, j: (0, 0, j)),
        ],
        out_specs=[
            pl.BlockSpec((1, ho, wo, tn), lambda b, j: (b, 0, 0, j)),
            pl.BlockSpec((1, 2, tn), lambda b, j: (b, 0, j)),
        ],
        out_shape=[
            jax.ShapeDtypeStruct((n, ho, wo, cout_p), jnp.float32),
            jax.ShapeDtypeStruct((n, 2, cout_p), jnp.float32),
        ],
        compiler_params=_PARALLEL2,
    )(xph, w)


def _conv_affine_in_raw_stats(x_raw, w, scale_in, shift_in, *, out_hw, tn):
    n = x_raw.shape[0]
    cin_p = x_raw.shape[-1]
    cout_p = w.shape[-1]
    ho, wo = out_hw
    kernel = functools.partial(_conv_affine_in_stats_kernel, out_hw=out_hw)
    return pl.pallas_call(
        kernel,
        grid=(n, cout_p // tn),
        in_specs=[
            pl.BlockSpec((1, ho, wo, cin_p), lambda b, j: (b, 0, 0, 0)),
            pl.BlockSpec((9, cin_p, tn), lambda b, j: (0, 0, j)),
            pl.BlockSpec((1, cin_p), lambda b, j: (0, 0)),
            pl.BlockSpec((1, cin_p), lambda b, j: (0, 0)),
        ],
        out_specs=[
            pl.BlockSpec((1, ho, wo, tn), lambda b, j: (b, 0, 0, j)),
            pl.BlockSpec((1, 2, tn), lambda b, j: (b, 0, j)),
        ],
        out_shape=[
            jax.ShapeDtypeStruct((n, ho, wo, cout_p), jnp.float32),
            jax.ShapeDtypeStruct((n, 2, cout_p), jnp.float32),
        ],
        scratch_shapes=[pltpu.VMEM((ho + 2, wo + 2, cin_p), jnp.float32)],
        compiler_params=_PARALLEL2,
    )(x_raw, w, scale_in, shift_in)


def _bn_add_relu(y2, res, sc2, sh2, scr, shr, *, tn):
    n, m, cp = y2.shape
    return pl.pallas_call(
        _bn_add_relu_kernel,
        grid=(n, cp // tn),
        in_specs=[
            pl.BlockSpec((1, m, tn), lambda b, j: (b, 0, j)),
            pl.BlockSpec((1, m, tn), lambda b, j: (b, 0, j)),
            pl.BlockSpec((1, tn), lambda b, j: (0, j)),
            pl.BlockSpec((1, tn), lambda b, j: (0, j)),
            pl.BlockSpec((1, tn), lambda b, j: (0, j)),
            pl.BlockSpec((1, tn), lambda b, j: (0, j)),
        ],
        out_specs=pl.BlockSpec((1, m, tn), lambda b, j: (b, 0, j)),
        out_shape=jax.ShapeDtypeStruct((n, m, cp), jnp.float32),
        compiler_params=_PARALLEL2,
    )(y2, res, sc2, sh2, scr, shr)


# ---------------------------------------------------------------------------
# JAX glue: layout plumbing (all 1x data reorganisation, no 9x im2col)
# ---------------------------------------------------------------------------
def _phase_decompose(x, kh, stride, pad):
    """Zero-pad spatially and split into stride x stride phases so that a
    stride-s conv tap (dh, dw) becomes a contiguous (unstrided) slice of one
    phase inside the kernel."""
    n, h, w, c = x.shape
    ho = (h + 2 * pad - kh) // stride + 1
    wo = (w + 2 * pad - kh) // stride + 1
    hpp = (kh - 1) // stride + ho
    wpp = (kh - 1) // stride + wo
    xp = jnp.pad(x, ((0, 0),
                     (pad, stride * hpp - h - pad),
                     (pad, stride * wpp - w - pad),
                     (0, 0)))
    xph = xp.reshape(n, hpp, stride, wpp, stride, c)
    xph = xph.transpose(0, 2, 4, 1, 3, 5).reshape(n, stride * stride, hpp, wpp, c)
    return xph, (ho, wo)


def _pad_last(a, target):
    c = a.shape[-1]
    if c == target:
        return a
    return jnp.pad(a, [(0, 0)] * (a.ndim - 1) + [(0, target - c)])


def _w_to_taps(w_oihw, cin_p, cout_p):
    """torch (Cout, Cin, kh, kw) -> (kh*kw, Cin_p, Cout_p), zero-padded lane-dense."""
    cout, cin, kh, kw = w_oihw.shape
    w = jnp.transpose(w_oihw, (2, 3, 1, 0))                      # (kh, kw, Cin, Cout)
    w = jnp.pad(w, ((0, 0), (0, 0), (0, cin_p - cin), (0, cout_p - cout)))
    return w.reshape(kh * kw, cin_p, cout_p)


def _bn_fold(stats, gamma, beta, count, cout_p):
    """Partial per-image [sum, sumsq] -> per-channel (scale, shift) FMA coeffs."""
    g = jnp.pad(gamma.astype(jnp.float32), (0, cout_p - gamma.shape[0]))
    b = jnp.pad(beta.astype(jnp.float32), (0, cout_p - beta.shape[0]))
    tot = jnp.sum(stats, axis=0)                                  # (2, Cout_p)
    mean = tot[0] / count
    var = jnp.maximum(tot[1] / count - mean * mean, 0.0)
    scale = g * jax.lax.rsqrt(var + BN_EPS)
    shift = b - mean * scale
    return scale.reshape(1, cout_p), shift.reshape(1, cout_p)


def wide_residual_block(x_nchw, params, stride):
    x = jnp.transpose(x_nchw, (0, 2, 3, 1)).astype(jnp.float32)   # NHWC
    n, h, w, cin = x.shape
    cout = params["w1"].shape[0]
    cin_p = _round_up(cin, LANE)
    cout_p = _round_up(cout, LANE)
    # Lane-dense channel tile.  128 maps cleanly onto every MXU generation; bump
    # to 256 for very wide layers on v6e/v7x (and shrink if VMEM-bound on v7x).
    tn = LANE

    xp = _pad_last(x, cin_p)

    # ---- main path, conv1: 3x3 / stride, pad 1  (raw conv + partial BN stats) ----
    xph1, (ho, wo) = _phase_decompose(xp, 3, stride, 1)
    y1_raw, st1 = _conv_raw_stats(
        xph1, _w_to_taps(params["w1"], cin_p, cout_p),
        kh=3, kw=3, phases=stride, out_hw=(ho, wo), tn=tn)
    count = n * ho * wo
    sc1, sh1 = _bn_fold(st1, params["g1"], params["b1"], count, cout_p)

    # ---- main path, conv2: 3x3 / 1, pad 1, BN1+ReLU fused into the input read ----
    y2_raw, st2 = _conv_affine_in_raw_stats(
        y1_raw, _w_to_taps(params["w2"], cout_p, cout_p), sc1, sh1,
        out_hw=(ho, wo), tn=tn)
    sc2, sh2 = _bn_fold(st2, params["g2"], params["b2"], count, cout_p)

    # ---- shortcut: conv1x1 / stride + BN, or identity ----
    if stride != 1 or cin != cout:
        xs = xp[:, ::stride, ::stride, :]                         # (n, ho, wo, cin_p)
        xsph = xs[:, None]                                        # single phase
        s_raw, sts = _conv_raw_stats(
            xsph, _w_to_taps(params["ws"], cin_p, cout_p),
            kh=1, kw=1, phases=1, out_hw=(ho, wo), tn=tn)
        scs, shs = _bn_fold(sts, params["gs"], params["bs"], count, cout_p)
    else:
        s_raw = xp                                                # identity path
        scs = jnp.ones((1, cout_p), jnp.float32)
        shs = jnp.zeros((1, cout_p), jnp.float32)

    # ---- epilogue: BN2 + BN_s + residual add + ReLU (single fused pass) ----
    out = _bn_add_relu(y2_raw.reshape(n, ho * wo, cout_p),
                       s_raw.reshape(n, ho * wo, cout_p),
                       sc2, sh2, scs, shs, tn=tn)
    out = out.reshape(n, ho, wo, cout_p)[..., :cout]
    return jnp.transpose(out, (0, 3, 1, 2))                       # back to NCHW


# ---------------------------------------------------------------------------
# Pure-JAX reference (correctness check only)
# ---------------------------------------------------------------------------
def _ref_conv(x_nhwc, w_oihw, stride, padding):
    w = jnp.transpose(w_oihw, (2, 3, 1, 0))  # HWIO
    return jax.lax.conv_general_dilated(
        x_nhwc, w, window_strides=(stride, stride),
        padding=[(padding, padding), (padding, padding)],
        dimension_numbers=("NHWC", "HWIO", "NHWC"))


def _ref_bn(y, gamma, beta):
    mean = jnp.mean(y, axis=(0, 1, 2), keepdims=True)
    var = jnp.mean(jnp.square(y - mean), axis=(0, 1, 2), keepdims=True)
    return (y - mean) * jax.lax.rsqrt(var + BN_EPS) * gamma + beta


def wide_residual_block_ref(x_nchw, params, stride):
    x = jnp.transpose(x_nchw, (0, 2, 3, 1)).astype(jnp.float32)
    cin = x.shape[-1]
    cout = params["w1"].shape[0]
    y = _ref_conv(x, params["w1"], stride, 1)
    y = jnp.maximum(_ref_bn(y, params["g1"], params["b1"]), 0.0)
    y = _ref_conv(y, params["w2"], 1, 1)
    y = _ref_bn(y, params["g2"], params["b2"])
    if stride != 1 or cin != cout:
        s = _ref_conv(x, params["ws"], stride, 0)
        s = _ref_bn(s, params["gs"], params["bs"])
    else:
        s = x
    out = jnp.maximum(y + s, 0.0)
    return out.transpose(0, 3, 1, 2)


# ---------------------------------------------------------------------------
if __name__ == "__main__":
    # Module config: in_channels=4, out_channels=4, widen_factor=2 -> Cout=8, stride=2
    N, Cin, H, W = 2, 4, 16, 16
    out_channels, widen_factor, stride = 4, 2, 2
    Cout = out_channels * widen_factor

    key = jax.random.PRNGKey(0)
    k = jax.random.split(key, 8)
    params = {
        "w1": jax.random.normal(k[0], (Cout, Cin, 3, 3), jnp.float32) * 0.1,
        "g1": 1.0 + 0.1 * jax.random.normal(k[1], (Cout,), jnp.float32),
        "b1": 0.1 * jax.random.normal(k[2], (Cout,), jnp.float32),
        "w2": jax.random.normal(k[3], (Cout, Cout, 3, 3), jnp.float32) * 0.1,
        "g2": 1.0 + 0.1 * jax.random.normal(k[4], (Cout,), jnp.float32),
        "b2": 0.1 * jax.random.normal(k[5], (Cout,), jnp.float32),
        "ws": jax.random.normal(k[6], (Cout, Cin, 1, 1), jnp.float32) * 0.1,
        "gs": jnp.ones((Cout,), jnp.float32),
        "bs": jnp.zeros((Cout,), jnp.float32),
    }
    x = jax.random.normal(k[7], (N, Cin, H, W), jnp.float32)

    fwd = jax.jit(functools.partial(wide_residual_block, stride=stride))
    out = jax.block_until_ready(fwd(x, params))
    ref = jax.block_until_ready(wide_residual_block_ref(x, params, stride))

    assert out.shape == (N, Cout, H // stride, W // stride), out.shape
    max_err = float(jnp.max(jnp.abs(out - ref)))
    assert max_err < 1e-3, f"mismatch vs reference: {max_err}"
    print("KERNEL_OK")
</pallas_src>

<mosaic_0001>
module attributes {stable_mosaic.version = 11 : i64} {
  func.func @_conv_affine_in_stats_kernel(%arg0: i32, %arg1: i32, %arg2: memref<1x8x8x128xf32, #tpu.memory_space<vmem>>, %arg3: memref<9x128x128xf32, #tpu.memory_space<vmem>>, %arg4: memref<1x128xf32, #tpu.memory_space<vmem>>, %arg5: memref<1x128xf32, #tpu.memory_space<vmem>>, %arg6: memref<1x8x8x128xf32, #tpu.memory_space<vmem>>, %arg7: memref<1x2x128xf32, #tpu.memory_space<vmem>>, %arg8: memref<10x10x128xf32, #tpu.memory_space<vmem>>) attributes {dimension_semantics = [#tpu.dimension_semantics<parallel>, #tpu.dimension_semantics<parallel>], iteration_bounds = array<i64: 2, 1>, scalar_prefetch = 0 : i64, scratch_operands = 1 : i64, tpu.core_type = #tpu.core_type<tc>, window_params = [{transform_indices = @transform_0, window_bounds = array<i64: 1, 8, 8, 128>}, {transform_indices = @transform_1, window_bounds = array<i64: 9, 128, 128>}, {pipeline_mode = #tpu.pipeline_mode<synchronous>, transform_indices = @transform_2, window_bounds = array<i64: 1, 128>}, {pipeline_mode = #tpu.pipeline_mode<synchronous>, transform_indices = @transform_3, window_bounds = array<i64: 1, 128>}, {transform_indices = @transform_4, window_bounds = array<i64: 1, 8, 8, 128>}, {transform_indices = @transform_5, window_bounds = array<i64: 1, 2, 128>}]} {
    %cst = arith.constant 0.000000e+00 : f32
    %0 = vector.broadcast %cst : f32 to vector<10x10x128xf32>
    %c0 = arith.constant 0 : index
    %c0_0 = arith.constant 0 : index
    %c0_1 = arith.constant 0 : index
    %1 = vector.load %arg8[%c0, %c0_0, %c0_1] : memref<10x10x128xf32, #tpu.memory_space<vmem>>, vector<10x10x128xf32>
    tpu.vector_store %arg8[%c0, %c0_0, %c0_1], %0 {strides = array<i32>} : memref<10x10x128xf32, #tpu.memory_space<vmem>>, vector<10x10x128xf32>,
    %c0_2 = arith.constant 0 : index
    %c0_3 = arith.constant 0 : index
    %c0_4 = arith.constant 0 : index
    %c0_5 = arith.constant 0 : index
    %2 = vector.load %arg2[%c0_2, %c0_3, %c0_4, %c0_5] : memref<1x8x8x128xf32, #tpu.memory_space<vmem>>, vector<1x8x8x128xf32>
    %3 = vector.shape_cast %2 : vector<1x8x8x128xf32> to vector<8x8x128xf32>
    %c0_6 = arith.constant 0 : index
    %c0_7 = arith.constant 0 : index
    %4 = vector.load %arg4[%c0_6, %c0_7] : memref<1x128xf32, #tpu.memory_space<vmem>>, vector<1x128xf32>
    %5 = vector.shape_cast %4 : vector<1x128xf32> to vector<128xf32>
    %6 = vector.shape_cast %5 : vector<128xf32> to vector<1x1x128xf32>
    %7 = vector.broadcast %6 : vector<1x1x128xf32> to vector<8x8x128xf32>
    %8 = arith.mulf %3, %7 : vector<8x8x128xf32>
    %c0_8 = arith.constant 0 : index
    %c0_9 = arith.constant 0 : index
    %9 = vector.load %arg5[%c0_8, %c0_9] : memref<1x128xf32, #tpu.memory_space<vmem>>, vector<1x128xf32>
    %10 = vector.shape_cast %9 : vector<1x128xf32> to vector<128xf32>
    %11 = vector.shape_cast %10 : vector<128xf32> to vector<1x1x128xf32>
    %12 = vector.broadcast %11 : vector<1x1x128xf32> to vector<8x8x128xf32>
    %13 = arith.addf %8, %12 : vector<8x8x128xf32>
    %cst_10 = arith.constant 0.000000e+00 : f32
    %14 = vector.broadcast %cst_10 : f32 to vector<8x8x128xf32>
    %15 = arith.maximumf %13, %14 : vector<8x8x128xf32>
    %c1 = arith.constant 1 : index
    %c1_11 = arith.constant 1 : index
    %c0_12 = arith.constant 0 : index
    %16 = vector.load %arg8[%c1, %c1_11, %c0_12] : memref<10x10x128xf32, #tpu.memory_space<vmem>>, vector<8x8x128xf32>
    tpu.vector_store %arg8[%c1, %c1_11, %c0_12], %15 {strides = array<i32>} : memref<10x10x128xf32, #tpu.memory_space<vmem>>, vector<8x8x128xf32>,
    %cst_13 = arith.constant 0.000000e+00 : f32
    %17 = vector.broadcast %cst_13 : f32 to vector<64x128xf32>
    %c0_14 = arith.constant 0 : index
    %c0_15 = arith.constant 0 : index
    %c0_16 = arith.constant 0 : index
    %18 = vector.load %arg8[%c0_14, %c0_15, %c0_16] : memref<10x10x128xf32, #tpu.memory_space<vmem>>, vector<8x8x128xf32>
    %19 = vector.shape_cast %18 : vector<8x8x128xf32> to vector<64x128xf32>
    %c0_17 = arith.constant 0 : index
    %c0_18 = arith.constant 0 : index
    %c0_19 = arith.constant 0 : index
    %20 = vector.load %arg3[%c0_17, %c0_18, %c0_19] : memref<9x128x128xf32, #tpu.memory_space<vmem>>, vector<1x128x128xf32>
    %21 = vector.shape_cast %20 : vector<1x128x128xf32> to vector<128x128xf32>
    %cst_20 = arith.constant dense<0.000000e+00> : vector<64x128xf32>
    %22 = tpu.matmul %19, %21, %cst_20 {dimension_numbers = #tpu.dot_dimension_numbers<[1], [0], [0], [1], [0, 0, 1, 1], [], []>} : vector<64x128xf32>, vector<128x128xf32>, vector<64x128xf32> -> vector<64x128xf32>
    %23 = arith.addf %17, %22 : vector<64x128xf32>
    %c0_21 = arith.constant 0 : index
    %c1_22 = arith.constant 1 : index
    %c0_23 = arith.constant 0 : index
    %24 = vector.load %arg8[%c0_21, %c1_22, %c0_23] : memref<10x10x128xf32, #tpu.memory_space<vmem>>, vector<8x8x128xf32>
    %25 = vector.shape_cast %24 : vector<8x8x128xf32> to vector<64x128xf32>
    %c1_24 = arith.constant 1 : index
    %c0_25 = arith.constant 0 : index
    %c0_26 = arith.constant 0 : index
    %26 = vector.load %arg3[%c1_24, %c0_25, %c0_26] : memref<9x128x128xf32, #tpu.memory_space<vmem>>, vector<1x128x128xf32>
    %27 = vector.shape_cast %26 : vector<1x128x128xf32> to vector<128x128xf32>
    %cst_27 = arith.constant dense<0.000000e+00> : vector<64x128xf32>
    %28 = tpu.matmul %25, %27, %cst_27 {dimension_numbers = #tpu.dot_dimension_numbers<[1], [0], [0], [1], [0, 0, 1, 1], [], []>} : vector<64x128xf32>, vector<128x128xf32>, vector<64x128xf32> -> vector<64x128xf32>
    %29 = arith.addf %23, %28 : vector<64x128xf32>
    %c0_28 = arith.constant 0 : index
    %c2 = arith.constant 2 : index
    %c0_29 = arith.constant 0 : index
    %30 = vector.load %arg8[%c0_28, %c2, %c0_29] : memref<10x10x128xf32, #tpu.memory_space<vmem>>, vector<8x8x128xf32>
    %31 = vector.shape_cast %30 : vector<8x8x128xf32> to vector<64x128xf32>
    %c2_30 = arith.constant 2 : index
    %c0_31 = arith.constant 0 : index
    %c0_32 = arith.constant 0 : index
    %32 = vector.load %arg3[%c2_30, %c0_31, %c0_32] : memref<9x128x128xf32, #tpu.memory_space<vmem>>, vector<1x128x128xf32>
    %33 = vector.shape_cast %32 : vector<1x128x128xf32> to vector<128x128xf32>
    %cst_33 = arith.constant dense<0.000000e+00> : vector<64x128xf32>
    %34 = tpu.matmul %31, %33, %cst_33 {dimension_numbers = #tpu.dot_dimension_numbers<[1], [0], [0], [1], [0, 0, 1, 1], [], []>} : vector<64x128xf32>, vector<128x128xf32>, vector<64x128xf32> -> vector<64x128xf32>
    %35 = arith.addf %29, %34 : vector<64x128xf32>
    %c1_34 = arith.constant 1 : index
    %c0_35 = arith.constant 0 : index
    %c0_36 = arith.constant 0 : index
    %36 = vector.load %arg8[%c1_34, %c0_35, %c0_36] : memref<10x10x128xf32, #tpu.memory_space<vmem>>, vector<8x8x128xf32>
    %37 = vector.shape_cast %36 : vector<8x8x128xf32> to vector<64x128xf32>
    %c3 = arith.constant 3 : index
    %c0_37 = arith.constant 0 : index
    %c0_38 = arith.constant 0 : index
    %38 = vector.load %arg3[%c3, %c0_37, %c0_38] : memref<9x128x128xf32, #tpu.memory_space<vmem>>, vector<1x128x128xf32>
    %39 = vector.shape_cast %38 : vector<1x128x128xf32> to vector<128x128xf32>
    %cst_39 = arith.constant dense<0.000000e+00> : vector<64x128xf32>
    %40 = tpu.matmul %37, %39, %cst_39 {dimension_numbers = #tpu.dot_dimension_numbers<[1], [0], [0], [1], [0, 0, 1, 1], [], []>} : vector<64x128xf32>, vector<128x128xf32>, vector<64x128xf32> -> vector<64x128xf32>
    %41 = arith.addf %35, %40 : vector<64x128xf32>
    %c1_40 = arith.constant 1 : index
    %c1_41 = arith.constant 1 : index
    %c0_42 = arith.constant 0 : index
    %42 = vector.load %arg8[%c1_40, %c1_41, %c0_42] : memref<10x10x128xf32, #tpu.memory_space<vmem>>, vector<8x8x128xf32>
    %43 = vector.shape_cast %42 : vector<8x8x128xf32> to vector<64x128xf32>
    %c4 = arith.constant 4 : index
    %c0_43 = arith.constant 0 : index
    %c0_44 = arith.constant 0 : index
    %44 = vector.load %arg3[%c4, %c0_43, %c0_44] : memref<9x128x128xf32, #tpu.memory_space<vmem>>, vector<1x128x128xf32>
    %45 = vector.shape_cast %44 : vector<1x128x128xf32> to vector<128x128xf32>
    %cst_45 = arith.constant dense<0.000000e+00> : vector<64x128xf32>
    %46 = tpu.matmul %43, %45, %cst_45 {dimension_numbers = #tpu.dot_dimension_numbers<[1], [0], [0], [1], [0, 0, 1, 1], [], []>} : vector<64x128xf32>, vector<128x128xf32>, vector<64x128xf32> -> vector<64x128xf32>
    %47 = arith.addf %41, %46 : vector<64x128xf32>
    %c1_46 = arith.constant 1 : index
    %c2_47 = arith.constant 2 : index
    %c0_48 = arith.constant 0 : index
    %48 = vector.load %arg8[%c1_46, %c2_47, %c0_48] : memref<10x10x128xf32, #tpu.memory_space<vmem>>, vector<8x8x128xf32>
    %49 = vector.shape_cast %48 : vector<8x8x128xf32> to vector<64x128xf32>
    %c5 = arith.constant 5 : index
    %c0_49 = arith.constant 0 : index
    %c0_50 = arith.constant 0 : index
    %50 = vector.load %arg3[%c5, %c0_49, %c0_50] : memref<9x128x128xf32, #tpu.memory_space<vmem>>, vector<1x128x128xf32>
    %51 = vector.shape_cast %50 : vector<1x128x128xf32> to vector<128x128xf32>
    %cst_51 = arith.constant dense<0.000000e+00> : vector<64x128xf32>
    %52 = tpu.matmul %49, %51, %cst_51 {dimension_numbers = #tpu.dot_dimension_numbers<[1], [0], [0], [1], [0, 0, 1, 1], [], []>} : vector<64x128xf32>, vector<128x128xf32>, vector<64x128xf32> -> vector<64x128xf32>
    %53 = arith.addf %47, %52 : vector<64x128xf32>
    %c2_52 = arith.constant 2 : index
    %c0_53 = arith.constant 0 : index
    %c0_54 = arith.constant 0 : index
    %54 = vector.load %arg8[%c2_52, %c0_53, %c0_54] : memref<10x10x128xf32, #tpu.memory_space<vmem>>, vector<8x8x128xf32>
    %55 = vector.shape_cast %54 : vector<8x8x128xf32> to vector<64x128xf32>
    %c6 = arith.constant 6 : index
    %c0_55 = arith.constant 0 : index
    %c0_56 = arith.constant 0 : index
    %56 = vector.load %arg3[%c6, %c0_55, %c0_56] : memref<9x128x128xf32, #tpu.memory_space<vmem>>, vector<1x128x128xf32>
    %57 = vector.shape_cast %56 : vector<1x128x128xf32> to vector<128x128xf32>
    %cst_57 = arith.constant dense<0.000000e+00> : vector<64x128xf32>
    %58 = tpu.matmul %55, %57, %cst_57 {dimension_numbers = #tpu.dot_dimension_numbers<[1], [0], [0], [1], [0, 0, 1, 1], [], []>} : vector<64x128xf32>, vector<128x128xf32>, vector<64x128xf32> -> vector<64x128xf32>
    %59 = arith.addf %53, %58 : vector<64x128xf32>
    %c2_58 = arith.constant 2 : index
    %c1_59 = arith.constant 1 : index
    %c0_60 = arith.constant 0 : index
    %60 = vector.load %arg8[%c2_58, %c1_59, %c0_60] : memref<10x10x128xf32, #tpu.memory_space<vmem>>, vector<8x8x128xf32>
    %61 = vector.shape_cast %60 : vector<8x8x128xf32> to vector<64x128xf32>
    %c7 = arith.constant 7 : index
    %c0_61 = arith.constant 0 : index
    %c0_62 = arith.constant 0 : index
    %62 = vector.load %arg3[%c7, %c0_61, %c0_62] : memref<9x128x128xf32, #tpu.memory_space<vmem>>, vector<1x128x128xf32>
    %63 = vector.shape_cast %62 : vector<1x128x128xf32> to vector<128x128xf32>
    %cst_63 = arith.constant dense<0.000000e+00> : vector<64x128xf32>
    %64 = tpu.matmul %61, %63, %cst_63 {dimension_numbers = #tpu.dot_dimension_numbers<[1], [0], [0], [1], [0, 0, 1, 1], [], []>} : vector<64x128xf32>, vector<128x128xf32>, vector<64x128xf32> -> vector<64x128xf32>
    %65 = arith.addf %59, %64 : vector<64x128xf32>
    %c2_64 = arith.constant 2 : index
    %c2_65 = arith.constant 2 : index
    %c0_66 = arith.constant 0 : index
    %66 = vector.load %arg8[%c2_64, %c2_65, %c0_66] : memref<10x10x128xf32, #tpu.memory_space<vmem>>, vector<8x8x128xf32>
    %67 = vector.shape_cast %66 : vector<8x8x128xf32> to vector<64x128xf32>
    %c8 = arith.constant 8 : index
    %c0_67 = arith.constant 0 : index
    %c0_68 = arith.constant 0 : index
    %68 = vector.load %arg3[%c8, %c0_67, %c0_68] : memref<9x128x128xf32, #tpu.memory_space<vmem>>, vector<1x128x128xf32>
    %69 = vector.shape_cast %68 : vector<1x128x128xf32> to vector<128x128xf32>
    %cst_69 = arith.constant dense<0.000000e+00> : vector<64x128xf32>
    %70 = tpu.matmul %67, %69, %cst_69 {dimension_numbers = #tpu.dot_dimension_numbers<[1], [0], [0], [1], [0, 0, 1, 1], [], []>} : vector<64x128xf32>, vector<128x128xf32>, vector<64x128xf32> -> vector<64x128xf32>
    %71 = arith.addf %65, %70 : vector<64x128xf32>
    %72 = vector.shape_cast %71 : vector<64x128xf32> to vector<8x8x128xf32>
    %c0_70 = arith.constant 0 : index
    %c0_71 = arith.constant 0 : index
    %c0_72 = arith.constant 0 : index
    %c0_73 = arith.constant 0 : index
    %73 = vector.load %arg6[%c0_70, %c0_71, %c0_72, %c0_73] : memref<1x8x8x128xf32, #tpu.memory_space<vmem>>, vector<1x8x8x128xf32>
    %74 = vector.shape_cast %73 : vector<1x8x8x128xf32> to vector<8x8x128xf32>
    %75 = vector.shape_cast %72 : vector<8x8x128xf32> to vector<1x8x8x128xf32>
    tpu.vector_store %arg6[%c0_70, %c0_71, %c0_72, %c0_73], %75 {strides = array<i32>} : memref<1x8x8x128xf32, #tpu.memory_space<vmem>>, vector<1x8x8x128xf32>,
    %cst_74 = arith.constant 1.000000e+00 : f32
    %76 = vector.broadcast %cst_74 : f32 to vector<1x64xf32>
    %cst_75 = arith.constant dense<0.000000e+00> : vector<1x128xf32>
    %77 = tpu.matmul %76, %71, %cst_75 {dimension_numbers = #tpu.dot_dimension_numbers<[1], [0], [0], [1], [0, 0, 1, 1], [], []>} : vector<1x64xf32>, vector<64x128xf32>, vector<1x128xf32> -> vector<1x128xf32>
    %78 = arith.mulf %71, %71 : vector<64x128xf32>
    %cst_76 = arith.constant dense<0.000000e+00> : vector<1x128xf32>
    %79 = tpu.matmul %76, %78, %cst_76 {dimension_numbers = #tpu.dot_dimension_numbers<[1], [0], [0], [1], [0, 0, 1, 1], [], []>} : vector<1x64xf32>, vector<64x128xf32>, vector<1x128xf32> -> vector<1x128xf32>
    %80 = tpu.concatenate %77, %79 in 0 : vector<1x128xf32>, vector<1x128xf32> -> vector<2x128xf32>
    %c0_77 = arith.constant 0 : index
    %c0_78 = arith.constant 0 : index
    %c0_79 = arith.constant 0 : index
    %81 = vector.load %arg7[%c0_77, %c0_78, %c0_79] : memref<1x2x128xf32, #tpu.memory_space<vmem>>, vector<1x2x128xf32>
    %82 = vector.shape_cast %81 : vector<1x2x128xf32> to vector<2x128xf32>
    %83 = vector.shape_cast %80 : vector<2x128xf32> to vector<1x2x128xf32>
    tpu.vector_store %arg7[%c0_77, %c0_78, %c0_79], %83 {strides = array<i32>} : memref<1x2x128xf32, #tpu.memory_space<vmem>>, vector<1x2x128xf32>,
    return
  }
  func.func @transform_0(%arg0: i32, %arg1: i32) -> (i32, i32, i32, i32) {
    %c0_i32 = arith.constant 0 : i32
    %c0_i32_0 = arith.constant 0 : i32
    %c0_i32_1 = arith.constant 0 : i32
    %c0_i32_2 = arith.constant 0 : i32
    return %arg0, %c0_i32, %c0_i32_0, %c0_i32_1 : i32, i32, i32, i32
  }
  func.func @transform_1(%arg0: i32, %arg1: i32) -> (i32, i32, i32) {
    %c0_i32 = arith.constant 0 : i32
    %c0_i32_0 = arith.constant 0 : i32
    %c0_i32_1 = arith.constant 0 : i32
    return %c0_i32, %c0_i32_0, %arg1 : i32, i32, i32
  }
  func.func @transform_2(%arg0: i32, %arg1: i32) -> (i32, i32) {
    %c0_i32 = arith.constant 0 : i32
    %c0_i32_0 = arith.constant 0 : i32
    %c0_i32_1 = arith.constant 0 : i32
    return %c0_i32, %c0_i32_0 : i32, i32
  }
  func.func @transform_3(%arg0: i32, %arg1: i32) -> (i32, i32) {
    %c0_i32 = arith.constant 0 : i32
    %c0_i32_0 = arith.constant 0 : i32
    %c0_i32_1 = arith.constant 0 : i32
    return %c0_i32, %c0_i32_0 : i32, i32
  }
  func.func @transform_4(%arg0: i32, %arg1: i32) -> (i32, i32, i32, i32) {
    %c0_i32 = arith.constant 0 : i32
    %c0_i32_0 = arith.constant 0 : i32
    %c0_i32_1 = arith.constant 0 : i32
    return %arg0, %c0_i32, %c0_i32_0, %arg1 : i32, i32, i32, i32
  }
  func.func @transform_5(%arg0: i32, %arg1: i32) -> (i32, i32, i32) {
    %c0_i32 = arith.constant 0 : i32
    %c0_i32_0 = arith.constant 0 : i32
    return %arg0, %c0_i32, %arg1 : i32, i32, i32
  }
}

module attributes {stable_mosaic.version = 11 : i64} {
  func.func @_conv_stats_kernel(%arg0: i32, %arg1: i32, %arg2: memref<1x4x9x9x128xf32, #tpu.memory_space<vmem>>, %arg3: memref<9x128x128xf32, #tpu.memory_space<vmem>>, %arg4: memref<1x8x8x128xf32, #tpu.memory_space<vmem>>, %arg5: memref<1x2x128xf32, #tpu.memory_space<vmem>>) attributes {dimension_semantics = [#tpu.dimension_semantics<parallel>, #tpu.dimension_semantics<parallel>], iteration_bounds = array<i64: 2, 1>, scalar_prefetch = 0 : i64, scratch_operands = 0 : i64, tpu.core_type = #tpu.core_type<tc>, window_params = [{transform_indices = @transform_0, window_bounds = array<i64: 1, 4, 9, 9, 128>}, {transform_indices = @transform_1, window_bounds = array<i64: 9, 128, 128>}, {transform_indices = @transform_2, window_bounds = array<i64: 1, 8, 8, 128>}, {transform_indices = @transform_3, window_bounds = array<i64: 1, 2, 128>}]} {
    %cst = arith.constant 0.000000e+00 : f32
    %0 = vector.broadcast %cst : f32 to vector<64x128xf32>
    %c0 = arith.constant 0 : index
    %c0_0 = arith.constant 0 : index
    %c0_1 = arith.constant 0 : index
    %c0_2 = arith.constant 0 : index
    %c0_3 = arith.constant 0 : index
    %1 = vector.load %arg2[%c0, %c0_0, %c0_1, %c0_2, %c0_3] : memref<1x4x9x9x128xf32, #tpu.memory_space<vmem>>, vector<1x1x8x8x128xf32>
    %2 = vector.shape_cast %1 : vector<1x1x8x8x128xf32> to vector<8x8x128xf32>
    %3 = vector.shape_cast %2 : vector<8x8x128xf32> to vector<64x128xf32>
    %c0_4 = arith.constant 0 : index
    %c0_5 = arith.constant 0 : index
    %c0_6 = arith.constant 0 : index
    %4 = vector.load %arg3[%c0_4, %c0_5, %c0_6] : memref<9x128x128xf32, #tpu.memory_space<vmem>>, vector<1x128x128xf32>
    %5 = vector.shape_cast %4 : vector<1x128x128xf32> to vector<128x128xf32>
    %cst_7 = arith.constant dense<0.000000e+00> : vector<64x128xf32>
    %6 = tpu.matmul %3, %5, %cst_7 {dimension_numbers = #tpu.dot_dimension_numbers<[1], [0], [0], [1], [0, 0, 1, 1], [], []>} : vector<64x128xf32>, vector<128x128xf32>, vector<64x128xf32> -> vector<64x128xf32>
    %7 = arith.addf %0, %6 : vector<64x128xf32>
    %c0_8 = arith.constant 0 : index
    %c1 = arith.constant 1 : index
    %c0_9 = arith.constant 0 : index
    %c0_10 = arith.constant 0 : index
    %c0_11 = arith.constant 0 : index
    %8 = vector.load %arg2[%c0_8, %c1, %c0_9, %c0_10, %c0_11] : memref<1x4x9x9x128xf32, #tpu.memory_space<vmem>>, vector<1x1x8x8x128xf32>
    %9 = vector.shape_cast %8 : vector<1x1x8x8x128xf32> to vector<8x8x128xf32>
    %10 = vector.shape_cast %9 : vector<8x8x128xf32> to vector<64x128xf32>
    %c1_12 = arith.constant 1 : index
    %c0_13 = arith.constant 0 : index
    %c0_14 = arith.constant 0 : index
    %11 = vector.load %arg3[%c1_12, %c0_13, %c0_14] : memref<9x128x128xf32, #tpu.memory_space<vmem>>, vector<1x128x128xf32>
    %12 = vector.shape_cast %11 : vector<1x128x128xf32> to vector<128x128xf32>
    %cst_15 = arith.constant dense<0.000000e+00> : vector<64x128xf32>
    %13 = tpu.matmul %10, %12, %cst_15 {dimension_numbers = #tpu.dot_dimension_numbers<[1], [0], [0], [1], [0, 0, 1, 1], [], []>} : vector<64x128xf32>, vector<128x128xf32>, vector<64x128xf32> -> vector<64x128xf32>
    %14 = arith.addf %7, %13 : vector<64x128xf32>
    %c0_16 = arith.constant 0 : index
    %c0_17 = arith.constant 0 : index
    %c0_18 = arith.constant 0 : index
    %c1_19 = arith.constant 1 : index
    %c0_20 = arith.constant 0 : index
    %15 = vector.load %arg2[%c0_16, %c0_17, %c0_18, %c1_19, %c0_20] : memref<1x4x9x9x128xf32, #tpu.memory_space<vmem>>, vector<1x1x8x8x128xf32>
    %16 = vector.shape_cast %15 : vector<1x1x8x8x128xf32> to vector<8x8x128xf32>
    %17 = vector.shape_cast %16 : vector<8x8x128xf32> to vector<64x128xf32>
    %c2 = arith.constant 2 : index
    %c0_21 = arith.constant 0 : index
    %c0_22 = arith.constant 0 : index
    %18 = vector.load %arg3[%c2, %c0_21, %c0_22] : memref<9x128x128xf32, #tpu.memory_space<vmem>>, vector<1x128x128xf32>
    %19 = vector.shape_cast %18 : vector<1x128x128xf32> to vector<128x128xf32>
    %cst_23 = arith.constant dense<0.000000e+00> : vector<64x128xf32>
    %20 = tpu.matmul %17, %19, %cst_23 {dimension_numbers = #tpu.dot_dimension_numbers<[1], [0], [0], [1], [0, 0, 1, 1], [], []>} : vector<64x128xf32>, vector<128x128xf32>, vector<64x128xf32> -> vector<64x128xf32>
    %21 = arith.addf %14, %20 : vector<64x128xf32>
    %c0_24 = arith.constant 0 : index
    %c2_25 = arith.constant 2 : index
    %c0_26 = arith.constant 0 : index
    %c0_27 = arith.constant 0 : index
    %c0_28 = arith.constant 0 : index
    %22 = vector.load %arg2[%c0_24, %c2_25, %c0_26, %c0_27, %c0_28] : memref<1x4x9x9x128xf32, #tpu.memory_space<vmem>>, vector<1x1x8x8x128xf32>
    %23 = vector.shape_cast %22 : vector<1x1x8x8x128xf32> to vector<8x8x128xf32>
    %24 = vector.shape_cast %23 : vector<8x8x128xf32> to vector<64x128xf32>
    %c3 = arith.constant 3 : index
    %c0_29 = arith.constant 0 : index
    %c0_30 = arith.constant 0 : index
    %25 = vector.load %arg3[%c3, %c0_29, %c0_30] : memref<9x128x128xf32, #tpu.memory_space<vmem>>, vector<1x128x128xf32>
    %26 = vector.shape_cast %25 : vector<1x128x128xf32> to vector<128x128xf32>
    %cst_31 = arith.constant dense<0.000000e+00> : vector<64x128xf32>
    %27 = tpu.matmul %24, %26, %cst_31 {dimension_numbers = #tpu.dot_dimension_numbers<[1], [0], [0], [1], [0, 0, 1, 1], [], []>} : vector<64x128xf32>, vector<128x128xf32>, vector<64x128xf32> -> vector<64x128xf32>
    %28 = arith.addf %21, %27 : vector<64x128xf32>
    %c0_32 = arith.constant 0 : index
    %c3_33 = arith.constant 3 : index
    %c0_34 = arith.constant 0 : index
    %c0_35 = arith.constant 0 : index
    %c0_36 = arith.constant 0 : index
    %29 = vector.load %arg2[%c0_32, %c3_33, %c0_34, %c0_35, %c0_36] : memref<1x4x9x9x128xf32, #tpu.memory_space<vmem>>, vector<1x1x8x8x128xf32>
    %30 = vector.shape_cast %29 : vector<1x1x8x8x128xf32> to vector<8x8x128xf32>
    %31 = vector.shape_cast %30 : vector<8x8x128xf32> to vector<64x128xf32>
    %c4 = arith.constant 4 : index
    %c0_37 = arith.constant 0 : index
    %c0_38 = arith.constant 0 : index
    %32 = vector.load %arg3[%c4, %c0_37, %c0_38] : memref<9x128x128xf32, #tpu.memory_space<vmem>>, vector<1x128x128xf32>
    %33 = vector.shape_cast %32 : vector<1x128x128xf32> to vector<128x128xf32>
    %cst_39 = arith.constant dense<0.000000e+00> : vector<64x128xf32>
    %34 = tpu.matmul %31, %33, %cst_39 {dimension_numbers = #tpu.dot_dimension_numbers<[1], [0], [0], [1], [0, 0, 1, 1], [], []>} : vector<64x128xf32>, vector<128x128xf32>, vector<64x128xf32> -> vector<64x128xf32>
    %35 = arith.addf %28, %34 : vector<64x128xf32>
    %c0_40 = arith.constant 0 : index
    %c2_41 = arith.constant 2 : index
    %c0_42 = arith.constant 0 : index
    %c1_43 = arith.constant 1 : index
    %c0_44 = arith.constant 0 : index
    %36 = vector.load %arg2[%c0_40, %c2_41, %c0_42, %c1_43, %c0_44] : memref<1x4x9x9x128xf32, #tpu.memory_space<vmem>>, vector<1x1x8x8x128xf32>
    %37 = vector.shape_cast %36 : vector<1x1x8x8x128xf32> to vector<8x8x128xf32>
    %38 = vector.shape_cast %37 : vector<8x8x128xf32> to vector<64x128xf32>
    %c5 = arith.constant 5 : index
    %c0_45 = arith.constant 0 : index
    %c0_46 = arith.constant 0 : index
    %39 = vector.load %arg3[%c5, %c0_45, %c0_46] : memref<9x128x128xf32, #tpu.memory_space<vmem>>, vector<1x128x128xf32>
    %40 = vector.shape_cast %39 : vector<1x128x128xf32> to vector<128x128xf32>
    %cst_47 = arith.constant dense<0.000000e+00> : vector<64x128xf32>
    %41 = tpu.matmul %38, %40, %cst_47 {dimension_numbers = #tpu.dot_dimension_numbers<[1], [0], [0], [1], [0, 0, 1, 1], [], []>} : vector<64x128xf32>, vector<128x128xf32>, vector<64x128xf32> -> vector<64x128xf32>
    %42 = arith.addf %35, %41 : vector<64x128xf32>
    %c0_48 = arith.constant 0 : index
    %c0_49 = arith.constant 0 : index
    %c1_50 = arith.constant 1 : index
    %c0_51 = arith.constant 0 : index
    %c0_52 = arith.constant 0 : index
    %43 = vector.load %arg2[%c0_48, %c0_49, %c1_50, %c0_51, %c0_52] : memref<1x4x9x9x128xf32, #tpu.memory_space<vmem>>, vector<1x1x8x8x128xf32>
    %44 = vector.shape_cast %43 : vector<1x1x8x8x128xf32> to vector<8x8x128xf32>
    %45 = vector.shape_cast %44 : vector<8x8x128xf32> to vector<64x128xf32>
    %c6 = arith.constant 6 : index
    %c0_53 = arith.constant 0 : index
    %c0_54 = arith.constant 0 : index
    %46 = vector.load %arg3[%c6, %c0_53, %c0_54] : memref<9x128x128xf32, #tpu.memory_space<vmem>>, vector<1x128x128xf32>
    %47 = vector.shape_cast %46 : vector<1x128x128xf32> to vector<128x128xf32>
    %cst_55 = arith.constant dense<0.000000e+00> : vector<64x128xf32>
    %48 = tpu.matmul %45, %47, %cst_55 {dimension_numbers = #tpu.dot_dimension_numbers<[1], [0], [0], [1], [0, 0, 1, 1], [], []>} : vector<64x128xf32>, vector<128x128xf32>, vector<64x128xf32> -> vector<64x128xf32>
    %49 = arith.addf %42, %48 : vector<64x128xf32>
    %c0_56 = arith.constant 0 : index
    %c1_57 = arith.constant 1 : index
    %c1_58 = arith.constant 1 : index
    %c0_59 = arith.constant 0 : index
    %c0_60 = arith.constant 0 : index
    %50 = vector.load %arg2[%c0_56, %c1_57, %c1_58, %c0_59, %c0_60] : memref<1x4x9x9x128xf32, #tpu.memory_space<vmem>>, vector<1x1x8x8x128xf32>
    %51 = vector.shape_cast %50 : vector<1x1x8x8x128xf32> to vector<8x8x128xf32>
    %52 = vector.shape_cast %51 : vector<8x8x128xf32> to vector<64x128xf32>
    %c7 = arith.constant 7 : index
    %c0_61 = arith.constant 0 : index
    %c0_62 = arith.constant 0 : index
    %53 = vector.load %arg3[%c7, %c0_61, %c0_62] : memref<9x128x128xf32, #tpu.memory_space<vmem>>, vector<1x128x128xf32>
    %54 = vector.shape_cast %53 : vector<1x128x128xf32> to vector<128x128xf32>
    %cst_63 = arith.constant dense<0.000000e+00> : vector<64x128xf32>
    %55 = tpu.matmul %52, %54, %cst_63 {dimension_numbers = #tpu.dot_dimension_numbers<[1], [0], [0], [1], [0, 0, 1, 1], [], []>} : vector<64x128xf32>, vector<128x128xf32>, vector<64x128xf32> -> vector<64x128xf32>
    %56 = arith.addf %49, %55 : vector<64x128xf32>
    %c0_64 = arith.constant 0 : index
    %c0_65 = arith.constant 0 : index
    %c1_66 = arith.constant 1 : index
    %c1_67 = arith.constant 1 : index
    %c0_68 = arith.constant 0 : index
    %57 = vector.load %arg2[%c0_64, %c0_65, %c1_66, %c1_67, %c0_68] : memref<1x4x9x9x128xf32, #tpu.memory_space<vmem>>, vector<1x1x8x8x128xf32>
    %58 = vector.shape_cast %57 : vector<1x1x8x8x128xf32> to vector<8x8x128xf32>
    %59 = vector.shape_cast %58 : vector<8x8x128xf32> to vector<64x128xf32>
    %c8 = arith.constant 8 : index
    %c0_69 = arith.constant 0 : index
    %c0_70 = arith.constant 0 : index
    %60 = vector.load %arg3[%c8, %c0_69, %c0_70] : memref<9x128x128xf32, #tpu.memory_space<vmem>>, vector<1x128x128xf32>
    %61 = vector.shape_cast %60 : vector<1x128x128xf32> to vector<128x128xf32>
    %cst_71 = arith.constant dense<0.000000e+00> : vector<64x128xf32>
    %62 = tpu.matmul %59, %61, %cst_71 {dimension_numbers = #tpu.dot_dimension_numbers<[1], [0], [0], [1], [0, 0, 1, 1], [], []>} : vector<64x128xf32>, vector<128x128xf32>, vector<64x128xf32> -> vector<64x128xf32>
    %63 = arith.addf %56, %62 : vector<64x128xf32>
    %64 = vector.shape_cast %63 : vector<64x128xf32> to vector<8x8x128xf32>
    %c0_72 = arith.constant 0 : index
    %c0_73 = arith.constant 0 : index
    %c0_74 = arith.constant 0 : index
    %c0_75 = arith.constant 0 : index
    %65 = vector.load %arg4[%c0_72, %c0_73, %c0_74, %c0_75] : memref<1x8x8x128xf32, #tpu.memory_space<vmem>>, vector<1x8x8x128xf32>
    %66 = vector.shape_cast %65 : vector<1x8x8x128xf32> to vector<8x8x128xf32>
    %67 = vector.shape_cast %64 : vector<8x8x128xf32> to vector<1x8x8x128xf32>
    tpu.vector_store %arg4[%c0_72, %c0_73, %c0_74, %c0_75], %67 {strides = array<i32>} : memref<1x8x8x128xf32, #tpu.memory_space<vmem>>, vector<1x8x8x128xf32>,
    %cst_76 = arith.constant 1.000000e+00 : f32
    %68 = vector.broadcast %cst_76 : f32 to vector<1x64xf32>
    %cst_77 = arith.constant dense<0.000000e+00> : vector<1x128xf32>
    %69 = tpu.matmul %68, %63, %cst_77 {dimension_numbers = #tpu.dot_dimension_numbers<[1], [0], [0], [1], [0, 0, 1, 1], [], []>} : vector<1x64xf32>, vector<64x128xf32>, vector<1x128xf32> -> vector<1x128xf32>
    %70 = arith.mulf %63, %63 : vector<64x128xf32>
    %cst_78 = arith.constant dense<0.000000e+00> : vector<1x128xf32>
    %71 = tpu.matmul %68, %70, %cst_78 {dimension_numbers = #tpu.dot_dimension_numbers<[1], [0], [0], [1], [0, 0, 1, 1], [], []>} : vector<1x64xf32>, vector<64x128xf32>, vector<1x128xf32> -> vector<1x128xf32>
    %72 = tpu.concatenate %69, %71 in 0 : vector<1x128xf32>, vector<1x128xf32> -> vector<2x128xf32>
    %c0_79 = arith.constant 0 : index
    %c0_80 = arith.constant 0 : index
    %c0_81 = arith.constant 0 : index
    %73 = vector.load %arg5[%c0_79, %c0_80, %c0_81] : memref<1x2x128xf32, #tpu.memory_space<vmem>>, vector<1x2x128xf32>
    %74 = vector.shape_cast %73 : vector<1x2x128xf32> to vector<2x128xf32>
    %75 = vector.shape_cast %72 : vector<2x128xf32> to vector<1x2x128xf32>
    tpu.vector_store %arg5[%c0_79, %c0_80, %c0_81], %75 {strides = array<i32>} : memref<1x2x128xf32, #tpu.memory_space<vmem>>, vector<1x2x128xf32>,
    return
  }
  func.func @transform_0(%arg0: i32, %arg1: i32) -> (i32, i32, i32, i32, i32) {
    %c0_i32 = arith.constant 0 : i32
    %c0_i32_0 = arith.constant 0 : i32
    %c0_i32_1 = arith.constant 0 : i32
    %c0_i32_2 = arith.constant 0 : i32
    %c0_i32_3 = arith.constant 0 : i32
    return %arg0, %c0_i32, %c0_i32_0, %c0_i32_1, %c0_i32_2 : i32, i32, i32, i32, i32
  }
  func.func @transform_1(%arg0: i32, %arg1: i32) -> (i32, i32, i32) {
    %c0_i32 = arith.constant 0 : i32
    %c0_i32_0 = arith.constant 0 : i32
    %c0_i32_1 = arith.constant 0 : i32
    return %c0_i32, %c0_i32_0, %arg1 : i32, i32, i32
  }
  func.func @transform_2(%arg0: i32, %arg1: i32) -> (i32, i32, i32, i32) {
    %c0_i32 = arith.constant 0 : i32
    %c0_i32_0 = arith.constant 0 : i32
    %c0_i32_1 = arith.constant 0 : i32
    return %arg0, %c0_i32, %c0_i32_0, %arg1 : i32, i32, i32, i32
  }
  func.func @transform_3(%arg0: i32, %arg1: i32) -> (i32, i32, i32) {
    %c0_i32 = arith.constant 0 : i32
    %c0_i32_0 = arith.constant 0 : i32
    return %arg0, %c0_i32, %arg1 : i32, i32, i32
  }
}

module attributes {stable_mosaic.version = 11 : i64} {
  func.func @_conv_stats_kernel(%arg0: i32, %arg1: i32, %arg2: memref<1x1x8x8x128xf32, #tpu.memory_space<vmem>>, %arg3: memref<1x128x128xf32, #tpu.memory_space<vmem>>, %arg4: memref<1x8x8x128xf32, #tpu.memory_space<vmem>>, %arg5: memref<1x2x128xf32, #tpu.memory_space<vmem>>) attributes {dimension_semantics = [#tpu.dimension_semantics<parallel>, #tpu.dimension_semantics<parallel>], iteration_bounds = array<i64: 2, 1>, scalar_prefetch = 0 : i64, scratch_operands = 0 : i64, tpu.core_type = #tpu.core_type<tc>, window_params = [{transform_indices = @transform_0, window_bounds = array<i64: 1, 1, 8, 8, 128>}, {transform_indices = @transform_1, window_bounds = array<i64: 1, 128, 128>}, {transform_indices = @transform_2, window_bounds = array<i64: 1, 8, 8, 128>}, {transform_indices = @transform_3, window_bounds = array<i64: 1, 2, 128>}]} {
    %cst = arith.constant 0.000000e+00 : f32
    %0 = vector.broadcast %cst : f32 to vector<64x128xf32>
    %c0 = arith.constant 0 : index
    %c0_0 = arith.constant 0 : index
    %c0_1 = arith.constant 0 : index
    %c0_2 = arith.constant 0 : index
    %c0_3 = arith.constant 0 : index
    %1 = vector.load %arg2[%c0, %c0_0, %c0_1, %c0_2, %c0_3] : memref<1x1x8x8x128xf32, #tpu.memory_space<vmem>>, vector<1x1x8x8x128xf32>
    %2 = vector.shape_cast %1 : vector<1x1x8x8x128xf32> to vector<8x8x128xf32>
    %3 = vector.shape_cast %2 : vector<8x8x128xf32> to vector<64x128xf32>
    %c0_4 = arith.constant 0 : index
    %c0_5 = arith.constant 0 : index
    %c0_6 = arith.constant 0 : index
    %4 = vector.load %arg3[%c0_4, %c0_5, %c0_6] : memref<1x128x128xf32, #tpu.memory_space<vmem>>, vector<1x128x128xf32>
    %5 = vector.shape_cast %4 : vector<1x128x128xf32> to vector<128x128xf32>
    %cst_7 = arith.constant dense<0.000000e+00> : vector<64x128xf32>
    %6 = tpu.matmul %3, %5, %cst_7 {dimension_numbers = #tpu.dot_dimension_numbers<[1], [0], [0], [1], [0, 0, 1, 1], [], []>} : vector<64x128xf32>, vector<128x128xf32>, vector<64x128xf32> -> vector<64x128xf32>
    %7 = arith.addf %0, %6 : vector<64x128xf32>
    %8 = vector.shape_cast %7 : vector<64x128xf32> to vector<8x8x128xf32>
    %c0_8 = arith.constant 0 : index
    %c0_9 = arith.constant 0 : index
    %c0_10 = arith.constant 0 : index
    %c0_11 = arith.constant 0 : index
    %9 = vector.load %arg4[%c0_8, %c0_9, %c0_10, %c0_11] : memref<1x8x8x128xf32, #tpu.memory_space<vmem>>, vector<1x8x8x128xf32>
    %10 = vector.shape_cast %9 : vector<1x8x8x128xf32> to vector<8x8x128xf32>
    %11 = vector.shape_cast %8 : vector<8x8x128xf32> to vector<1x8x8x128xf32>
    tpu.vector_store %arg4[%c0_8, %c0_9, %c0_10, %c0_11], %11 {strides = array<i32>} : memref<1x8x8x128xf32, #tpu.memory_space<vmem>>, vector<1x8x8x128xf32>,
    %cst_12 = arith.constant 1.000000e+00 : f32
    %12 = vector.broadcast %cst_12 : f32 to vector<1x64xf32>
    %cst_13 = arith.constant dense<0.000000e+00> : vector<1x128xf32>
    %13 = tpu.matmul %12, %7, %cst_13 {dimension_numbers = #tpu.dot_dimension_numbers<[1], [0], [0], [1], [0, 0, 1, 1], [], []>} : vector<1x64xf32>, vector<64x128xf32>, vector<1x128xf32> -> vector<1x128xf32>
    %14 = arith.mulf %7, %7 : vector<64x128xf32>
    %cst_14 = arith.constant dense<0.000000e+00> : vector<1x128xf32>
    %15 = tpu.matmul %12, %14, %cst_14 {dimension_numbers = #tpu.dot_dimension_numbers<[1], [0], [0], [1], [0, 0, 1, 1], [], []>} : vector<1x64xf32>, vector<64x128xf32>, vector<1x128xf32> -> vector<1x128xf32>
    %16 = tpu.concatenate %13, %15 in 0 : vector<1x128xf32>, vector<1x128xf32> -> vector<2x128xf32>
    %c0_15 = arith.constant 0 : index
    %c0_16 = arith.constant 0 : index
    %c0_17 = arith.constant 0 : index
    %17 = vector.load %arg5[%c0_15, %c0_16, %c0_17] : memref<1x2x128xf32, #tpu.memory_space<vmem>>, vector<1x2x128xf32>
    %18 = vector.shape_cast %17 : vector<1x2x128xf32> to vector<2x128xf32>
    %19 = vector.shape_cast %16 : vector<2x128xf32> to vector<1x2x128xf32>
    tpu.vector_store %arg5[%c0_15, %c0_16, %c0_17], %19 {strides = array<i32>} : memref<1x2x128xf32, #tpu.memory_space<vmem>>, vector<1x2x128xf32>,
    return
  }
  func.func @transform_0(%arg0: i32, %arg1: i32) -> (i32, i32, i32, i32, i32) {
    %c0_i32 = arith.constant 0 : i32
    %c0_i32_0 = arith.constant 0 : i32
    %c0_i32_1 = arith.constant 0 : i32
    %c0_i32_2 = arith.constant 0 : i32
    %c0_i32_3 = arith.constant 0 : i32
    return %arg0, %c0_i32, %c0_i32_0, %c0_i32_1, %c0_i32_2 : i32, i32, i32, i32, i32
  }
  func.func @transform_1(%arg0: i32, %arg1: i32) -> (i32, i32, i32) {
    %c0_i32 = arith.constant 0 : i32
    %c0_i32_0 = arith.constant 0 : i32
    %c0_i32_1 = arith.constant 0 : i32
    return %c0_i32, %c0_i32_0, %arg1 : i32, i32, i32
  }
  func.func @transform_2(%arg0: i32, %arg1: i32) -> (i32, i32, i32, i32) {
    %c0_i32 = arith.constant 0 : i32
    %c0_i32_0 = arith.constant 0 : i32
    %c0_i32_1 = arith.constant 0 : i32
    return %arg0, %c0_i32, %c0_i32_0, %arg1 : i32, i32, i32, i32
  }
  func.func @transform_3(%arg0: i32, %arg1: i32) -> (i32, i32, i32) {
    %c0_i32 = arith.constant 0 : i32
    %c0_i32_0 = arith.constant 0 : i32
    return %arg0, %c0_i32, %arg1 : i32, i32, i32
  }
}

module attributes {stable_mosaic.version = 11 : i64} {
  func.func @_bn_add_relu_kernel(%arg0: i32, %arg1: i32, %arg2: memref<1x64x128xf32, #tpu.memory_space<vmem>>, %arg3: memref<1x64x128xf32, #tpu.memory_space<vmem>>, %arg4: memref<1x128xf32, #tpu.memory_space<vmem>>, %arg5: memref<1x128xf32, #tpu.memory_space<vmem>>, %arg6: memref<1x128xf32, #tpu.memory_space<vmem>>, %arg7: memref<1x128xf32, #tpu.memory_space<vmem>>, %arg8: memref<1x64x128xf32, #tpu.memory_space<vmem>>) attributes {dimension_semantics = [#tpu.dimension_semantics<parallel>, #tpu.dimension_semantics<parallel>], iteration_bounds = array<i64: 2, 1>, scalar_prefetch = 0 : i64, scratch_operands = 0 : i64, tpu.core_type = #tpu.core_type<tc>, window_params = [{transform_indices = @transform_0, window_bounds = array<i64: 1, 64, 128>}, {transform_indices = @transform_1, window_bounds = array<i64: 1, 64, 128>}, {transform_indices = @transform_2, window_bounds = array<i64: 1, 128>}, {transform_indices = @transform_3, window_bounds = array<i64: 1, 128>}, {transform_indices = @transform_4, window_bounds = array<i64: 1, 128>}, {transform_indices = @transform_5, window_bounds = array<i64: 1, 128>}, {transform_indices = @transform_6, window_bounds = array<i64: 1, 64, 128>}]} {
    %c0 = arith.constant 0 : index
    %c0_0 = arith.constant 0 : index
    %c0_1 = arith.constant 0 : index
    %0 = vector.load %arg2[%c0, %c0_0, %c0_1] : memref<1x64x128xf32, #tpu.memory_space<vmem>>, vector<1x64x128xf32>
    %1 = vector.shape_cast %0 : vector<1x64x128xf32> to vector<64x128xf32>
    %c0_2 = arith.constant 0 : index
    %c0_3 = arith.constant 0 : index
    %2 = vector.load %arg4[%c0_2, %c0_3] : memref<1x128xf32, #tpu.memory_space<vmem>>, vector<1x128xf32>
    %3 = vector.shape_cast %2 : vector<1x128xf32> to vector<128xf32>
    %4 = vector.shape_cast %3 : vector<128xf32> to vector<1x128xf32>
    %5 = vector.broadcast %4 : vector<1x128xf32> to vector<64x128xf32>
    %6 = arith.mulf %1, %5 : vector<64x128xf32>
    %c0_4 = arith.constant 0 : index
    %c0_5 = arith.constant 0 : index
    %7 = vector.load %arg5[%c0_4, %c0_5] : memref<1x128xf32, #tpu.memory_space<vmem>>, vector<1x128xf32>
    %8 = vector.shape_cast %7 : vector<1x128xf32> to vector<128xf32>
    %9 = vector.shape_cast %8 : vector<128xf32> to vector<1x128xf32>
    %10 = vector.broadcast %9 : vector<1x128xf32> to vector<64x128xf32>
    %11 = arith.addf %6, %10 : vector<64x128xf32>
    %c0_6 = arith.constant 0 : index
    %c0_7 = arith.constant 0 : index
    %c0_8 = arith.constant 0 : index
    %12 = vector.load %arg3[%c0_6, %c0_7, %c0_8] : memref<1x64x128xf32, #tpu.memory_space<vmem>>, vector<1x64x128xf32>
    %13 = vector.shape_cast %12 : vector<1x64x128xf32> to vector<64x128xf32>
    %c0_9 = arith.constant 0 : index
    %c0_10 = arith.constant 0 : index
    %14 = vector.load %arg6[%c0_9, %c0_10] : memref<1x128xf32, #tpu.memory_space<vmem>>, vector<1x128xf32>
    %15 = vector.shape_cast %14 : vector<1x128xf32> to vector<128xf32>
    %16 = vector.shape_cast %15 : vector<128xf32> to vector<1x128xf32>
    %17 = vector.broadcast %16 : vector<1x128xf32> to vector<64x128xf32>
    %18 = arith.mulf %13, %17 : vector<64x128xf32>
    %c0_11 = arith.constant 0 : index
    %c0_12 = arith.constant 0 : index
    %19 = vector.load %arg7[%c0_11, %c0_12] : memref<1x128xf32, #tpu.memory_space<vmem>>, vector<1x128xf32>
    %20 = vector.shape_cast %19 : vector<1x128xf32> to vector<128xf32>
    %21 = vector.shape_cast %20 : vector<128xf32> to vector<1x128xf32>
    %22 = vector.broadcast %21 : vector<1x128xf32> to vector<64x128xf32>
    %23 = arith.addf %18, %22 : vector<64x128xf32>
    %24 = arith.addf %11, %23 : vector<64x128xf32>
    %cst = arith.constant 0.000000e+00 : f32
    %25 = vector.broadcast %cst : f32 to vector<64x128xf32>
    %26 = arith.maximumf %24, %25 : vector<64x128xf32>
    %c0_13 = arith.constant 0 : index
    %c0_14 = arith.constant 0 : index
    %c0_15 = arith.constant 0 : index
    %27 = vector.load %arg8[%c0_13, %c0_14, %c0_15] : memref<1x64x128xf32, #tpu.memory_space<vmem>>, vector<1x64x128xf32>
    %28 = vector.shape_cast %27 : vector<1x64x128xf32> to vector<64x128xf32>
    %29 = vector.shape_cast %26 : vector<64x128xf32> to vector<1x64x128xf32>
    tpu.vector_store %arg8[%c0_13, %c0_14, %c0_15], %29 {strides = array<i32>} : memref<1x64x128xf32, #tpu.memory_space<vmem>>, vector<1x64x128xf32>,
    return
  }
  func.func @transform_0(%arg0: i32, %arg1: i32) -> (i32, i32, i32) {
    %c0_i32 = arith.constant 0 : i32
    %c0_i32_0 = arith.constant 0 : i32
    return %arg0, %c0_i32, %arg1 : i32, i32, i32
  }
  func.func @transform_1(%arg0: i32, %arg1: i32) -> (i32, i32, i32) {
    %c0_i32 = arith.constant 0 : i32
    %c0_i32_0 = arith.constant 0 : i32
    return %arg0, %c0_i32, %arg1 : i32, i32, i32
  }
  func.func @transform_2(%arg0: i32, %arg1: i32) -> (i32, i32) {
    %c0_i32 = arith.constant 0 : i32
    %c0_i32_0 = arith.constant 0 : i32
    return %c0_i32, %arg1 : i32, i32
  }
  func.func @transform_3(%arg0: i32, %arg1: i32) -> (i32, i32) {
    %c0_i32 = arith.constant 0 : i32
    %c0_i32_0 = arith.constant 0 : i32
    return %c0_i32, %arg1 : i32, i32
  }
  func.func @transform_4(%arg0: i32, %arg1: i32) -> (i32, i32) {
    %c0_i32 = arith.constant 0 : i32
    %c0_i32_0 = arith.constant 0 : i32
    return %c0_i32, %arg1 : i32, i32
  }
  func.func @transform_5(%arg0: i32, %arg1: i32) -> (i32, i32) {
    %c0_i32 = arith.constant 0 : i32
    %c0_i32_0 = arith.constant 0 : i32
    return %c0_i32, %arg1 : i32, i32
  }
  func.func @transform_6(%arg0: i32, %arg1: i32) -> (i32, i32, i32) {
    %c0_i32 = arith.constant 0 : i32
    %c0_i32_0 = arith.constant 0 : i32
    return %arg0, %c0_i32, %arg1 : i32, i32, i32
  }
}

</mosaic_0001>

<bundles_post_ra>
// kernel: wide_residual_block.7
= control target key start
LH: loop header
LB: loop body
LE: loop exit
PB: predicated region body
PF: predicated region fallthrough
CT: control target
= control target key end

     0   :  { %s727_s21 = smov 0   ;;  %s729_s22 = smov 0   ;;  %s830_s0 = inlined_call_operand.vmem [shape: f32[2,64,128], index: 0, kind: input, shape index: {}]   ;;  %s831_s1 = inlined_call_operand.vmem [shape: f32[2,64,128], index: 1, kind: input, shape index: {}]   ;;  %s832_s2 = inlined_call_operand.vmem [shape: f32[1,128], index: 2, kind: input, shape index: {}]   ;;  %s833_s3 = inlined_call_operand.vmem [shape: f32[1,128], index: 3, kind: input, shape index: {}]   ;;  %s834_s4 = inlined_call_operand.vmem [shape: f32[1,128], index: 4, kind: input, shape index: {}]   ;;  %s835_s5 = inlined_call_operand.vmem [shape: f32[1,128], index: 5, kind: input, shape index: {}]   ;;  %s836_s6 = inlined_call_operand.vmem [shape: f32[2,64,128], index: 6, kind: output, shape index: {}]  }
   0x1   :  { %s731_s23 = smov 0  }
   0x2 LB: > { %s28_s24 = sadd.s32 1, %s686_s22  ;;  %p628_p0 = scmp.ge.s32.totalorder %s690_s23, 1  ;;  %s690_s23 = sphi %s731_s23, %s16_s23   ;;  %s686_s22 = sphi %s729_s22, %s838_s22   ;;  %s682_s21 = sphi %s727_s21, %s837_s21  }
   0x3   : > { %p30_p1 = scmp.ge.s32.totalorder %s28_s24, 2  ;;  %p278_p2 = scmp.lt.s32.totalorder %s690_s23, 3 }
   0x5   : > { %s840_s24 = smov (%p30_p1, %s28_s24), 0  ;;  %p279_p3 = pnand %p628_p0, %p278_p2 }
   0x6   : > { %p334_p4 = scmp.lt.s32.totalorder (!%p279_p3), %s682_s21, 1 }
   0x7   : > { %282 = sbr.rel (%p279_p3) target bundleno = 34 (0x22), region = 44 }
   0xc   : > { %s842_s21 = smov (!%p334_p4, %s682_s21), 1  ;;  %v635_v0 = vld [vmem:[%s832_s2] ss:$0 sm:$0xff] }
   0xd   : > { %s745_s25 = sshll.u32 %s842_s21, 6  ;;  %v637_v1 = vld [vmem:[%s834_s4] ss:$0 sm:$0xff] }
   0xe   : > { %s757_s8 = scalar_lea.vmem %s830_s0, %s745_s25  ;;  %s763_s11 = scalar_lea.vmem %s831_s1, %s745_s25  ;;  %v768_v2 = vld [vmem:[%s833_s3] ss:$0 sm:$0xff] }
   0xf   : > { %v773_v3 = vld [vmem:[%s835_s5] ss:$0 sm:$0xff]  ;;  %v371_v6 = vld [vmem:[%s757_s8 + $0x8] sm:$0xff]  ;;  %v372_v11 = vld [vmem:[%s757_s8 + $0x10] sm:$0xff]  ;;  %s798_s18 = scalar_lea.vmem %s836_s6, %s745_s25 }
  0x10   : > { %v370_v4 = vld [vmem:[%s757_s8] sm:$0xff]  ;;  %v386_v9 = vmul.f32 %v635_v0, %v371_v6  ;;  %v409_v10 = vld [vmem:[%s763_s11 + $0x8] sm:$0xff]  ;;  %v410_v12 = vld [vmem:[%s763_s11 + $0x10] sm:$0xff]  ;;  %v387_v14 = vmul.f32 %v635_v0, %v372_v11 }
  0x11   : > { %v408_v5 = vld [vmem:[%s763_s11] sm:$0xff]  ;;  %v385_v7 = vmul.f32 %v635_v0, %v370_v4  ;;  %v424_v13 = vmul.f32 %v637_v1, %v409_v10  ;;  %v425_v15 = vmul.f32 %v637_v1, %v410_v12  ;;  %v373_v16 = vld [vmem:[%s757_s8 + $0x18] sm:$0xff]  ;;  %v375_v24 = vld [vmem:[%s757_s8 + $0x28] sm:$0xff] }
  0x12   : > { %v423_v8 = vmul.f32 %v637_v1, %v408_v5  ;;  %v411_v17 = vld [vmem:[%s763_s11 + $0x18] sm:$0xff]  ;;  %v374_v18 = vld [vmem:[%s757_s8 + $0x20] sm:$0xff]  ;;  %v401_v21 = vadd.f32 %v768_v2, %v386_v9  ;;  %v388_v22 = vmul.f32 %v635_v0, %v373_v16  ;;  %v402_v26 = vadd.f32 %v768_v2, %v387_v14  ;;  %v413_v29 = vld [vmem:[%s763_s11 + $0x28] sm:$0xff] }
  0x13   : > { %v400_v19 = vadd.f32 %v768_v2, %v385_v7  ;;  %v412_v23 = vld [vmem:[%s763_s11 + $0x20] sm:$0xff]  ;;  %v439_v25 = vadd.f32 %v773_v3, %v424_v13  ;;  %v440_v27 = vadd.f32 %v773_v3, %v425_v15  ;;  %v426_v28 = vmul.f32 %v637_v1, %v411_v17  ;;  %v376_v38 = vld [vmem:[%s757_s8 + $0x30] sm:$0xff]  ;;  %v377_v44 = vld [vmem:[%s757_s8 + $0x38] sm:$0xff] }
  0x14   : > { %v438_v20 = vadd.f32 %v773_v3, %v423_v8  ;;  %v403_v31 = vadd.f32 %v768_v2, %v388_v22  ;;  %v389_v32 = vmul.f32 %v635_v0, %v374_v18  ;;  %v427_v33 = vmul.f32 %v637_v1, %v412_v23  ;;  %v414_v39 = vld [vmem:[%s763_s11 + $0x30] sm:$0xff]  ;;  %v415_v45 = vld [vmem:[%s763_s11 + $0x38] sm:$0xff] }
  0x15   : > { %v447_v34 = vadd.f32 %v439_v25, %v401_v21  ;;  %v448_v35 = vadd.f32 %v440_v27, %v402_v26  ;;  %v441_v36 = vadd.f32 %v773_v3, %v426_v28  ;;  %v390_v37 = vmul.f32 %v635_v0, %v375_v24 }
  0x16   : > { %v446_v30 = vadd.f32 %v438_v20, %v400_v19  ;;  %v404_v41 = vadd.f32 %v768_v2, %v389_v32  ;;  %v442_v42 = vadd.f32 %v773_v3, %v427_v33  ;;  %v428_v43 = vmul.f32 %v637_v1, %v413_v29 }
  0x17   : > { %v455_v46 = vmax.f32 %v447_v34, 0.0  ;;  %v456_v47 = vmax.f32 %v448_v35, 0.0  ;;  %v449_v48 = vadd.f32 %v441_v36, %v403_v31  ;;  %v405_v49 = vadd.f32 %v768_v2, %v390_v37 }
  0x18   : > { %v454_v40 = vmax.f32 %v446_v30, 0.0  ;;  %v450_v50 = vadd.f32 %v442_v42, %v404_v41  ;;  %v443_v51 = vadd.f32 %v773_v3, %v428_v43  ;;  %v391_v52 = vmul.f32 %v635_v0, %v376_v38 }
  0x19   : > { %v429_v53 = vmul.f32 %v637_v1, %v414_v39  ;;  %463 = vst [vmem:[%s798_s18 + $0x8] sm:$0xff] %v455_v46  ;;  %464 = vst [vmem:[%s798_s18 + $0x10] sm:$0xff] %v456_v47  ;;  %v457_v54 = vmax.f32 %v449_v48, 0.0  ;;  %v392_v55 = vmul.f32 %v635_v0, %v377_v44  ;;  %v430_v56 = vmul.f32 %v637_v1, %v415_v45 }
  0x1a   : > { %462 = vst [vmem:[%s798_s18] sm:$0xff] %v454_v40  ;;  %v458_v57 = vmax.f32 %v450_v50, 0.0  ;;  %v451_v58 = vadd.f32 %v443_v51, %v405_v49  ;;  %v406_v59 = vadd.f32 %v768_v2, %v391_v52 }
  0x1b   : > { %v444_v60 = vadd.f32 %v773_v3, %v429_v53  ;;  %465 = vst [vmem:[%s798_s18 + $0x18] sm:$0xff] %v457_v54  ;;  %v407_v61 = vadd.f32 %v768_v2, %v392_v55  ;;  %v445_v62 = vadd.f32 %v773_v3, %v430_v56 }
  0x1c   : > { %466 = vst [vmem:[%s798_s18 + $0x20] sm:$0xff] %v458_v57  ;;  %v459_v63 = vmax.f32 %v451_v58, 0.0 }
  0x1d   : > { %v452_v4 = vadd.f32 %v444_v60, %v406_v59  ;;  %v453_v5 = vadd.f32 %v445_v62, %v407_v61 }
  0x1e   : > { %467 = vst [vmem:[%s798_s18 + $0x28] sm:$0xff] %v459_v63 }
  0x1f   : > { %v460_v0 = vmax.f32 %v452_v4, 0.0  ;;  %v461_v6 = vmax.f32 %v453_v5, 0.0 }
  0x21   : > { %468 = vst [vmem:[%s798_s18 + $0x30] sm:$0xff] %v460_v0  ;;  %469 = vst [vmem:[%s798_s18 + $0x38] sm:$0xff] %v461_v6 }
  0x22 PF: > { %s16_s23 = sadd.s32 1, %s690_s23   ;;  %s837_s21 = smov %s686_s22 }
  0x23   : > { %p13_p5 = scmp.ge.s32.totalorder %s16_s23, 4   ;;  %s838_s22 = smov %s840_s24 }
  0x25   :  { %15 = sbr.rel (!%p13_p5) target bundleno = 2 (0x2), region = 89 }

// kernel: wide_residual_block.6
= control target key start
LH: loop header
LB: loop body
LE: loop exit
PB: predicated region body
PF: predicated region fallthrough
CT: control target
= control target key end

     0   :  { %s871_s12 = smov 0   ;;  %s873_s13 = smov 0   ;;  %s977_s0 = inlined_call_operand.vmem [shape: f32[2,1,8,8,128], index: 0, kind: input, shape index: {}]   ;;  %s978_s1 = inlined_call_operand.vmem [shape: f32[1,128,128], index: 1, kind: input, shape index: {}]   ;;  %s979_s2 = inlined_call_operand.vmem [shape: f32[2,8,8,128], index: 2, kind: output, shape index: {0}]   ;;  %s980_s3 = inlined_call_operand.vmem [shape: f32[2,2,128], index: 3, kind: output, shape index: {1}]  }
   0x1   :  { %s875_s14 = smov 0  }
   0x2 LB: > { %s26_s15 = sadd.s32 1, %s842_s13  ;;  %p661_p0 = scmp.ge.s32.totalorder %s846_s14, 1  ;;  %s846_s14 = sphi %s875_s14, %s14_s14   ;;  %s842_s13 = sphi %s873_s13, %s982_s13   ;;  %s838_s12 = sphi %s871_s12, %s981_s12  }
   0x3   : > { %p28_p1 = scmp.ge.s32.totalorder %s26_s15, 2  ;;  %p165_p2 = scmp.lt.s32.totalorder %s846_s14, 3 }
   0x5   : > { %s984_s15 = smov (%p28_p1, %s26_s15), 0  ;;  %p166_p3 = pnand %p661_p0, %p165_p2 }
   0x6   : > { %p203_p4 = scmp.lt.s32.totalorder (!%p166_p3), %s838_s12, 1 }
   0x7   : > { %169 = sbr.rel (%p166_p3) target bundleno = 478 (0x1de), region = 28 }
   0xc   : > { %v250_v0 = vld [vmem:[%s978_s1 + $0x78] sm:$0xff]  ;;  %v249_v1 = vld [vmem:[%s978_s1 + $0x70] sm:$0xff]  ;;  %v248_v2 = vld [vmem:[%s978_s1 + $0x68] sm:$0xff]  ;;  %s986_s12 = smov (!%p203_p4, %s838_s12), 1  ;;  %v848_v24 = vmov 0.0   ;;  %vm849_vm0 = vmmov 0  }
   0xd   : > { %715 = vmatprep.subr.mxu0 %v250_v0  ;;  %v247_v3 = vld [vmem:[%s978_s1 + $0x60] sm:$0xff]  ;;  %s671_s24 = sshll.u32 %s986_s12, 6  ;;  %v246_v4 = vld [vmem:[%s978_s1 + $0x58] sm:$0xff]  ;;  %v245_v6 = vld [vmem:[%s978_s1 + $0x50] sm:$0xff]  ;;  %759 = vmatprep.subr.mxu1 %v848_v24  ;;  %vm364_vm1 = vcmask 523264   ;;  %v850_v34 = vmov 1.0  }
   0xe   : > { %716 = vmatpush3.msra.mxu0 %v250_v0  ;;  %s909_s27 = scalar_lea.vmem %s977_s0, %s671_s24  ;;  %v244_v7 = vld [vmem:[%s978_s1 + $0x48] sm:$0xff]  ;;  %v243_v8 = vld [vmem:[%s978_s1 + $0x40] sm:$0xff]  ;;  %v242_v9 = vld [vmem:[%s978_s1 + $0x38] sm:$0xff]  ;;  %775 = vmatprep.mubr.msk.f32.mxu1 %vm849_vm0, %v848_v24  ;;  %s219_s6 = scalar_lea.vmem %s979_s2, %s671_s24  ;;  %vm519_vm2 = vcmask 1040384  }
   0xf   : > { %717 = vmatprep.subr.mxu0 %v249_v1  ;;  %v227_v5 = vld [vmem:[%s909_s27] sm:$0xff]  ;;  %v241_v10 = vld [vmem:[%s978_s1 + $0x30] sm:$0xff]  ;;  %v240_v11 = vld [vmem:[%s978_s1 + $0x28] sm:$0xff]  ;;  %s666_s24 = sshll.u32 %s986_s12, 1 }
  0x10   : > { %718 = vmatpush3.msra.mxu0 %v249_v1  ;;  %747 = vmatprep.mubr.f32.mxu0 %v227_v5  ;;  %v239_v12 = vld [vmem:[%s978_s1 + $0x20] sm:$0xff]  ;;  %v238_v13 = vld [vmem:[%s978_s1 + $0x18] sm:$0xff]  ;;  %v237_v14 = vld [vmem:[%s978_s1 + $0x10] sm:$0xff]  ;;  %s226_s8 = scalar_lea.vmem %s980_s3, %s666_s24 }
  0x11   : > { %719 = vmatprep.subr.mxu0 %v248_v2  ;;  %v236_v15 = vld [vmem:[%s978_s1 + $0x8] sm:$0xff]  ;;  %v235_v16 = vld [vmem:[%s978_s1] sm:$0xff]  ;;  %v229_v18 = vld [vmem:[%s909_s27 + $0x10] sm:$0xff] }
  0x12   : > { %720 = vmatpush3.msra.mxu0 %v248_v2  ;;  %v228_v17 = vld [vmem:[%s909_s27 + $0x8] sm:$0xff]  ;;  %v230_v19 = vld [vmem:[%s909_s27 + $0x18] sm:$0xff]  ;;  %v231_v20 = vld [vmem:[%s909_s27 + $0x20] sm:$0xff] }
  0x13   : > { %721 = vmatprep.subr.mxu0 %v247_v3  ;;  %v232_v21 = vld [vmem:[%s909_s27 + $0x28] sm:$0xff]  ;;  %v233_v22 = vld [vmem:[%s909_s27 + $0x30] sm:$0xff]  ;;  %v234_v23 = vld [vmem:[%s909_s27 + $0x38] sm:$0xff] }
  0x14   : > { %722 = vmatpush3.msra.mxu0 %v247_v3 }
  0x15   : > { %723 = vmatprep.subr.mxu0 %v246_v4 }
  0x16   : > { %724 = vmatpush3.msra.mxu0 %v246_v4 }
  0x17   : > { %725 = vmatprep.subr.mxu0 %v245_v6 }
  0x18   : > { %726 = vmatpush3.msra.mxu0 %v245_v6 }
  0x19   : > { %727 = vmatprep.subr.mxu0 %v244_v7 }
  0x1a   : > { %728 = vmatpush3.msra.mxu0 %v244_v7 }
  0x1b   : > { %729 = vmatprep.subr.mxu0 %v243_v8 }
  0x1c   : > { %730 = vmatpush3.msra.mxu0 %v243_v8 }
  0x1d   : > { %731 = vmatprep.subr.mxu0 %v242_v9 }
  0x1e   : > { %732 = vmatpush3.msra.mxu0 %v242_v9 }
  0x1f   : > { %733 = vmatprep.subr.mxu0 %v241_v10 }
  0x20   : > { %734 = vmatpush3.msra.mxu0 %v241_v10 }
  0x21   : > { %735 = vmatprep.subr.mxu0 %v240_v11 }
  0x22   : > { %736 = vmatpush3.msra.mxu0 %v240_v11 }
  0x23   : > { %737 = vmatprep.subr.mxu0 %v239_v12 }
  0x24   : > { %738 = vmatpush3.msra.mxu0 %v239_v12 }
  0x25   : > { %739 = vmatprep.subr.mxu0 %v238_v13 }
  0x26   : > { %740 = vmatpush3.msra.mxu0 %v238_v13 }
  0x27   : > { %741 = vmatprep.subr.mxu0 %v237_v14 }
  0x28   : > { %742 = vmatpush3.msra.mxu0 %v237_v14 }
  0x29   : > { %743 = vmatprep.subr.mxu0 %v236_v15 }
  0x2a   : > { %744 = vmatpush3.msra.mxu0 %v236_v15 }
  0x2b   : > { %745 = vmatprep.subr.mxu0 %v235_v16 }
  0x2c   : > { %746 = vmatpush3.msra.mxu0 %v235_v16 }
  0x2d   : > { %748 = vmatmul.mubr.f32.vlgmr.msra.gmra.mxu0 %v228_v17 }
  0x2e   : > { %750 = vmatprep.mubr.f32.mxu0 %v229_v18 }
  0x31   : > { %751 = vmatmul.mubr.f32.gmra.mxu0 %v230_v19 }
  0x32   : > { %753 = vmatprep.mubr.f32.mxu0 %v231_v20 }
  0x35   : > { %754 = vmatmul.mubr.f32.gmra.mxu0 %v232_v21 }
  0x36   : > { %756 = vmatprep.mubr.f32.mxu0 %v233_v22 }
  0x39   : > { %757 = vmatmul.mubr.f32.gmra.mxu0 %v234_v23 }
  0xed   : > { %v749_v25 = vpop.f32.mrf.mxu0 }
  0xee   : > { %357 = vst [vmem:[%s219_s6 + $0x8] sm:$0xff] %v749_v25  ;;  %v439_v40 = vmul.f32 %v749_v25, %v749_v25 }
  0xef   : > { %v317_v26 = vpop.f32.mrf.mxu0 }
  0xf0   : > { %356 = vst [vmem:[%s219_s6] sm:$0xff] %v317_v26  ;;  %v438_v41 = vmul.f32 %v317_v26, %v317_v26 }
  0xf1   : > { %v752_v27 = vpop.f32.mrf.mxu0 }
  0xf2   : > { %359 = vst [vmem:[%s219_s6 + $0x18] sm:$0xff] %v752_v27  ;;  %v441_v38 = vmul.f32 %v752_v27, %v752_v27 }
  0xf3   : > { %v327_v28 = vpop.f32.mrf.mxu0 }
  0xf4   : > { %358 = vst [vmem:[%s219_s6 + $0x10] sm:$0xff] %v327_v28  ;;  %v440_v39 = vmul.f32 %v327_v28, %v327_v28 }
  0xf5   : > { %v755_v29 = vpop.f32.mrf.mxu0 }
  0xf6   : > { %361 = vst [vmem:[%s219_s6 + $0x28] sm:$0xff] %v755_v29  ;;  %v443_v36 = vmul.f32 %v755_v29, %v755_v29 }
  0xf7   : > { %v337_v30 = vpop.f32.mrf.mxu0 }
  0xf8   : > { %360 = vst [vmem:[%s219_s6 + $0x20] sm:$0xff] %v337_v30  ;;  %v442_v37 = vmul.f32 %v337_v30, %v337_v30 }
  0xf9   : > { %v758_v31 = vpop.f32.mrf.mxu0 }
  0xfa   : > { %363 = vst [vmem:[%s219_s6 + $0x38] sm:$0xff] %v758_v31  ;;  %760 = vmatpush3.msra.mxu1 %v758_v31  ;;  %v445_v33 = vmul.f32 %v758_v31, %v758_v31 }
  0xfb   : > { %v347_v32 = vpop.f32.mrf.mxu0  ;;  %761 = vmatprep.subr.mxu1 %v848_v24 }
  0xfc   : > { %362 = vst [vmem:[%s219_s6 + $0x30] sm:$0xff] %v347_v32  ;;  %762 = vmatpush3.msra.mxu1 %v347_v32  ;;  %v444_v35 = vmul.f32 %v347_v32, %v347_v32 }
  0xfd   : > { %763 = vmatprep.subr.mxu1 %v848_v24 }
  0xfe   : > { %764 = vmatpush3.msra.mxu1 %v755_v29 }
  0xff   : > { %765 = vmatprep.subr.mxu1 %v848_v24 }
 0x100   : > { %766 = vmatpush3.msra.mxu1 %v337_v30 }
 0x101   : > { %767 = vmatprep.subr.mxu1 %v848_v24 }
 0x102   : > { %768 = vmatpush3.msra.mxu1 %v752_v27 }
 0x103   : > { %769 = vmatprep.subr.mxu1 %v848_v24 }
 0x104   : > { %770 = vmatpush3.msra.mxu1 %v327_v28 }
 0x105   : > { %771 = vmatprep.subr.mxu1 %v848_v24 }
 0x106   : > { %772 = vmatpush3.msra.mxu1 %v749_v25 }
 0x107   : > { %773 = vmatprep.subr.mxu1 %v848_v24 }
 0x108   : > { %774 = vmatpush3.msra.mxu1 %v317_v26 }
 0x109   : > { %776 = vmatmul.mubr.msk.f32.vlgmr.msra.gmra.mxu1 %vm364_vm1, %v850_v34  ;;  %778 = vmatprep.subr.mxu1 %v848_v24 }
 0x10a   : > { %779 = vmatpush3.msra.mxu1 %v445_v33  ;;  %794 = vmatprep.mubr.msk.f32.mxu1 %vm849_vm0, %v848_v24 }
 0x10b   : > { %780 = vmatprep.subr.mxu1 %v848_v24 }
 0x10c   : > { %781 = vmatpush3.msra.mxu1 %v444_v35 }
 0x10d   : > { %782 = vmatprep.subr.mxu1 %v848_v24 }
 0x10e   : > { %783 = vmatpush3.msra.mxu1 %v443_v36 }
 0x10f   : > { %784 = vmatprep.subr.mxu1 %v848_v24 }
 0x110   : > { %785 = vmatpush3.msra.mxu1 %v442_v37 }
 0x111   : > { %786 = vmatprep.subr.mxu1 %v848_v24 }
 0x112   : > { %787 = vmatpush3.msra.mxu1 %v441_v38 }
 0x113   : > { %788 = vmatprep.subr.mxu1 %v848_v24 }
 0x114   : > { %789 = vmatpush3.msra.mxu1 %v440_v39 }
 0x115   : > { %790 = vmatprep.subr.mxu1 %v848_v24 }
 0x116   : > { %791 = vmatpush3.msra.mxu1 %v439_v40 }
 0x117   : > { %792 = vmatprep.subr.mxu1 %v848_v24 }
 0x118   : > { %793 = vmatpush3.msra.mxu1 %v438_v41 }
 0x119   : > { %795 = vmatmul.mubr.msk.f32.vlgmr.msra.gmra.mxu1 %vm364_vm1, %v850_v34 }
 0x1c9   : > { %v434_v42 = vpop.f32.mrf.mxu1 }
 0x1cb   : > { %v777_v43 = vpop.f32.mrf.mxu1 }
 0x1d9   : > { %v512_v44 = vpop.f32.mrf.mxu1 }
 0x1da   : > { %v517_v45 = vrot.slane %v512_v44, 7 }
 0x1db   : > { %v796_v46 = vpop.f32.mrf.mxu1 }
 0x1dc   : > { %v520_v47 = vsel %vm519_vm2, %v434_v42, %v517_v45 }
 0x1dd   : > { %521 = vst [vmem:[%s226_s8] sm:$0x3] %v520_v47 }
 0x1de PF: > { %s14_s14 = sadd.s32 1, %s846_s14   ;;  %s981_s12 = smov %s842_s13 }
 0x1df   : > { %p11_p5 = scmp.ge.s32.totalorder %s14_s14, 4   ;;  %s982_s13 = smov %s984_s15 }
 0x1e1   :  { %13 = sbr.rel (!%p11_p5) target bundleno = 2 (0x2), region = 73 }

// kernel: wide_residual_block.4
= control target key start
LH: loop header
LB: loop body
LE: loop exit
PB: predicated region body
PF: predicated region fallthrough
CT: control target
= control target key end

     0   :  { %s2699_s12 = smov 0   ;;  %s2701_s13 = smov 0   ;;  %s3378_s0 = inlined_call_operand.vmem [shape: f32[2,4,9,9,128], index: 0, kind: input, shape index: {}]   ;;  %s3379_s1 = inlined_call_operand.vmem [shape: f32[9,128,128], index: 1, kind: input, shape index: {}]   ;;  %s3380_s2 = inlined_call_operand.vmem [shape: f32[2,8,8,128], index: 2, kind: output, shape index: {0}]   ;;  %s3381_s3 = inlined_call_operand.vmem [shape: f32[2,2,128], index: 3, kind: output, shape index: {1}]  }
   0x1   :  { %s2703_s14 = smov 0  }
   0x2 LB: > { %s26_s15 = sadd.s32 1, %s2670_s13  ;;  %p1762_p0 = scmp.ge.s32.totalorder %s2674_s14, 1  ;;  %s2674_s14 = sphi %s2703_s14, %s14_s14   ;;  %s2670_s13 = sphi %s2701_s13, %s3400_s13   ;;  %s2666_s12 = sphi %s2699_s12, %s3399_s12  }
   0x3   : > { %p28_p1 = scmp.ge.s32.totalorder %s26_s15, 2  ;;  %p165_p2 = scmp.lt.s32.totalorder %s2674_s14, 3 }
   0x5   : > { %s3402_s15 = smov (%p28_p1, %s26_s15), 0  ;;  %p166_p3 = pnand %p1762_p0, %p165_p2 }
   0x7   : > { %169 = sbr.rel (%p166_p3) target bundleno = 634 (0x27a), region = 28 }
   0xc   : > { %v1790_v0 = vld [vmem:[%s3379_s1 + $0xf8] sm:$0xff]  ;;  %v1789_v2 = vld [vmem:[%s3379_s1 + $0xf0] sm:$0xff]  ;;  %v1788_v4 = vld [vmem:[%s3379_s1 + $0xe8] sm:$0xff]  ;;  %p203_p4 = scmp.lt.s32.totalorder %s2666_s12, 1  ;;  %vm2677_vm0 = vmmov 0   ;;  %vm1465_vm1 = vcmask 523264  }
   0xd   : > { %v250_v1 = vld [vmem:[%s3379_s1 + $0x78] sm:$0xff]  ;;  %2190 = vmatprep.subr.mxu0 %v1790_v0  ;;  %v249_v3 = vld [vmem:[%s3379_s1 + $0x70] sm:$0xff]  ;;  %v248_v5 = vld [vmem:[%s3379_s1 + $0x68] sm:$0xff]  ;;  %vm1620_vm2 = vcmask 1040384  }
   0xe   : > { %2234 = vmatprep.subr.mxu1 %v250_v1  ;;  %2191 = vmatpush3.msra.mxu0 %v1790_v0  ;;  %v1787_v6 = vld [vmem:[%s3379_s1 + $0xe0] sm:$0xff]  ;;  %v1786_v8 = vld [vmem:[%s3379_s1 + $0xd8] sm:$0xff]  ;;  %v1785_v10 = vld [vmem:[%s3379_s1 + $0xd0] sm:$0xff]  ;;  %s3404_s12 = smov (!%p203_p4, %s2666_s12), 1 }
   0xf   : > { %2235 = vmatpush3.msra.mxu1 %v250_v1  ;;  %2192 = vmatprep.subr.mxu0 %v1789_v2  ;;  %v247_v7 = vld [vmem:[%s3379_s1 + $0x60] sm:$0xff]  ;;  %v246_v9 = vld [vmem:[%s3379_s1 + $0x58] sm:$0xff]  ;;  %v245_v11 = vld [vmem:[%s3379_s1 + $0x50] sm:$0xff]  ;;  %s2624_s22 = smul.u32 576, %s3404_s12 }
  0x10   : > { %2236 = vmatprep.subr.mxu1 %v249_v3  ;;  %2193 = vmatpush3.msra.mxu0 %v1789_v2  ;;  %v1784_v12 = vld [vmem:[%s3379_s1 + $0xc8] sm:$0xff]  ;;  %v1783_v14 = vld [vmem:[%s3379_s1 + $0xc0] sm:$0xff]  ;;  %v1782_v16 = vld [vmem:[%s3379_s1 + $0xb8] sm:$0xff] }
  0x11   : > { %2237 = vmatpush3.msra.mxu1 %v249_v3  ;;  %2194 = vmatprep.subr.mxu0 %v1788_v4  ;;  %v244_v13 = vld [vmem:[%s3379_s1 + $0x48] sm:$0xff]  ;;  %v243_v15 = vld [vmem:[%s3379_s1 + $0x40] sm:$0xff]  ;;  %v242_v17 = vld [vmem:[%s3379_s1 + $0x38] sm:$0xff]  ;;  %s2817_s6 = scalar_lea.vmem %s3378_s0, %s2624_s22  ;;  %s1766_s22 = sshll.u32 %s3404_s12, 1 }
  0x12   : > { %2238 = vmatprep.subr.mxu1 %v248_v5  ;;  %2195 = vmatpush3.msra.mxu0 %v1788_v4  ;;  %v1781_v18 = vld [vmem:[%s3379_s1 + $0xb0] sm:$0xff]  ;;  %v1780_v20 = vld [vmem:[%s3379_s1 + $0xa8] sm:$0xff]  ;;  %v1779_v22 = vld [vmem:[%s3379_s1 + $0xa0] sm:$0xff]  ;;  %s226_s25 = scalar_lea.vmem %s3381_s3, %s1766_s22 }
  0x13   : > { %2239 = vmatpush3.msra.mxu1 %v248_v5  ;;  %2196 = vmatprep.subr.mxu0 %v1787_v6  ;;  %v241_v19 = vld [vmem:[%s3379_s1 + $0x30] sm:$0xff]  ;;  %v240_v21 = vld [vmem:[%s3379_s1 + $0x28] sm:$0xff]  ;;  %v239_v23 = vld [vmem:[%s3379_s1 + $0x20] sm:$0xff] }
  0x14   : > { %2240 = vmatprep.subr.mxu1 %v247_v7  ;;  %2197 = vmatpush3.msra.mxu0 %v1787_v6  ;;  %v1778_v24 = vld [vmem:[%s3379_s1 + $0x98] sm:$0xff]  ;;  %v1777_v26 = vld [vmem:[%s3379_s1 + $0x90] sm:$0xff]  ;;  %v1776_v28 = vld [vmem:[%s3379_s1 + $0x88] sm:$0xff] }
  0x15   : > { %2241 = vmatpush3.msra.mxu1 %v247_v7  ;;  %2198 = vmatprep.subr.mxu0 %v1786_v8  ;;  %v238_v25 = vld [vmem:[%s3379_s1 + $0x18] sm:$0xff]  ;;  %v237_v27 = vld [vmem:[%s3379_s1 + $0x10] sm:$0xff]  ;;  %v236_v29 = vld [vmem:[%s3379_s1 + $0x8] sm:$0xff] }
  0x16   : > { %2242 = vmatprep.subr.mxu1 %v246_v9  ;;  %2199 = vmatpush3.msra.mxu0 %v1786_v8  ;;  %v1775_v30 = vld [vmem:[%s3379_s1 + $0x80] sm:$0xff]  ;;  %v1767_v32 = vld [vmem:[%s2817_s6 + $0x90] sm:$0xff]  ;;  %v1806_v36 = vld [vmem:[%s3379_s1 + $0x178] sm:$0xff] }
  0x17   : > { %2243 = vmatpush3.msra.mxu1 %v246_v9  ;;  %2200 = vmatprep.subr.mxu0 %v1785_v10  ;;  %v235_v31 = vld [vmem:[%s3379_s1] sm:$0xff]  ;;  %v2831_v35 = vld [vmem:[%s2817_s6 + $0x10] sm:$0xff]  ;;  %v1830_v37 = vld [vmem:[%s3379_s1 + $0x1f8] sm:$0xff] }
  0x18   : > { %2244 = vmatprep.subr.mxu1 %v245_v11  ;;  %2201 = vmatpush3.msra.mxu0 %v1785_v10  ;;  %v227_v33 = vld [vmem:[%s2817_s6] sm:$0xff]  ;;  %v1805_v38 = vld [vmem:[%s3379_s1 + $0x170] sm:$0xff]  ;;  %v1804_v40 = vld [vmem:[%s3379_s1 + $0x168] sm:$0xff] }
  0x19   : > { %2245 = vmatpush3.msra.mxu1 %v245_v11  ;;  %2202 = vmatprep.subr.mxu0 %v1784_v12  ;;  %v2828_v34 = vld [vmem:[%s2817_s6 + $0xa0] sm:$0xff]  ;;  %v1829_v39 = vld [vmem:[%s3379_s1 + $0x1f0] sm:$0xff]  ;;  %v1828_v41 = vld [vmem:[%s3379_s1 + $0x1e8] sm:$0xff] }
  0x1a   : > { %2246 = vmatprep.subr.mxu1 %v244_v13  ;;  %2203 = vmatpush3.msra.mxu0 %v1784_v12  ;;  %v1803_v42 = vld [vmem:[%s3379_s1 + $0x160] sm:$0xff]  ;;  %v1802_v44 = vld [vmem:[%s3379_s1 + $0x158] sm:$0xff]  ;;  %v1801_v46 = vld [vmem:[%s3379_s1 + $0x150] sm:$0xff] }
  0x1b   : > { %2247 = vmatpush3.msra.mxu1 %v244_v13  ;;  %2204 = vmatprep.subr.mxu0 %v1783_v14  ;;  %v1827_v43 = vld [vmem:[%s3379_s1 + $0x1e0] sm:$0xff]  ;;  %v1826_v45 = vld [vmem:[%s3379_s1 + $0x1d8] sm:$0xff]  ;;  %v1825_v47 = vld [vmem:[%s3379_s1 + $0x1d0] sm:$0xff] }
  0x1c   : > { %2248 = vmatprep.subr.mxu1 %v243_v15  ;;  %2205 = vmatpush3.msra.mxu0 %v1783_v14  ;;  %v1800_v48 = vld [vmem:[%s3379_s1 + $0x148] sm:$0xff]  ;;  %v1799_v50 = vld [vmem:[%s3379_s1 + $0x140] sm:$0xff]  ;;  %v1798_v52 = vld [vmem:[%s3379_s1 + $0x138] sm:$0xff] }
  0x1d   : > { %2249 = vmatpush3.msra.mxu1 %v243_v15  ;;  %2206 = vmatprep.subr.mxu0 %v1782_v16  ;;  %v1824_v49 = vld [vmem:[%s3379_s1 + $0x1c8] sm:$0xff]  ;;  %v1823_v51 = vld [vmem:[%s3379_s1 + $0x1c0] sm:$0xff]  ;;  %v2887_v53 = vld [vmem:[%s2817_s6 + $0xb0] sm:$0xff] }
  0x1e   : > { %2250 = vmatprep.subr.mxu1 %v242_v17  ;;  %2207 = vmatpush3.msra.mxu0 %v1782_v16  ;;  %v2890_v54 = vld [vmem:[%s2817_s6 + $0x20] sm:$0xff]  ;;  %v1797_v55 = vld [vmem:[%s3379_s1 + $0x130] sm:$0xff]  ;;  %v1822_v56 = vld [vmem:[%s3379_s1 + $0x1b8] sm:$0xff] }
  0x1f   : > { %2251 = vmatpush3.msra.mxu1 %v242_v17  ;;  %2208 = vmatprep.subr.mxu0 %v1781_v18  ;;  %v2900_v57 = vld [vmem:[%s2817_s6 + $0xc0] sm:$0xff]  ;;  %v2903_v58 = vld [vmem:[%s2817_s6 + $0x30] sm:$0xff]  ;;  %v1796_v59 = vld [vmem:[%s3379_s1 + $0x128] sm:$0xff] }
  0x20   : > { %2252 = vmatprep.subr.mxu1 %v241_v19  ;;  %2209 = vmatpush3.msra.mxu0 %v1781_v18  ;;  %v1821_v60 = vld [vmem:[%s3379_s1 + $0x1b0] sm:$0xff]  ;;  %v2918_v62 = vld [vmem:[%s2817_s6 + $0x40] sm:$0xff]  ;;  %v1820_v0 = vld [vmem:[%s3379_s1 + $0x1a8] sm:$0xff] }
  0x21   : > { %2253 = vmatpush3.msra.mxu1 %v241_v19  ;;  %2210 = vmatprep.subr.mxu0 %v1780_v20  ;;  %v2915_v61 = vld [vmem:[%s2817_s6 + $0xd0] sm:$0xff]  ;;  %v1795_v63 = vld [vmem:[%s3379_s1 + $0x120] sm:$0xff]  ;;  %v1794_v3 = vld [vmem:[%s3379_s1 + $0x118] sm:$0xff] }
  0x22   : > { %2254 = vmatprep.subr.mxu1 %v240_v21  ;;  %2211 = vmatpush3.msra.mxu0 %v1780_v20  ;;  %v2927_v1 = vld [vmem:[%s2817_s6 + $0xe0] sm:$0xff]  ;;  %v2930_v2 = vld [vmem:[%s2817_s6 + $0x50] sm:$0xff]  ;;  %v1818_v8 = vld [vmem:[%s3379_s1 + $0x198] sm:$0xff] }
  0x23   : > { %2255 = vmatpush3.msra.mxu1 %v240_v21  ;;  %2212 = vmatprep.subr.mxu0 %v1779_v22  ;;  %v1819_v4 = vld [vmem:[%s3379_s1 + $0x1a0] sm:$0xff]  ;;  %v2943_v5 = vld [vmem:[%s2817_s6 + $0xf0] sm:$0xff]  ;;  %v1792_v11 = vld [vmem:[%s3379_s1 + $0x108] sm:$0xff] }
  0x24   : > { %2256 = vmatprep.subr.mxu1 %v239_v23  ;;  %2213 = vmatpush3.msra.mxu0 %v1779_v22  ;;  %v2946_v6 = vld [vmem:[%s2817_s6 + $0x60] sm:$0xff]  ;;  %v1793_v7 = vld [vmem:[%s3379_s1 + $0x110] sm:$0xff]  ;;  %v1816_v14 = vld [vmem:[%s3379_s1 + $0x188] sm:$0xff] }
  0x25   : > { %2257 = vmatpush3.msra.mxu1 %v239_v23  ;;  %2214 = vmatprep.subr.mxu0 %v1778_v24  ;;  %v2955_v9 = vld [vmem:[%s2817_s6 + $0x100] sm:$0xff]  ;;  %v2958_v10 = vld [vmem:[%s2817_s6 + $0x70] sm:$0xff]  ;;  %v1854_v18 = vld [vmem:[%s3379_s1 + $0x278] sm:$0xff] }
  0x26   : > { %2258 = vmatprep.subr.mxu1 %v238_v25  ;;  %2215 = vmatpush3.msra.mxu0 %v1778_v24  ;;  %v1817_v12 = vld [vmem:[%s3379_s1 + $0x190] sm:$0xff]  ;;  %v1791_v13 = vld [vmem:[%s3379_s1 + $0x100] sm:$0xff]  ;;  %v1878_v22 = vld [vmem:[%s3379_s1 + $0x2f8] sm:$0xff] }
  0x27   : > { %2259 = vmatpush3.msra.mxu1 %v238_v25  ;;  %2216 = vmatprep.subr.mxu0 %v1777_v26  ;;  %v487_v15 = vld [vmem:[%s2817_s6 + $0x1] sm:$0xff]  ;;  %v2978_v16 = vld [vmem:[%s2817_s6 + $0x11] sm:$0xff] }
  0x28   : > { %2260 = vmatprep.subr.mxu1 %v237_v27  ;;  %2217 = vmatpush3.msra.mxu0 %v1777_v26  ;;  %v1815_v17 = vld [vmem:[%s3379_s1 + $0x180] sm:$0xff]  ;;  %v1808_v20 = vld [vmem:[%s2817_s6 + $0x130] sm:$0xff]  ;;  %v1852_v25 = vld [vmem:[%s3379_s1 + $0x268] sm:$0xff] }
  0x29   : > { %2261 = vmatpush3.msra.mxu1 %v237_v27  ;;  %2218 = vmatprep.subr.mxu0 %v1776_v28  ;;  %v1807_v19 = vld [vmem:[%s2817_s6 + $0x120] sm:$0xff]  ;;  %v1853_v21 = vld [vmem:[%s3379_s1 + $0x270] sm:$0xff] }
  0x2a   : > { %2262 = vmatprep.subr.mxu1 %v236_v29  ;;  %2219 = vmatpush3.msra.mxu0 %v1776_v28  ;;  %v2996_v23 = vld [vmem:[%s2817_s6 + $0x21] sm:$0xff]  ;;  %v2999_v24 = vld [vmem:[%s2817_s6 + $0x31] sm:$0xff] }
  0x2b   : > { %2263 = vmatpush3.msra.mxu1 %v236_v29  ;;  %2220 = vmatprep.subr.mxu0 %v1775_v30  ;;  %v1877_v26 = vld [vmem:[%s3379_s1 + $0x2f0] sm:$0xff]  ;;  %v1809_v27 = vld [vmem:[%s2817_s6 + $0x140] sm:$0xff] }
  0x2c   : > { %2264 = vmatprep.subr.mxu1 %v235_v31  ;;  %2221 = vmatpush3.msra.mxu0 %v1775_v30  ;;  %v1851_v28 = vld [vmem:[%s3379_s1 + $0x260] sm:$0xff]  ;;  %v1810_v29 = vld [vmem:[%s2817_s6 + $0x150] sm:$0xff]  ;;  %v1876_v30 = vld [vmem:[%s3379_s1 + $0x2e8] sm:$0xff] }
  0x2d   : > { %2222 = vmatprep.mubr.f32.mxu0 %v1767_v32  ;;  %2265 = vmatpush3.msra.mxu1 %v235_v31  ;;  %v3018_v31 = vld [vmem:[%s2817_s6 + $0x41] sm:$0xff]  ;;  %v3021_v32 = vld [vmem:[%s2817_s6 + $0x51] sm:$0xff] }
  0x2e   : > { %2266 = vmatprep.mubr.f32.mxu1 %v227_v33  ;;  %2223 = vmatmul.mubr.f32.vlgmr.msra.gmra.mxu0 %v2828_v34  ;;  %v1850_v33 = vld [vmem:[%s3379_s1 + $0x258] sm:$0xff] }
  0x2f   : > { %2267 = vmatmul.mubr.f32.vlgmr.msra.gmra.mxu1 %v2831_v35  ;;  %2278 = vmatprep.subr.mxu0 %v1806_v36 }
  0x30   : > { %2322 = vmatprep.subr.mxu1 %v1830_v37  ;;  %2279 = vmatpush3.msra.mxu0 %v1806_v36  ;;  %v1875_v36 = vld [vmem:[%s3379_s1 + $0x2e0] sm:$0xff] }
  0x31   : > { %2323 = vmatpush3.msra.mxu1 %v1830_v37  ;;  %2280 = vmatprep.subr.mxu0 %v1805_v38  ;;  %v1811_v37 = vld [vmem:[%s2817_s6 + $0x160] sm:$0xff] }
  0x32   : > { %2324 = vmatprep.subr.mxu1 %v1829_v39  ;;  %2281 = vmatpush3.msra.mxu0 %v1805_v38  ;;  %v1849_v38 = vld [vmem:[%s3379_s1 + $0x250] sm:$0xff] }
  0x33   : > { %2325 = vmatpush3.msra.mxu1 %v1829_v39  ;;  %2282 = vmatprep.subr.mxu0 %v1804_v40  ;;  %v1812_v39 = vld [vmem:[%s2817_s6 + $0x170] sm:$0xff] }
  0x34   : > { %2326 = vmatprep.subr.mxu1 %v1828_v41  ;;  %2283 = vmatpush3.msra.mxu0 %v1804_v40  ;;  %v1874_v40 = vld [vmem:[%s3379_s1 + $0x2d8] sm:$0xff] }
  0x35   : > { %2327 = vmatpush3.msra.mxu1 %v1828_v41  ;;  %2284 = vmatprep.subr.mxu0 %v1803_v42  ;;  %v3040_v41 = vld [vmem:[%s2817_s6 + $0x61] sm:$0xff] }
  0x36   : > { %2328 = vmatprep.subr.mxu1 %v1827_v43  ;;  %2285 = vmatpush3.msra.mxu0 %v1803_v42  ;;  %v3043_v42 = vld [vmem:[%s2817_s6 + $0x71] sm:$0xff] }
  0x37   : > { %2329 = vmatpush3.msra.mxu1 %v1827_v43  ;;  %2286 = vmatprep.subr.mxu0 %v1802_v44  ;;  %v1848_v43 = vld [vmem:[%s3379_s1 + $0x248] sm:$0xff] }
  0x38   : > { %2330 = vmatprep.subr.mxu1 %v1826_v45  ;;  %2287 = vmatpush3.msra.mxu0 %v1802_v44  ;;  %v1873_v44 = vld [vmem:[%s3379_s1 + $0x2d0] sm:$0xff] }
  0x39   : > { %2331 = vmatpush3.msra.mxu1 %v1826_v45  ;;  %2288 = vmatprep.subr.mxu0 %v1801_v46  ;;  %v1813_v45 = vld [vmem:[%s2817_s6 + $0x180] sm:$0xff] }
  0x3a   : > { %2332 = vmatprep.subr.mxu1 %v1825_v47  ;;  %2289 = vmatpush3.msra.mxu0 %v1801_v46  ;;  %v1847_v46 = vld [vmem:[%s3379_s1 + $0x240] sm:$0xff] }
  0x3b   : > { %2333 = vmatpush3.msra.mxu1 %v1825_v47  ;;  %2290 = vmatprep.subr.mxu0 %v1800_v48  ;;  %v1814_v47 = vld [vmem:[%s2817_s6 + $0x190] sm:$0xff] }
  0x3c   : > { %2334 = vmatprep.subr.mxu1 %v1824_v49  ;;  %2291 = vmatpush3.msra.mxu0 %v1800_v48  ;;  %v1872_v48 = vld [vmem:[%s3379_s1 + $0x2c8] sm:$0xff] }
  0x3d   : > { %2335 = vmatpush3.msra.mxu1 %v1824_v49  ;;  %2292 = vmatprep.subr.mxu0 %v1799_v50  ;;  %v1846_v49 = vld [vmem:[%s3379_s1 + $0x238] sm:$0xff] }
  0x3e   : > { %2336 = vmatprep.subr.mxu1 %v1823_v51  ;;  %2293 = vmatpush3.msra.mxu0 %v1799_v50  ;;  %v1871_v50 = vld [vmem:[%s3379_s1 + $0x2c0] sm:$0xff] }
  0x3f   : > { %2337 = vmatpush3.msra.mxu1 %v1823_v51  ;;  %2294 = vmatprep.subr.mxu0 %v1798_v52  ;;  %v1845_v51 = vld [vmem:[%s3379_s1 + $0x230] sm:$0xff] }
  0x40   : > { %2225 = vmatprep.mubr.f32.mxu0 %v2887_v53  ;;  %2295 = vmatpush3.msra.mxu0 %v1798_v52  ;;  %v1870_v52 = vld [vmem:[%s3379_s1 + $0x2b8] sm:$0xff] }
  0x41   : > { %2269 = vmatprep.mubr.f32.mxu1 %v2890_v54  ;;  %2296 = vmatprep.subr.mxu0 %v1797_v55 }
  0x42   : > { %2338 = vmatprep.subr.mxu1 %v1822_v56  ;;  %2226 = vmatmul.mubr.f32.gmra.mxu0 %v2900_v57 }
  0x43   : > { %2270 = vmatmul.mubr.f32.gmra.mxu1 %v2903_v58  ;;  %2297 = vmatpush3.msra.mxu0 %v1797_v55  ;;  %v1844_v55 = vld [vmem:[%s3379_s1 + $0x228] sm:$0xff] }
  0x44   : > { %2339 = vmatpush3.msra.mxu1 %v1822_v56  ;;  %2298 = vmatprep.subr.mxu0 %v1796_v59  ;;  %v1869_v56 = vld [vmem:[%s3379_s1 + $0x2b0] sm:$0xff] }
  0x45   : > { %2340 = vmatprep.subr.mxu1 %v1821_v60  ;;  %2299 = vmatpush3.msra.mxu0 %v1796_v59  ;;  %v1843_v59 = vld [vmem:[%s3379_s1 + $0x220] sm:$0xff] }
  0x46   : > { %2341 = vmatpush3.msra.mxu1 %v1821_v60  ;;  %2228 = vmatprep.mubr.f32.mxu0 %v2915_v61  ;;  %v1868_v60 = vld [vmem:[%s3379_s1 + $0x2a8] sm:$0xff] }
  0x47   : > { %2272 = vmatprep.mubr.f32.mxu1 %v2918_v62  ;;  %2300 = vmatprep.subr.mxu0 %v1795_v63 }
  0x48   : > { %2342 = vmatprep.subr.mxu1 %v1820_v0  ;;  %2229 = vmatmul.mubr.f32.gmra.mxu0 %v2927_v1 }
  0x49   : > { %2273 = vmatmul.mubr.f32.gmra.mxu1 %v2930_v2  ;;  %2301 = vmatpush3.msra.mxu0 %v1795_v63  ;;  %v1842_v63 = vld [vmem:[%s3379_s1 + $0x218] sm:$0xff] }
  0x4a   : > { %2343 = vmatpush3.msra.mxu1 %v1820_v0  ;;  %2302 = vmatprep.subr.mxu0 %v1794_v3  ;;  %v1867_v0 = vld [vmem:[%s3379_s1 + $0x2a0] sm:$0xff] }
  0x4b   : > { %2344 = vmatprep.subr.mxu1 %v1819_v4  ;;  %2303 = vmatpush3.msra.mxu0 %v1794_v3  ;;  %v1841_v3 = vld [vmem:[%s3379_s1 + $0x210] sm:$0xff] }
  0x4c   : > { %2345 = vmatpush3.msra.mxu1 %v1819_v4  ;;  %2231 = vmatprep.mubr.f32.mxu0 %v2943_v5  ;;  %v1866_v4 = vld [vmem:[%s3379_s1 + $0x298] sm:$0xff] }
  0x4d   : > { %2275 = vmatprep.mubr.f32.mxu1 %v2946_v6  ;;  %2304 = vmatprep.subr.mxu0 %v1793_v7 }
  0x4e   : > { %2346 = vmatprep.subr.mxu1 %v1818_v8  ;;  %2232 = vmatmul.mubr.f32.gmra.mxu0 %v2955_v9 }
  0x4f   : > { %2276 = vmatmul.mubr.f32.gmra.mxu1 %v2958_v10  ;;  %2305 = vmatpush3.msra.mxu0 %v1793_v7  ;;  %v1840_v7 = vld [vmem:[%s3379_s1 + $0x208] sm:$0xff] }
  0x50   : > { %2347 = vmatpush3.msra.mxu1 %v1818_v8  ;;  %2306 = vmatprep.subr.mxu0 %v1792_v11  ;;  %v1865_v8 = vld [vmem:[%s3379_s1 + $0x290] sm:$0xff] }
  0x51   : > { %2348 = vmatprep.subr.mxu1 %v1817_v12  ;;  %2307 = vmatpush3.msra.mxu0 %v1792_v11  ;;  %v1839_v11 = vld [vmem:[%s3379_s1 + $0x200] sm:$0xff] }
  0x52   : > { %2349 = vmatpush3.msra.mxu1 %v1817_v12  ;;  %2308 = vmatprep.subr.mxu0 %v1791_v13  ;;  %v1864_v12 = vld [vmem:[%s3379_s1 + $0x288] sm:$0xff] }
  0x53   : > { %2350 = vmatprep.subr.mxu1 %v1816_v14  ;;  %2309 = vmatpush3.msra.mxu0 %v1791_v13  ;;  %v1831_v13 = vld [vmem:[%s2817_s6 + $0x1b0] sm:$0xff] }
  0x54   : > { %2310 = vmatprep.mubr.f32.mxu0 %v487_v15  ;;  %2351 = vmatpush3.msra.mxu1 %v1816_v14  ;;  %v1832_v14 = vld [vmem:[%s2817_s6 + $0x1c0] sm:$0xff] }
  0x55   : > { %2311 = vmatmul.mubr.f32.vlgmr.msra.gmra.mxu0 %v2978_v16  ;;  %2352 = vmatprep.subr.mxu1 %v1815_v17  ;;  %v1863_v15 = vld [vmem:[%s3379_s1 + $0x280] sm:$0xff] }
  0x56   : > { %2366 = vmatprep.subr.mxu0 %v1854_v18  ;;  %2353 = vmatpush3.msra.mxu1 %v1815_v17  ;;  %v1902_v17 = vld [vmem:[%s3379_s1 + $0x378] sm:$0xff] }
  0x57   : > { %2354 = vmatprep.mubr.f32.mxu1 %v1807_v19  ;;  %2367 = vmatpush3.msra.mxu0 %v1854_v18  ;;  %v1855_v18 = vld [vmem:[%s2817_s6 + $0x121] sm:$0xff]  ;;  %v1856_v19 = vld [vmem:[%s2817_s6 + $0x131] sm:$0xff] }
  0x58   : > { %2355 = vmatmul.mubr.f32.vlgmr.msra.gmra.mxu1 %v1808_v20  ;;  %2368 = vmatprep.subr.mxu0 %v1853_v21  ;;  %v1901_v20 = vld [vmem:[%s3379_s1 + $0x370] sm:$0xff] }
  0x59   : > { %2410 = vmatprep.subr.mxu1 %v1878_v22  ;;  %2313 = vmatprep.mubr.f32.mxu0 %v2996_v23 }
  0x5a   : > { %2369 = vmatpush3.msra.mxu0 %v1853_v21  ;;  %2411 = vmatpush3.msra.mxu1 %v1878_v22  ;;  %v1926_v21 = vld [vmem:[%s3379_s1 + $0x3f8] sm:$0xff]  ;;  %v1833_v22 = vld [vmem:[%s2817_s6 + $0x1d0] sm:$0xff] }
  0x5b   : > { %2314 = vmatmul.mubr.f32.gmra.mxu0 %v2999_v24  ;;  %2370 = vmatprep.subr.mxu0 %v1852_v25 }
  0x5c   : > { %2412 = vmatprep.subr.mxu1 %v1877_v26  ;;  %2357 = vmatprep.mubr.f32.mxu1 %v1809_v27  ;;  %v1925_v27 = vld [vmem:[%s3379_s1 + $0x3f0] sm:$0xff] }
  0x5d   : > { %2371 = vmatpush3.msra.mxu0 %v1852_v25  ;;  %2413 = vmatpush3.msra.mxu1 %v1877_v26  ;;  %v1834_v25 = vld [vmem:[%s2817_s6 + $0x1e0] sm:$0xff]  ;;  %v1900_v26 = vld [vmem:[%s3379_s1 + $0x368] sm:$0xff] }
  0x5e   : > { %2372 = vmatprep.subr.mxu0 %v1851_v28  ;;  %2358 = vmatmul.mubr.f32.gmra.mxu1 %v1810_v29  ;;  %v1899_v29 = vld [vmem:[%s3379_s1 + $0x360] sm:$0xff] }
  0x5f   : > { %2414 = vmatprep.subr.mxu1 %v1876_v30  ;;  %2316 = vmatprep.mubr.f32.mxu0 %v3018_v31 }
  0x60   : > { %2373 = vmatpush3.msra.mxu0 %v1851_v28  ;;  %2415 = vmatpush3.msra.mxu1 %v1876_v30  ;;  %v1857_v28 = vld [vmem:[%s2817_s6 + $0x141] sm:$0xff]  ;;  %v1858_v30 = vld [vmem:[%s2817_s6 + $0x151] sm:$0xff] }
  0x61   : > { %2317 = vmatmul.mubr.f32.gmra.mxu0 %v3021_v32  ;;  %2374 = vmatprep.subr.mxu0 %v1850_v33 }
  0x62   : > { %2416 = vmatprep.subr.mxu1 %v1875_v36  ;;  %2360 = vmatprep.mubr.f32.mxu1 %v1811_v37  ;;  %v1836_v37 = vld [vmem:[%s2817_s6 + $0x200] sm:$0xff] }
  0x63   : > { %2375 = vmatpush3.msra.mxu0 %v1850_v33  ;;  %2417 = vmatpush3.msra.mxu1 %v1875_v36  ;;  %v1924_v33 = vld [vmem:[%s3379_s1 + $0x3e8] sm:$0xff]  ;;  %v1835_v36 = vld [vmem:[%s2817_s6 + $0x1f0] sm:$0xff] }
  0x64   : > { %2376 = vmatprep.subr.mxu0 %v1849_v38  ;;  %2361 = vmatmul.mubr.f32.gmra.mxu1 %v1812_v39  ;;  %v1923_v39 = vld [vmem:[%s3379_s1 + $0x3e0] sm:$0xff] }
  0x65   : > { %2418 = vmatprep.subr.mxu1 %v1874_v40  ;;  %2319 = vmatprep.mubr.f32.mxu0 %v3040_v41 }
  0x66   : > { %2377 = vmatpush3.msra.mxu0 %v1849_v38  ;;  %2419 = vmatpush3.msra.mxu1 %v1874_v40  ;;  %v1898_v38 = vld [vmem:[%s3379_s1 + $0x358] sm:$0xff]  ;;  %v1859_v40 = vld [vmem:[%s2817_s6 + $0x161] sm:$0xff] }
  0x67   : > { %2320 = vmatmul.mubr.f32.gmra.mxu0 %v3043_v42  ;;  %2378 = vmatprep.subr.mxu0 %v1848_v43 }
  0x68   : > { %2420 = vmatprep.subr.mxu1 %v1873_v44  ;;  %2363 = vmatprep.mubr.f32.mxu1 %v1813_v45  ;;  %v1922_v45 = vld [vmem:[%s3379_s1 + $0x3d8] sm:$0xff] }
  0x69   : > { %2379 = vmatpush3.msra.mxu0 %v1848_v43  ;;  %2421 = vmatpush3.msra.mxu1 %v1873_v44  ;;  %v1897_v43 = vld [vmem:[%s3379_s1 + $0x350] sm:$0xff] }
  0x6a   : > { %2380 = vmatprep.subr.mxu0 %v1847_v46  ;;  %2364 = vmatmul.mubr.f32.gmra.mxu1 %v1814_v47  ;;  %v1860_v44 = vld [vmem:[%s2817_s6 + $0x171] sm:$0xff]  ;;  %v1838_v47 = vld [vmem:[%s2817_s6 + $0x220] sm:$0xff] }
  0x6b   : > { %2422 = vmatprep.subr.mxu1 %v1872_v48  ;;  %2381 = vmatpush3.msra.mxu0 %v1847_v46  ;;  %v1837_v46 = vld [vmem:[%s2817_s6 + $0x210] sm:$0xff] }
  0x6c   : > { %2423 = vmatpush3.msra.mxu1 %v1872_v48  ;;  %2382 = vmatprep.subr.mxu0 %v1846_v49  ;;  %v1896_v48 = vld [vmem:[%s3379_s1 + $0x348] sm:$0xff] }
  0x6d   : > { %2424 = vmatprep.subr.mxu1 %v1871_v50  ;;  %2383 = vmatpush3.msra.mxu0 %v1846_v49  ;;  %v1921_v49 = vld [vmem:[%s3379_s1 + $0x3d0] sm:$0xff] }
  0x6e   : > { %2425 = vmatpush3.msra.mxu1 %v1871_v50  ;;  %2384 = vmatprep.subr.mxu0 %v1845_v51  ;;  %v1861_v50 = vld [vmem:[%s2817_s6 + $0x181] sm:$0xff] }
  0x6f   : > { %2426 = vmatprep.subr.mxu1 %v1870_v52  ;;  %2385 = vmatpush3.msra.mxu0 %v1845_v51  ;;  %v1895_v51 = vld [vmem:[%s3379_s1 + $0x340] sm:$0xff] }
  0x70   : > { %2427 = vmatpush3.msra.mxu1 %v1870_v52  ;;  %2386 = vmatprep.subr.mxu0 %v1844_v55  ;;  %v1862_v52 = vld [vmem:[%s2817_s6 + $0x191] sm:$0xff] }
  0x71   : > { %2428 = vmatprep.subr.mxu1 %v1869_v56  ;;  %2387 = vmatpush3.msra.mxu0 %v1844_v55  ;;  %v1920_v55 = vld [vmem:[%s3379_s1 + $0x3c8] sm:$0xff] }
  0x72   : > { %2429 = vmatpush3.msra.mxu1 %v1869_v56  ;;  %2388 = vmatprep.subr.mxu0 %v1843_v59  ;;  %v1894_v56 = vld [vmem:[%s3379_s1 + $0x338] sm:$0xff] }
  0x73   : > { %2430 = vmatprep.subr.mxu1 %v1868_v60  ;;  %2389 = vmatpush3.msra.mxu0 %v1843_v59  ;;  %v1919_v59 = vld [vmem:[%s3379_s1 + $0x3c0] sm:$0xff] }
  0x74   : > { %2431 = vmatpush3.msra.mxu1 %v1868_v60  ;;  %2390 = vmatprep.subr.mxu0 %v1842_v63  ;;  %v1893_v60 = vld [vmem:[%s3379_s1 + $0x330] sm:$0xff] }
  0x75   : > { %2432 = vmatprep.subr.mxu1 %v1867_v0  ;;  %2391 = vmatpush3.msra.mxu0 %v1842_v63  ;;  %v1918_v63 = vld [vmem:[%s3379_s1 + $0x3b8] sm:$0xff] }
  0x76   : > { %2433 = vmatpush3.msra.mxu1 %v1867_v0  ;;  %2392 = vmatprep.subr.mxu0 %v1841_v3  ;;  %v1892_v0 = vld [vmem:[%s3379_s1 + $0x328] sm:$0xff] }
  0x77   : > { %2434 = vmatprep.subr.mxu1 %v1866_v4  ;;  %2393 = vmatpush3.msra.mxu0 %v1841_v3  ;;  %v1917_v3 = vld [vmem:[%s3379_s1 + $0x3b0] sm:$0xff] }
  0x78   : > { %2435 = vmatpush3.msra.mxu1 %v1866_v4  ;;  %2394 = vmatprep.subr.mxu0 %v1840_v7  ;;  %v1891_v4 = vld [vmem:[%s3379_s1 + $0x320] sm:$0xff] }
  0x79   : > { %2436 = vmatprep.subr.mxu1 %v1865_v8  ;;  %2395 = vmatpush3.msra.mxu0 %v1840_v7  ;;  %v1916_v7 = vld [vmem:[%s3379_s1 + $0x3a8] sm:$0xff] }
  0x7a   : > { %2437 = vmatpush3.msra.mxu1 %v1865_v8  ;;  %2396 = vmatprep.subr.mxu0 %v1839_v11  ;;  %v1890_v8 = vld [vmem:[%s3379_s1 + $0x318] sm:$0xff] }
  0x7b   : > { %2438 = vmatprep.subr.mxu1 %v1864_v12  ;;  %2397 = vmatpush3.msra.mxu0 %v1839_v11  ;;  %v1915_v11 = vld [vmem:[%s3379_s1 + $0x3a0] sm:$0xff] }
  0x7c   : > { %2398 = vmatprep.mubr.f32.mxu0 %v1831_v13  ;;  %2439 = vmatpush3.msra.mxu1 %v1864_v12  ;;  %v1889_v12 = vld [vmem:[%s3379_s1 + $0x310] sm:$0xff]  ;;  %v1914_v13 = vld [vmem:[%s3379_s1 + $0x398] sm:$0xff] }
  0x7d   : > { %2399 = vmatmul.mubr.f32.vlgmr.msra.gmra.mxu0 %v1832_v14  ;;  %2440 = vmatprep.subr.mxu1 %v1863_v15  ;;  %v1888_v14 = vld [vmem:[%s3379_s1 + $0x308] sm:$0xff] }
  0x7e   : > { %2454 = vmatprep.subr.mxu0 %v1902_v17  ;;  %2441 = vmatpush3.msra.mxu1 %v1863_v15  ;;  %v1913_v15 = vld [vmem:[%s3379_s1 + $0x390] sm:$0xff] }
  0x7f   : > { %2442 = vmatprep.mubr.f32.mxu1 %v1855_v18  ;;  %2455 = vmatpush3.msra.mxu0 %v1902_v17  ;;  %v1887_v17 = vld [vmem:[%s3379_s1 + $0x300] sm:$0xff]  ;;  %v1912_v18 = vld [vmem:[%s3379_s1 + $0x388] sm:$0xff] }
  0x80   : > { %2443 = vmatmul.mubr.f32.vlgmr.msra.gmra.mxu1 %v1856_v19  ;;  %2456 = vmatprep.subr.mxu0 %v1901_v20  ;;  %v1911_v19 = vld [vmem:[%s3379_s1 + $0x380] sm:$0xff] }
  0x81   : > { %2498 = vmatprep.subr.mxu1 %v1926_v21  ;;  %2401 = vmatprep.mubr.f32.mxu0 %v1833_v22  ;;  %v1948_v22 = vld [vmem:[%s3379_s1 + $0x468] sm:$0xff] }
  0x82   : > { %2457 = vmatpush3.msra.mxu0 %v1901_v20  ;;  %2499 = vmatpush3.msra.mxu1 %v1926_v21  ;;  %v1950_v20 = vld [vmem:[%s3379_s1 + $0x478] sm:$0xff]  ;;  %v1949_v21 = vld [vmem:[%s3379_s1 + $0x470] sm:$0xff] }
  0x83   : > { %2402 = vmatmul.mubr.f32.gmra.mxu0 %v1834_v25  ;;  %2458 = vmatprep.subr.mxu0 %v1900_v26  ;;  %v1934_v25 = vld [vmem:[%s2817_s6 + $0x81] sm:$0xff] }
  0x84   : > { %2500 = vmatprep.subr.mxu1 %v1925_v27  ;;  %2445 = vmatprep.mubr.f32.mxu1 %v1857_v28 }
  0x85   : > { %2459 = vmatpush3.msra.mxu0 %v1900_v26  ;;  %2501 = vmatpush3.msra.mxu1 %v1925_v27 }
  0x86   : > { %2460 = vmatprep.subr.mxu0 %v1899_v29  ;;  %2446 = vmatmul.mubr.f32.gmra.mxu1 %v1858_v30 }
  0x87   : > { %2502 = vmatprep.subr.mxu1 %v1924_v33  ;;  %2404 = vmatprep.mubr.f32.mxu0 %v1835_v36 }
  0x88   : > { %2461 = vmatpush3.msra.mxu0 %v1899_v29  ;;  %2503 = vmatpush3.msra.mxu1 %v1924_v33  ;;  %v3382_v29 = vmov 0.0  }
  0x89   : > { %2405 = vmatmul.mubr.f32.gmra.mxu0 %v1836_v37  ;;  %2462 = vmatprep.subr.mxu0 %v1898_v38 }
  0x8a   : > { %2504 = vmatprep.subr.mxu1 %v1923_v39  ;;  %2448 = vmatprep.mubr.f32.mxu1 %v1859_v40 }
  0x8b   : > { %2463 = vmatpush3.msra.mxu0 %v1898_v38  ;;  %2505 = vmatpush3.msra.mxu1 %v1923_v39 }
  0x8c   : > { %2464 = vmatprep.subr.mxu0 %v1897_v43  ;;  %2449 = vmatmul.mubr.f32.gmra.mxu1 %v1860_v44 }
  0x8d   : > { %2506 = vmatprep.subr.mxu1 %v1922_v45  ;;  %2407 = vmatprep.mubr.f32.mxu0 %v1837_v46 }
  0x8e   : > { %2465 = vmatpush3.msra.mxu0 %v1897_v43  ;;  %2507 = vmatpush3.msra.mxu1 %v1922_v45 }
  0x8f   : > { %2408 = vmatmul.mubr.f32.gmra.mxu0 %v1838_v47  ;;  %2466 = vmatprep.subr.mxu0 %v1896_v48 }
  0x90   : > { %2508 = vmatprep.subr.mxu1 %v1921_v49  ;;  %2451 = vmatprep.mubr.f32.mxu1 %v1861_v50 }
  0x91   : > { %2467 = vmatpush3.msra.mxu0 %v1896_v48  ;;  %2509 = vmatpush3.msra.mxu1 %v1921_v49 }
  0x92   : > { %2468 = vmatprep.subr.mxu0 %v1895_v51  ;;  %2452 = vmatmul.mubr.f32.gmra.mxu1 %v1862_v52 }
  0x93   : > { %2510 = vmatprep.subr.mxu1 %v1920_v55  ;;  %2469 = vmatpush3.msra.mxu0 %v1895_v51 }
  0x94   : > { %2511 = vmatpush3.msra.mxu1 %v1920_v55  ;;  %2470 = vmatprep.subr.mxu0 %v1894_v56 }
  0x95   : > { %2512 = vmatprep.subr.mxu1 %v1919_v59  ;;  %2471 = vmatpush3.msra.mxu0 %v1894_v56 }
  0x96   : > { %2513 = vmatpush3.msra.mxu1 %v1919_v59  ;;  %2472 = vmatprep.subr.mxu0 %v1893_v60 }
  0x97   : > { %2514 = vmatprep.subr.mxu1 %v1918_v63  ;;  %2473 = vmatpush3.msra.mxu0 %v1893_v60 }
  0x98   : > { %2515 = vmatpush3.msra.mxu1 %v1918_v63  ;;  %2474 = vmatprep.subr.mxu0 %v1892_v0 }
  0x99   : > { %2516 = vmatprep.subr.mxu1 %v1917_v3  ;;  %2475 = vmatpush3.msra.mxu0 %v1892_v0 }
  0x9a   : > { %2517 = vmatpush3.msra.mxu1 %v1917_v3  ;;  %2476 = vmatprep.subr.mxu0 %v1891_v4 }
  0x9b   : > { %2518 = vmatprep.subr.mxu1 %v1916_v7  ;;  %2477 = vmatpush3.msra.mxu0 %v1891_v4 }
  0x9c   : > { %2519 = vmatpush3.msra.mxu1 %v1916_v7  ;;  %2478 = vmatprep.subr.mxu0 %v1890_v8 }
  0x9d   : > { %2520 = vmatprep.subr.mxu1 %v1915_v11  ;;  %2479 = vmatpush3.msra.mxu0 %v1890_v8 }
  0x9e   : > { %2521 = vmatpush3.msra.mxu1 %v1915_v11  ;;  %2480 = vmatprep.subr.mxu0 %v1889_v12 }
  0x9f   : > { %2522 = vmatprep.subr.mxu1 %v1914_v13  ;;  %2481 = vmatpush3.msra.mxu0 %v1889_v12 }
  0xa0   : > { %2523 = vmatpush3.msra.mxu1 %v1914_v13  ;;  %2482 = vmatprep.subr.mxu0 %v1888_v14 }
  0xa1   : > { %2524 = vmatprep.subr.mxu1 %v1913_v15  ;;  %2483 = vmatpush3.msra.mxu0 %v1888_v14 }
  0xa2   : > { %2525 = vmatpush3.msra.mxu1 %v1913_v15  ;;  %2484 = vmatprep.subr.mxu0 %v1887_v17 }
  0xa3   : > { %2526 = vmatprep.subr.mxu1 %v1912_v18  ;;  %2485 = vmatpush3.msra.mxu0 %v1887_v17 }
  0xa4   : > { %2486 = vmatprep.mubr.f32.mxu0 %v2831_v35  ;;  %2527 = vmatpush3.msra.mxu1 %v1912_v18  ;;  %v1947_v35 = vld [vmem:[%s3379_s1 + $0x460] sm:$0xff] }
  0xa5   : > { %2487 = vmatmul.mubr.f32.vlgmr.msra.gmra.mxu0 %v2890_v54  ;;  %2528 = vmatprep.subr.mxu1 %v1911_v19  ;;  %v1886_v54 = vld [vmem:[%s2817_s6 + $0x80] sm:$0xff] }
  0xa6   : > { %2542 = vmatprep.subr.mxu0 %v1950_v20  ;;  %2529 = vmatpush3.msra.mxu1 %v1911_v19 }
  0xa7   : > { %2530 = vmatprep.mubr.f32.mxu1 %v2828_v34  ;;  %2543 = vmatpush3.msra.mxu0 %v1950_v20  ;;  %v1946_v34 = vld [vmem:[%s3379_s1 + $0x458] sm:$0xff] }
  0xa8   : > { %2531 = vmatmul.mubr.f32.vlgmr.msra.gmra.mxu1 %v2887_v53  ;;  %2544 = vmatprep.subr.mxu0 %v1949_v21  ;;  %v1945_v53 = vld [vmem:[%s3379_s1 + $0x450] sm:$0xff] }
  0xa9   : > { %2489 = vmatprep.mubr.f32.mxu0 %v2903_v58  ;;  %2545 = vmatpush3.msra.mxu0 %v1949_v21  ;;  %v1910_v58 = vld [vmem:[%s2817_s6 + $0x110] sm:$0xff]  ;;  %s1955_s6 = sshll.u32 %s3404_s12, 6 }
  0xaa   : > { %2533 = vmatprep.mubr.f32.mxu1 %v2900_v57  ;;  %2490 = vmatmul.mubr.f32.gmra.mxu0 %v2918_v62  ;;  %v1944_v57 = vld [vmem:[%s3379_s1 + $0x448] sm:$0xff]  ;;  %v1942_v62 = vld [vmem:[%s3379_s1 + $0x438] sm:$0xff]  ;;  %s3321_s21 = scalar_lea.vmem %s3380_s2, %s1955_s6 }
  0xab   : > { %2546 = vmatprep.subr.mxu0 %v1948_v22  ;;  %2492 = vmatprep.mubr.f32.mxu0 %v2930_v2  ;;  %v1940_v2 = vld [vmem:[%s3379_s1 + $0x428] sm:$0xff] }
  0xac   : > { %2547 = vmatpush3.msra.mxu0 %v1948_v22  ;;  %2534 = vmatmul.mubr.f32.gmra.mxu1 %v2915_v61  ;;  %v1943_v61 = vld [vmem:[%s3379_s1 + $0x440] sm:$0xff] }
  0xad   : > { %2548 = vmatprep.subr.mxu0 %v1947_v35  ;;  %2536 = vmatprep.mubr.f32.mxu1 %v2927_v1  ;;  %v1941_v1 = vld [vmem:[%s3379_s1 + $0x430] sm:$0xff] }
  0xae   : > { %2549 = vmatpush3.msra.mxu0 %v1947_v35  ;;  %2586 = vmatprep.subr.mxu1 %v3382_v29 }
  0xaf   : > { %2493 = vmatmul.mubr.f32.gmra.mxu0 %v2946_v6  ;;  %2550 = vmatprep.subr.mxu0 %v1946_v34  ;;  %v1938_v6 = vld [vmem:[%s3379_s1 + $0x418] sm:$0xff] }
  0xb0   : > { %2551 = vmatpush3.msra.mxu0 %v1946_v34  ;;  %2537 = vmatmul.mubr.f32.gmra.mxu1 %v2943_v5  ;;  %v1939_v5 = vld [vmem:[%s3379_s1 + $0x420] sm:$0xff] }
  0xb1   : > { %2552 = vmatprep.subr.mxu0 %v1945_v53  ;;  %2495 = vmatprep.mubr.f32.mxu0 %v2958_v10  ;;  %v1936_v10 = vld [vmem:[%s3379_s1 + $0x408] sm:$0xff] }
  0xb2   : > { %2553 = vmatpush3.msra.mxu0 %v1945_v53  ;;  %2539 = vmatprep.mubr.f32.mxu1 %v2955_v9  ;;  %v1937_v9 = vld [vmem:[%s3379_s1 + $0x410] sm:$0xff] }
  0xb3   : > { %2496 = vmatmul.mubr.f32.gmra.mxu0 %v1886_v54  ;;  %2554 = vmatprep.subr.mxu0 %v1944_v57 }
  0xb4   : > { %2555 = vmatpush3.msra.mxu0 %v1944_v57  ;;  %2540 = vmatmul.mubr.f32.gmra.mxu1 %v1910_v58 }
  0xb5   : > { %2556 = vmatprep.subr.mxu0 %v1943_v61  ;;  %2574 = vmatprep.mubr.f32.mxu0 %v2978_v16  ;;  %v1935_v16 = vld [vmem:[%s3379_s1 + $0x400] sm:$0xff] }
  0xb6   : > { %2557 = vmatpush3.msra.mxu0 %v1943_v61  ;;  %2602 = vmatprep.mubr.msk.f32.mxu1 %vm2677_vm0, %v3382_v29 }
  0xb7   : > { %2558 = vmatprep.subr.mxu0 %v1942_v62 }
  0xb8   : > { %2559 = vmatpush3.msra.mxu0 %v1942_v62 }
  0xb9   : > { %2560 = vmatprep.subr.mxu0 %v1941_v1 }
  0xba   : > { %2561 = vmatpush3.msra.mxu0 %v1941_v1 }
  0xbb   : > { %2562 = vmatprep.subr.mxu0 %v1940_v2 }
  0xbc   : > { %2563 = vmatpush3.msra.mxu0 %v1940_v2 }
  0xbd   : > { %2564 = vmatprep.subr.mxu0 %v1939_v5 }
  0xbe   : > { %2565 = vmatpush3.msra.mxu0 %v1939_v5 }
  0xbf   : > { %2566 = vmatprep.subr.mxu0 %v1938_v6 }
  0xc0   : > { %2567 = vmatpush3.msra.mxu0 %v1938_v6 }
  0xc1   : > { %2568 = vmatprep.subr.mxu0 %v1937_v9 }
  0xc2   : > { %2569 = vmatpush3.msra.mxu0 %v1937_v9 }
  0xc3   : > { %2570 = vmatprep.subr.mxu0 %v1936_v10 }
  0xc4   : > { %2571 = vmatpush3.msra.mxu0 %v1936_v10 }
  0xc5   : > { %2572 = vmatprep.subr.mxu0 %v1935_v16 }
  0xc6   : > { %2573 = vmatpush3.msra.mxu0 %v1935_v16 }
  0xc7   : > { %2575 = vmatmul.mubr.f32.vlgmr.msra.gmra.mxu0 %v2996_v23 }
  0xc8   : > { %2577 = vmatprep.mubr.f32.mxu0 %v2999_v24 }
  0xcb   : > { %2578 = vmatmul.mubr.f32.gmra.mxu0 %v3018_v31 }
  0xcc   : > { %2580 = vmatprep.mubr.f32.mxu0 %v3021_v32 }
  0xcf   : > { %2581 = vmatmul.mubr.f32.gmra.mxu0 %v3040_v41 }
  0xd0   : > { %2583 = vmatprep.mubr.f32.mxu0 %v3043_v42 }
  0xd3   : > { %2584 = vmatmul.mubr.f32.gmra.mxu0 %v1934_v25 }
  0xee   : > { %v2224_v26 = vpop.f32.mrf.mxu0 }
  0xef   : > { %v2268_v23 = vpop.f32.mrf.mxu1 }
  0xf0   : > { %v343_v27 = vpop.f32.mrf.mxu0  ;;  %v454_v57 = vadd.f32 %v2268_v23, %v2224_v26 }
  0xf1   : > { %v448_v24 = vpop.f32.mrf.mxu1 }
  0xf2   : > { %v449_v62 = vadd.f32 %v448_v24, %v343_v27 }
 0x102   : > { %v2227_v28 = vpop.f32.mrf.mxu0 }
 0x103   : > { %v2271_v31 = vpop.f32.mrf.mxu1 }
 0x104   : > { %v353_v30 = vpop.f32.mrf.mxu0  ;;  %v464_v2 = vadd.f32 %v2271_v31, %v2227_v28 }
 0x105   : > { %v458_v41 = vpop.f32.mrf.mxu1 }
 0x106   : > { %v459_v10 = vadd.f32 %v458_v41, %v353_v30 }
 0x108   : > { %v2230_v33 = vpop.f32.mrf.mxu0 }
 0x109   : > { %v2274_v37 = vpop.f32.mrf.mxu1 }
 0x10a   : > { %v363_v36 = vpop.f32.mrf.mxu0  ;;  %v474_v29 = vadd.f32 %v2274_v37, %v2230_v33 }
 0x10b   : > { %v468_v39 = vpop.f32.mrf.mxu1 }
 0x10e   : > { %v3299_v32 = vpop.f32.mrf.mxu0 }
 0x10f   : > { %3384 = vst [vmem:[#allocation2_spill] sm:$0xff] %v3299_v32  ;;  %v2277_v43 = vpop.f32.mrf.mxu1 }
 0x110   : > { %v3301_v42 = vpop.f32.mrf.mxu0 }
 0x111   : > { %3385 = vst [vmem:[#allocation3_spill] sm:$0xff] %v3301_v42  ;;  %v478_v45 = vpop.f32.mrf.mxu1 }
 0x115   : > { %v2312_v38 = vpop.f32.mrf.mxu0 }
 0x116   : > { %v618_v1 = vadd.f32 %v2312_v38, %v454_v57  ;;  %v3391_v27 = vld [vmem:[#allocation2_spill] sm:$0xff] }
 0x117   : > { %v578_v40 = vpop.f32.mrf.mxu0  ;;  %v484_v38 = vadd.f32 %v2277_v43, %v3391_v27 }
 0x118   : > { %v2356_v46 = vpop.f32.mrf.mxu1  ;;  %v617_v5 = vadd.f32 %v578_v40, %v449_v62  ;;  %v3392_v30 = vld [vmem:[#allocation3_spill] sm:$0xff] }
 0x119   : > { %v757_v16 = vadd.f32 %v2356_v46, %v618_v1  ;;  %v479_v41 = vadd.f32 %v478_v45, %v3392_v30  ;;  %v3398_v30 = vmov 0.0  }
 0x11a   : > { %v717_v48 = vpop.f32.mrf.mxu1 }
 0x11b   : > { %v2315_v44 = vpop.f32.mrf.mxu0 }
 0x11c   : > { %v620_v25 = vadd.f32 %v2315_v44, %v464_v2 }
 0x11d   : > { %v588_v47 = vpop.f32.mrf.mxu0 }
 0x11e   : > { %v2359_v50 = vpop.f32.mrf.mxu1 }
 0x11f   : > { %v759_v26 = vadd.f32 %v2359_v50, %v620_v25 }
 0x120   : > { %v727_v52 = vpop.f32.mrf.mxu1 }
 0x121   : > { %v2318_v49 = vpop.f32.mrf.mxu0 }
 0x122   : > { %v622_v42 = vadd.f32 %v2318_v49, %v474_v29 }
 0x123   : > { %v598_v51 = vpop.f32.mrf.mxu0 }
 0x124   : > { %v2362_v56 = vpop.f32.mrf.mxu1 }
 0x125   : > { %v761_v44 = vadd.f32 %v2362_v56, %v622_v42 }
 0x126   : > { %v737_v63 = vpop.f32.mrf.mxu1 }
 0x127   : > { %v2321_v55 = vpop.f32.mrf.mxu0 }
 0x128   : > { %v624_v46 = vadd.f32 %v2321_v55, %v484_v38 }
 0x129   : > { %v608_v59 = vpop.f32.mrf.mxu0 }
 0x12a   : > { %v3303_v3 = vpop.f32.mrf.mxu1 }
 0x12b   : > { %3386 = vst [vmem:[#allocation4_spill] sm:$0xff] %v3303_v3 }
 0x12c   : > { %v3305_v7 = vpop.f32.mrf.mxu1 }
 0x12d   : > { %3387 = vst [vmem:[#allocation5_spill] sm:$0xff] %v3305_v7  ;;  %v619_v7 = vadd.f32 %v588_v47, %v459_v10 }
 0x12f   : > { %v758_v28 = vadd.f32 %v727_v52, %v619_v7 }
 0x134   : > { %v3394_v56 = vld [vmem:[#allocation5_spill] sm:$0xff] }
 0x13d   : > { %v2400_v60 = vpop.f32.mrf.mxu0 }
 0x13e   : > { %v896_v3 = vadd.f32 %v2400_v60, %v757_v16 }
 0x13f   : > { %v856_v0 = vpop.f32.mrf.mxu0 }
 0x140   : > { %v2444_v8 = vpop.f32.mrf.mxu1 }
 0x141   : > { %v1034_v31 = vadd.f32 %v2444_v8, %v896_v3 }
 0x142   : > { %v994_v12 = vpop.f32.mrf.mxu1 }
 0x143   : > { %v2403_v4 = vpop.f32.mrf.mxu0 }
 0x144   : > { %v898_v40 = vadd.f32 %v2403_v4, %v759_v26 }
 0x145   : > { %v866_v11 = vpop.f32.mrf.mxu0 }
 0x146   : > { %v2447_v14 = vpop.f32.mrf.mxu1 }
 0x147   : > { %v1036_v50 = vadd.f32 %v2447_v14, %v898_v40 }
 0x148   : > { %v1004_v17 = vpop.f32.mrf.mxu1 }
 0x149   : > { %v2406_v13 = vpop.f32.mrf.mxu0 }
 0x14a   : > { %v900_v49 = vadd.f32 %v2406_v13, %v761_v44  ;;  %v2678_v44 = vmov 1.0  }
 0x14b   : > { %v876_v15 = vpop.f32.mrf.mxu0 }
 0x14c   : > { %v2450_v19 = vpop.f32.mrf.mxu1 }
 0x14d   : > { %v1038_v55 = vadd.f32 %v2450_v19, %v900_v49 }
 0x14e   : > { %v1014_v22 = vpop.f32.mrf.mxu1 }
 0x14f   : > { %v2409_v18 = vpop.f32.mrf.mxu0 }
 0x151   : > { %v3307_v20 = vpop.f32.mrf.mxu0 }
 0x152   : > { %3388 = vst [vmem:[#allocation6_spill] sm:$0xff] %v3307_v20  ;;  %v3309_v34 = vpop.f32.mrf.mxu1  ;;  %v756_v20 = vadd.f32 %v717_v48, %v617_v5  ;;  %v623_v48 = vadd.f32 %v608_v59, %v479_v41 }
 0x153   : > { %3389 = vst [vmem:[#allocation7_spill] sm:$0xff] %v3309_v34  ;;  %v469_v34 = vadd.f32 %v468_v39, %v363_v36  ;;  %v897_v36 = vadd.f32 %v866_v11, %v758_v28 }
 0x154   : > { %v3311_v54 = vpop.f32.mrf.mxu1  ;;  %v895_v23 = vadd.f32 %v856_v0, %v756_v20  ;;  %v3393_v0 = vld [vmem:[#allocation4_spill] sm:$0xff]  ;;  %v762_v7 = vadd.f32 %v3394_v56, %v623_v48 }
 0x155   : > { %3390 = vst [vmem:[#allocation8_spill] sm:$0xff] %v3311_v54  ;;  %v621_v24 = vadd.f32 %v598_v51, %v469_v34  ;;  %v763_v3 = vadd.f32 %v3393_v0, %v624_v46  ;;  %v1035_v4 = vadd.f32 %v1004_v17, %v897_v36 }
 0x156   : > { %v1033_v47 = vadd.f32 %v994_v12, %v895_v23 }
 0x157   : > { %v760_v39 = vadd.f32 %v737_v63, %v621_v24  ;;  %v902_v63 = vadd.f32 %v2409_v18, %v763_v3 }
 0x159   : > { %v899_v43 = vadd.f32 %v876_v15, %v760_v39  ;;  %v3395_v17 = vld [vmem:[#allocation6_spill] sm:$0xff] }
 0x15a   : > { %v901_v20 = vadd.f32 %v3395_v17, %v762_v7 }
 0x15b   : > { %v1037_v13 = vadd.f32 %v1014_v22, %v899_v43 }
 0x15c   : > { %v3397_v1 = vld [vmem:[#allocation8_spill] sm:$0xff] }
 0x15d   : > { %v1039_v2 = vadd.f32 %v3397_v1, %v901_v20 }
 0x165   : > { %v2488_v21 = vpop.f32.mrf.mxu0 }
 0x166   : > { %v1173_v29 = vadd.f32 %v2488_v21, %v1034_v31 }
 0x167   : > { %v1133_v35 = vpop.f32.mrf.mxu0 }
 0x168   : > { %v2532_v58 = vpop.f32.mrf.mxu1  ;;  %v1172_v51 = vadd.f32 %v1133_v35, %v1033_v47 }
 0x169   : > { %v1312_v45 = vadd.f32 %v2532_v58, %v1173_v29 }
 0x16a   : > { %v2491_v53 = vpop.f32.mrf.mxu0  ;;  %v1272_v6 = vpop.f32.mrf.mxu1 }
 0x16b   : > { %v1175_v42 = vadd.f32 %v2491_v53, %v1036_v50  ;;  %v1311_v8 = vadd.f32 %v1272_v6, %v1172_v51  ;;  %v3396_v53 = vld [vmem:[#allocation7_spill] sm:$0xff] }
 0x16c   : > { %v1143_v61 = vpop.f32.mrf.mxu0  ;;  %v2535_v32 = vpop.f32.mrf.mxu1  ;;  %v1040_v18 = vadd.f32 %v3396_v53, %v902_v63 }
 0x16d   : > { %v1174_v11 = vadd.f32 %v1143_v61, %v1035_v4  ;;  %v1314_v19 = vadd.f32 %v2535_v32, %v1175_v42 }
 0x16e   : > { %v1282_v33 = vpop.f32.mrf.mxu1 }
 0x16f   : > { %v2494_v9 = vpop.f32.mrf.mxu0  ;;  %v1313_v57 = vadd.f32 %v1282_v33, %v1174_v11 }
 0x170   : > { %v2538_v52 = vpop.f32.mrf.mxu1  ;;  %v1177_v21 = vadd.f32 %v2494_v9, %v1038_v55 }
 0x171   : > { %v1153_v54 = vpop.f32.mrf.mxu0 }
 0x172   : > { %v1292_v14 = vpop.f32.mrf.mxu1  ;;  %v1176_v58 = vadd.f32 %v1153_v54, %v1037_v13  ;;  %v1316_v32 = vadd.f32 %v2538_v52, %v1177_v21 }
 0x173   : > { %v2497_v37 = vpop.f32.mrf.mxu0 }
 0x174   : > { %v2541_v61 = vpop.f32.mrf.mxu1  ;;  %v1179_v5 = vadd.f32 %v2497_v37, %v1040_v18  ;;  %v1315_v10 = vadd.f32 %v1292_v14, %v1176_v58 }
 0x175   : > { %v1163_v60 = vpop.f32.mrf.mxu0 }
 0x176   : > { %v1178_v16 = vadd.f32 %v1163_v60, %v1039_v2  ;;  %v1302_v25 = vpop.f32.mrf.mxu1  ;;  %v1318_v23 = vadd.f32 %v2541_v61, %v1179_v5 }
 0x178   : > { %v1317_v38 = vadd.f32 %v1302_v25, %v1178_v16 }
 0x187   : > { %v2576_v59 = vpop.f32.mrf.mxu0 }
 0x188   : > { %v3323_v12 = vadd.f32 %v2576_v59, %v1312_v45 }
 0x189   : > { %v1410_v15 = vpop.f32.mrf.mxu0 }
 0x18a   : > { %1458 = vst [vmem:[%s3321_s21 + $0x8] sm:$0xff] %v3323_v12  ;;  %v3328_v35 = vadd.f32 %v1410_v15, %v1311_v8  ;;  %v1540_v29 = vmul.f32 %v3323_v12, %v3323_v12 }
 0x18b   : > { %v2579_v34 = vpop.f32.mrf.mxu0 }
 0x18c   : > { %1457 = vst [vmem:[%s3321_s21] sm:$0xff] %v3328_v35  ;;  %v1452_v22 = vadd.f32 %v2579_v34, %v1314_v19  ;;  %v1539_v39 = vmul.f32 %v3328_v35, %v3328_v35 }
 0x18d   : > { %v1420_v62 = vpop.f32.mrf.mxu0 }
 0x18e   : > { %1460 = vst [vmem:[%s3321_s21 + $0x18] sm:$0xff] %v1452_v22  ;;  %v1451_v6 = vadd.f32 %v1420_v62, %v1313_v57  ;;  %v1542_v47 = vmul.f32 %v1452_v22, %v1452_v22 }
 0x18f   : > { %v2582_v9 = vpop.f32.mrf.mxu0 }
 0x190   : > { %1459 = vst [vmem:[%s3321_s21 + $0x10] sm:$0xff] %v1451_v6  ;;  %v1454_v54 = vadd.f32 %v2582_v9, %v1316_v32  ;;  %v1541_v36 = vmul.f32 %v1451_v6, %v1451_v6 }
 0x191   : > { %v1430_v26 = vpop.f32.mrf.mxu0 }
 0x192   : > { %1462 = vst [vmem:[%s3321_s21 + $0x28] sm:$0xff] %v1454_v54  ;;  %v1453_v24 = vadd.f32 %v1430_v26, %v1315_v10  ;;  %v1544_v37 = vmul.f32 %v1454_v54, %v1454_v54 }
 0x193   : > { %v2585_v27 = vpop.f32.mrf.mxu0 }
 0x194   : > { %1461 = vst [vmem:[%s3321_s21 + $0x20] sm:$0xff] %v1453_v24  ;;  %v1456_v28 = vadd.f32 %v2585_v27, %v1318_v23  ;;  %v1543_v46 = vmul.f32 %v1453_v24, %v1453_v24 }
 0x195   : > { %v1440_v31 = vpop.f32.mrf.mxu0 }
 0x196   : > { %1464 = vst [vmem:[%s3321_s21 + $0x38] sm:$0xff] %v1456_v28  ;;  %v1455_v40 = vadd.f32 %v1440_v31, %v1317_v38  ;;  %2587 = vmatpush3.msra.mxu1 %v1456_v28  ;;  %v1546_v41 = vmul.f32 %v1456_v28, %v1456_v28 }
 0x197   : > { %2588 = vmatprep.subr.mxu1 %v3398_v30 }
 0x198   : > { %1463 = vst [vmem:[%s3321_s21 + $0x30] sm:$0xff] %v1455_v40  ;;  %2589 = vmatpush3.msra.mxu1 %v1455_v40  ;;  %v1545_v33 = vmul.f32 %v1455_v40, %v1455_v40 }
 0x199   : > { %2590 = vmatprep.subr.mxu1 %v3398_v30 }
 0x19a   : > { %2591 = vmatpush3.msra.mxu1 %v1454_v54 }
 0x19b   : > { %2592 = vmatprep.subr.mxu1 %v3398_v30 }
 0x19c   : > { %2593 = vmatpush3.msra.mxu1 %v1453_v24 }
 0x19d   : > { %2594 = vmatprep.subr.mxu1 %v3398_v30 }
 0x19e   : > { %2595 = vmatpush3.msra.mxu1 %v1452_v22 }
 0x19f   : > { %2596 = vmatprep.subr.mxu1 %v3398_v30 }
 0x1a0   : > { %2597 = vmatpush3.msra.mxu1 %v1451_v6 }
 0x1a1   : > { %2598 = vmatprep.subr.mxu1 %v3398_v30 }
 0x1a2   : > { %2599 = vmatpush3.msra.mxu1 %v3323_v12 }
 0x1a3   : > { %2600 = vmatprep.subr.mxu1 %v3398_v30 }
 0x1a4   : > { %2601 = vmatpush3.msra.mxu1 %v3328_v35 }
 0x1a5   : > { %2603 = vmatmul.mubr.msk.f32.vlgmr.msra.gmra.mxu1 %vm1465_vm1, %v2678_v44  ;;  %2605 = vmatprep.subr.mxu1 %v3398_v30 }
 0x1a6   : > { %2606 = vmatpush3.msra.mxu1 %v1546_v41  ;;  %2621 = vmatprep.mubr.msk.f32.mxu1 %vm2677_vm0, %v3398_v30 }
 0x1a7   : > { %2607 = vmatprep.subr.mxu1 %v3398_v30 }
 0x1a8   : > { %2608 = vmatpush3.msra.mxu1 %v1545_v33 }
 0x1a9   : > { %2609 = vmatprep.subr.mxu1 %v3398_v30 }
 0x1aa   : > { %2610 = vmatpush3.msra.mxu1 %v1544_v37 }
 0x1ab   : > { %2611 = vmatprep.subr.mxu1 %v3398_v30 }
 0x1ac   : > { %2612 = vmatpush3.msra.mxu1 %v1543_v46 }
 0x1ad   : > { %2613 = vmatprep.subr.mxu1 %v3398_v30 }
 0x1ae   : > { %2614 = vmatpush3.msra.mxu1 %v1542_v47 }
 0x1af   : > { %2615 = vmatprep.subr.mxu1 %v3398_v30 }
 0x1b0   : > { %2616 = vmatpush3.msra.mxu1 %v1541_v36 }
 0x1b1   : > { %2617 = vmatprep.subr.mxu1 %v3398_v30 }
 0x1b2   : > { %2618 = vmatpush3.msra.mxu1 %v1540_v29 }
 0x1b3   : > { %2619 = vmatprep.subr.mxu1 %v3398_v30 }
 0x1b4   : > { %2620 = vmatpush3.msra.mxu1 %v1539_v39 }
 0x1b5   : > { %2622 = vmatmul.mubr.msk.f32.vlgmr.msra.gmra.mxu1 %vm1465_vm1, %v2678_v44 }
 0x265   : > { %v1535_v48 = vpop.f32.mrf.mxu1 }
 0x267   : > { %v2604_v49 = vpop.f32.mrf.mxu1 }
 0x275   : > { %v1613_v50 = vpop.f32.mrf.mxu1 }
 0x276   : > { %v1618_v51 = vrot.slane %v1613_v50, 7 }
 0x277   : > { %v2623_v43 = vpop.f32.mrf.mxu1 }
 0x278   : > { %v1621_v52 = vsel %vm1620_vm2, %v1535_v48, %v1618_v51 }
 0x279   : > { %1622 = vst [vmem:[%s226_s25] sm:$0x3] %v1621_v52 }
 0x27a PF: > { %s14_s14 = sadd.s32 1, %s2674_s14   ;;  %s3399_s12 = smov %s2670_s13 }
 0x27b   : > { %p11_p5 = scmp.ge.s32.totalorder %s14_s14, 4   ;;  %s3400_s13 = smov %s3402_s15 }
 0x27d   :  { %13 = sbr.rel (!%p11_p5) target bundleno = 2 (0x2), region = 86 }

// kernel: wide_residual_block.5
= control target key start
LH: loop header
LB: loop body
LE: loop exit
PB: predicated region body
PF: predicated region fallthrough
CT: control target
= control target key end

     0   :  { %s2782_s18 = smov 0   ;;  %s2784_s19 = smov 0   ;;  %s3508_s0 = inlined_call_operand.vmem [shape: f32[2,8,8,128], index: 0, kind: input, shape index: {}]   ;;  %s3509_s1 = inlined_call_operand.vmem [shape: f32[9,128,128], index: 1, kind: input, shape index: {}]   ;;  %s3510_s2 = inlined_call_operand.vmem [shape: f32[1,128], index: 2, kind: input, shape index: {}]   ;;  %s3511_s3 = inlined_call_operand.vmem [shape: f32[1,128], index: 3, kind: input, shape index: {}]   ;;  %s3512_s4 = inlined_call_operand.vmem [shape: f32[2,8,8,128], index: 4, kind: output, shape index: {0}]   ;;  %s3513_s5 = inlined_call_operand.vmem [shape: f32[2,2,128], index: 5, kind: output, shape index: {1}]  }
   0x1   :  { %s2786_s20 = smov 0  }
   0x2 LB: > { %s28_s21 = sadd.s32 1, %s2743_s19  ;;  %p1887_p0 = scmp.ge.s32.totalorder %s2747_s20, 1  ;;  %s2747_s20 = sphi %s2786_s20, %s16_s20   ;;  %s2743_s19 = sphi %s2784_s19, %s3531_s19   ;;  %s2739_s18 = sphi %s2782_s18, %s3530_s18  }
   0x3   : > { %p30_p1 = scmp.ge.s32.totalorder %s28_s21, 2  ;;  %p215_p2 = scmp.lt.s32.totalorder %s2747_s20, 3 }
   0x5   : > { %s3533_s21 = smov (%p30_p1, %s28_s21), 0  ;;  %p216_p3 = pnand %p1887_p0, %p215_p2 }
   0x7   : > { %219 = sbr.rel (%p216_p3) target bundleno = 633 (0x279), region = 36 }
   0xc   : > { %v1910_v0 = vld [vmem:[%s3509_s1 + $0xf8] sm:$0xff]  ;;  %v1909_v2 = vld [vmem:[%s3509_s1 + $0xf0] sm:$0xff]  ;;  %p257_p4 = scmp.lt.s32.totalorder %s2739_s18, 1  ;;  %v2749_v4 = vmov 0.0   ;;  %v1908_v5 = vld [vmem:[%s3509_s1 + $0xe8] sm:$0xff]  ;;  %vm2750_vm0 = vmmov 0  }
   0xd   : > { %v379_v1 = vld [vmem:[%s3509_s1 + $0x78] sm:$0xff]  ;;  %2263 = vmatprep.subr.mxu0 %v1910_v0  ;;  %v378_v3 = vld [vmem:[%s3509_s1 + $0x70] sm:$0xff]  ;;  %281 = vst [vmem:[#allocation2] sm:$0xff] %v2749_v4  ;;  %282 = vst [vmem:[#allocation2 + $0x8] sm:$0x3] %v2749_v4  ;;  %2339 = vmatprep.mubr.f32.mxu1 %v2749_v4  ;;  %vm1590_vm1 = vcmask 523264  }
   0xe   : > { %2307 = vmatprep.subr.mxu1 %v379_v1  ;;  %283 = vst [vmem:[#allocation2 + $0x10] sm:$0xff] %v2749_v4  ;;  %284 = vst [vmem:[#allocation2 + $0x18] sm:$0x3] %v2749_v4  ;;  %2264 = vmatpush3.msra.mxu0 %v1910_v0  ;;  %v377_v6 = vld [vmem:[%s3509_s1 + $0x68] sm:$0xff]  ;;  %s3535_s18 = smov (!%p257_p4, %s2739_s18), 1  ;;  %v1907_v7 = vld [vmem:[%s3509_s1 + $0xe0] sm:$0xff] }
   0xf   : > { %285 = vst [vmem:[#allocation2 + $0x20] sm:$0xff] %v2749_v4  ;;  %286 = vst [vmem:[#allocation2 + $0x28] sm:$0x3] %v2749_v4  ;;  %2308 = vmatpush3.msra.mxu1 %v379_v1  ;;  %2265 = vmatprep.subr.mxu0 %v1909_v2  ;;  %v376_v8 = vld [vmem:[%s3509_s1 + $0x60] sm:$0xff]  ;;  %s2027_s13 = sshll.u32 %s3535_s18, 6  ;;  %v1906_v9 = vld [vmem:[%s3509_s1 + $0xd8] sm:$0xff] }
  0x10   : > { %287 = vst [vmem:[#allocation2 + $0x30] sm:$0xff] %v2749_v4  ;;  %288 = vst [vmem:[#allocation2 + $0x38] sm:$0x3] %v2749_v4  ;;  %2309 = vmatprep.subr.mxu1 %v378_v3  ;;  %2266 = vmatpush3.msra.mxu0 %v1909_v2  ;;  %v375_v10 = vld [vmem:[%s3509_s1 + $0x58] sm:$0xff]  ;;  %v1905_v11 = vld [vmem:[%s3509_s1 + $0xd0] sm:$0xff]  ;;  %s2870_s28 = scalar_lea.vmem %s3508_s0, %s2027_s13  ;;  %s3451_s16 = scalar_lea.vmem %s3512_s4, %s2027_s13  ;;  %vm1745_vm2 = vcmask 1040384  }
  0x11   : > { %289 = vst [vmem:[#allocation2 + $0x40] sm:$0xff] %v2749_v4  ;;  %290 = vst [vmem:[#allocation2 + $0x48] sm:$0x3] %v2749_v4  ;;  %2310 = vmatpush3.msra.mxu1 %v378_v3  ;;  %2267 = vmatprep.subr.mxu0 %v1908_v5  ;;  %v374_v12 = vld [vmem:[%s3509_s1 + $0x50] sm:$0xff]  ;;  %v1904_v13 = vld [vmem:[%s3509_s1 + $0xc8] sm:$0xff]  ;;  %s1892_s13 = sshll.u32 %s3535_s18, 1 }
  0x12   : > { %291 = vst [vmem:[#allocation2 + $0x50] sm:$0xff] %v2749_v4  ;;  %292 = vst [vmem:[#allocation2 + $0x58] sm:$0x3] %v2749_v4  ;;  %2311 = vmatprep.subr.mxu1 %v377_v6  ;;  %2268 = vmatpush3.msra.mxu0 %v1908_v5  ;;  %v373_v14 = vld [vmem:[%s3509_s1 + $0x48] sm:$0xff]  ;;  %v301_v15 = vld [vmem:[%s2870_s28] sm:$0xff]  ;;  %s280_s23 = scalar_lea.vmem %s3513_s5, %s1892_s13 }
  0x13   : > { %293 = vst [vmem:[#allocation2 + $0x60] sm:$0xff] %v2749_v4  ;;  %294 = vst [vmem:[#allocation2 + $0x68] sm:$0x3] %v2749_v4  ;;  %2312 = vmatpush3.msra.mxu1 %v377_v6  ;;  %2269 = vmatprep.subr.mxu0 %v1907_v7  ;;  %v2882_v16 = vld [vmem:[%s3510_s2] ss:$0 sm:$0xff]  ;;  %v1902_v21 = vld [vmem:[%s3509_s1 + $0xb8] sm:$0xff] }
  0x14   : > { %295 = vst [vmem:[#allocation2 + $0x70] sm:$0xff] %v2749_v4  ;;  %296 = vst [vmem:[#allocation2 + $0x78] sm:$0x3] %v2749_v4  ;;  %2313 = vmatprep.subr.mxu1 %v376_v8  ;;  %2270 = vmatpush3.msra.mxu0 %v1907_v7  ;;  %v2887_v17 = vld [vmem:[%s3511_s3] ss:$0 sm:$0xff]  ;;  %v316_v20 = vmul.f32 %v2882_v16, %v301_v15  ;;  %v371_v22 = vld [vmem:[%s3509_s1 + $0x38] sm:$0xff] }
  0x15   : > { %297 = vst [vmem:[#allocation2 + $0x80] sm:$0xff] %v2749_v4  ;;  %298 = vst [vmem:[#allocation2 + $0x88] sm:$0x3] %v2749_v4  ;;  %2314 = vmatpush3.msra.mxu1 %v376_v8  ;;  %2271 = vmatprep.subr.mxu0 %v1906_v9  ;;  %v1903_v18 = vld [vmem:[%s3509_s1 + $0xc0] sm:$0xff]  ;;  %v1901_v24 = vld [vmem:[%s3509_s1 + $0xb0] sm:$0xff] }
  0x16   : > { %299 = vst [vmem:[#allocation2 + $0x90] sm:$0xff] %v2749_v4  ;;  %300 = vst [vmem:[#allocation2 + $0x98] sm:$0x3] %v2749_v4  ;;  %2315 = vmatprep.subr.mxu1 %v375_v10  ;;  %2272 = vmatpush3.msra.mxu0 %v1906_v9  ;;  %v372_v19 = vld [vmem:[%s3509_s1 + $0x40] sm:$0xff]  ;;  %v331_v23 = vadd.f32 %v2887_v17, %v316_v20  ;;  %v370_v25 = vld [vmem:[%s3509_s1 + $0x30] sm:$0xff] }
  0x17   : > { %2316 = vmatpush3.msra.mxu1 %v375_v10  ;;  %2273 = vmatprep.subr.mxu0 %v1905_v11  ;;  %v302_v27 = vld [vmem:[%s2870_s28 + $0x8] sm:$0xff]  ;;  %v303_v31 = vld [vmem:[%s2870_s28 + $0x10] sm:$0xff]  ;;  %v304_v33 = vld [vmem:[%s2870_s28 + $0x18] sm:$0xff] }
  0x18   : > { %2317 = vmatprep.subr.mxu1 %v374_v12  ;;  %2274 = vmatpush3.msra.mxu0 %v1905_v11  ;;  %v2909_v26 = vmax.f32 %v331_v23, 0.0  ;;  %v1900_v28 = vld [vmem:[%s3509_s1 + $0xa8] sm:$0xff]  ;;  %v317_v30 = vmul.f32 %v2882_v16, %v302_v27  ;;  %v318_v32 = vmul.f32 %v2882_v16, %v303_v31  ;;  %v1899_v34 = vld [vmem:[%s3509_s1 + $0xa0] sm:$0xff]  ;;  %v319_v37 = vmul.f32 %v2882_v16, %v304_v33  ;;  %v1898_v42 = vld [vmem:[%s3509_s1 + $0x98] sm:$0xff] }
  0x19   : > { %2318 = vmatpush3.msra.mxu1 %v374_v12  ;;  %2275 = vmatprep.subr.mxu0 %v1904_v13  ;;  %v369_v29 = vld [vmem:[%s3509_s1 + $0x28] sm:$0xff]  ;;  %v368_v35 = vld [vmem:[%s3509_s1 + $0x20] sm:$0xff]  ;;  %v367_v43 = vld [vmem:[%s3509_s1 + $0x18] sm:$0xff] }
  0x1a   : > { %2319 = vmatprep.subr.mxu1 %v373_v14  ;;  %2276 = vmatpush3.msra.mxu0 %v1904_v13  ;;  %348 = vst [vmem:[#allocation2 + $0x11] sm:$0xff] %v2909_v26  ;;  %v332_v36 = vadd.f32 %v2887_v17, %v317_v30  ;;  %v305_v38 = vld [vmem:[%s2870_s28 + $0x20] sm:$0xff]  ;;  %v333_v39 = vadd.f32 %v2887_v17, %v318_v32  ;;  %v306_v41 = vld [vmem:[%s2870_s28 + $0x28] sm:$0xff]  ;;  %v307_v47 = vld [vmem:[%s2870_s28 + $0x30] sm:$0xff] }
  0x1b   : > { %2320 = vmatpush3.msra.mxu1 %v373_v14  ;;  %2277 = vmatprep.subr.mxu0 %v1903_v18  ;;  %v320_v40 = vmul.f32 %v2882_v16, %v305_v38  ;;  %v334_v45 = vadd.f32 %v2887_v17, %v319_v37  ;;  %v321_v46 = vmul.f32 %v2882_v16, %v306_v41  ;;  %v1897_v51 = vld [vmem:[%s3509_s1 + $0x90] sm:$0xff]  ;;  %v1896_v57 = vld [vmem:[%s3509_s1 + $0x88] sm:$0xff]  ;;  %v1895_v61 = vld [vmem:[%s3509_s1 + $0x80] sm:$0xff] }
  0x1c   : > { %2321 = vmatprep.subr.mxu1 %v372_v19  ;;  %2278 = vmatpush3.msra.mxu0 %v1903_v18  ;;  %v2941_v44 = vmax.f32 %v332_v36, 0.0  ;;  %v2946_v48 = vmax.f32 %v333_v39, 0.0  ;;  %v322_v50 = vmul.f32 %v2882_v16, %v307_v47  ;;  %v366_v52 = vld [vmem:[%s3509_s1 + $0x10] sm:$0xff]  ;;  %v365_v58 = vld [vmem:[%s3509_s1 + $0x8] sm:$0xff]  ;;  %v364_v62 = vld [vmem:[%s3509_s1] sm:$0xff] }
  0x1d   : > { %2322 = vmatpush3.msra.mxu1 %v372_v19  ;;  %2279 = vmatprep.subr.mxu0 %v1902_v21  ;;  %v335_v49 = vadd.f32 %v2887_v17, %v320_v40  ;;  %v2957_v53 = vmax.f32 %v334_v45, 0.0  ;;  %v336_v54 = vadd.f32 %v2887_v17, %v321_v46  ;;  %v380_v63 = vld [vmem:[#allocation2 + $0x1] sm:$0xff]  ;;  %v308_v0 = vld [vmem:[%s2870_s28 + $0x38] sm:$0xff]  ;;  %v1925_v7 = vld [vmem:[%s3509_s1 + $0x170] sm:$0xff] }
  0x1e   : > { %2323 = vmatprep.subr.mxu1 %v371_v22  ;;  %2280 = vmatpush3.msra.mxu0 %v1902_v21  ;;  %349 = vst [vmem:[#allocation2 + $0x21] sm:$0xff] %v2941_v44  ;;  %350 = vst [vmem:[#allocation2 + $0x31] sm:$0xff] %v2946_v48  ;;  %v337_v56 = vadd.f32 %v2887_v17, %v322_v50  ;;  %v323_v2 = vmul.f32 %v2882_v16, %v308_v0  ;;  %v1926_v3 = vld [vmem:[%s3509_s1 + $0x178] sm:$0xff]  ;;  %v1941_v8 = vld [vmem:[%s3509_s1 + $0x1f0] sm:$0xff] }
  0x1f   : > { %2324 = vmatpush3.msra.mxu1 %v371_v22  ;;  %2281 = vmatprep.subr.mxu0 %v1901_v24  ;;  %v2961_v55 = vmax.f32 %v335_v49, 0.0  ;;  %351 = vst [vmem:[#allocation2 + $0x41] sm:$0xff] %v2957_v53  ;;  %v2971_v59 = vmax.f32 %v336_v54, 0.0  ;;  %v1942_v5 = vld [vmem:[%s3509_s1 + $0x1f8] sm:$0xff]  ;;  %v1924_v4 = vld [vmem:[%s3509_s1 + $0x168] sm:$0xff]  ;;  %v1923_v11 = vld [vmem:[%s3509_s1 + $0x160] sm:$0xff] }
  0x20   : > { %2325 = vmatprep.subr.mxu1 %v370_v25  ;;  %2282 = vmatpush3.msra.mxu0 %v1901_v24  ;;  %v2974_v60 = vmax.f32 %v337_v56, 0.0  ;;  %v338_v6 = vadd.f32 %v2887_v17, %v323_v2  ;;  %v1940_v10 = vld [vmem:[%s3509_s1 + $0x1e8] sm:$0xff]  ;;  %v1939_v12 = vld [vmem:[%s3509_s1 + $0x1e0] sm:$0xff]  ;;  %v1922_v13 = vld [vmem:[%s3509_s1 + $0x158] sm:$0xff] }
  0x21   : > { %2326 = vmatpush3.msra.mxu1 %v370_v25  ;;  %2283 = vmatprep.subr.mxu0 %v1900_v28  ;;  %352 = vst [vmem:[#allocation2 + $0x51] sm:$0xff] %v2961_v55  ;;  %353 = vst [vmem:[#allocation2 + $0x61] sm:$0xff] %v2971_v59  ;;  %v2985_v1 = vld [vmem:[#allocation2 + $0x10] sm:$0xff]  ;;  %v1938_v14 = vld [vmem:[%s3509_s1 + $0x1d8] sm:$0xff] }
  0x22   : > { %2327 = vmatprep.subr.mxu1 %v369_v29  ;;  %2284 = vmatpush3.msra.mxu0 %v1900_v28  ;;  %354 = vst [vmem:[#allocation2 + $0x71] sm:$0xff] %v2974_v60  ;;  %v3004_v9 = vmax.f32 %v338_v6, 0.0  ;;  %v1921_v15 = vld [vmem:[%s3509_s1 + $0x150] sm:$0xff]  ;;  %v1920_v17 = vld [vmem:[%s3509_s1 + $0x148] sm:$0xff]  ;;  %v1919_v19 = vld [vmem:[%s3509_s1 + $0x140] sm:$0xff] }
  0x23   : > { %2328 = vmatpush3.msra.mxu1 %v369_v29  ;;  %2285 = vmatprep.subr.mxu0 %v1899_v34  ;;  %v1937_v16 = vld [vmem:[%s3509_s1 + $0x1d0] sm:$0xff]  ;;  %v1936_v18 = vld [vmem:[%s3509_s1 + $0x1c8] sm:$0xff]  ;;  %v1935_v20 = vld [vmem:[%s3509_s1 + $0x1c0] sm:$0xff] }
  0x24   : > { %2329 = vmatprep.subr.mxu1 %v368_v35  ;;  %2286 = vmatpush3.msra.mxu0 %v1899_v34  ;;  %355 = vst [vmem:[#allocation2 + $0x81] sm:$0xff] %v3004_v9  ;;  %v1918_v21 = vld [vmem:[%s3509_s1 + $0x138] sm:$0xff]  ;;  %v1917_v23 = vld [vmem:[%s3509_s1 + $0x130] sm:$0xff]  ;;  %v1916_v27 = vld [vmem:[%s3509_s1 + $0x128] sm:$0xff] }
  0x25   : > { %2330 = vmatpush3.msra.mxu1 %v368_v35  ;;  %2287 = vmatprep.subr.mxu0 %v1898_v42  ;;  %v3046_v22 = vld [vmem:[#allocation2 + $0x20] sm:$0xff]  ;;  %v1934_v24 = vld [vmem:[%s3509_s1 + $0x1b8] sm:$0xff]  ;;  %v3055_v25 = vld [vmem:[#allocation2 + $0x30] sm:$0xff] }
  0x26   : > { %2331 = vmatprep.subr.mxu1 %v367_v43  ;;  %2288 = vmatpush3.msra.mxu0 %v1898_v42  ;;  %v1933_v28 = vld [vmem:[%s3509_s1 + $0x1b0] sm:$0xff]  ;;  %v3066_v29 = vld [vmem:[#allocation2 + $0x40] sm:$0xff]  ;;  %v1932_v31 = vld [vmem:[%s3509_s1 + $0x1a8] sm:$0xff] }
  0x27   : > { %2332 = vmatpush3.msra.mxu1 %v367_v43  ;;  %2289 = vmatprep.subr.mxu0 %v1897_v51  ;;  %v1915_v30 = vld [vmem:[%s3509_s1 + $0x120] sm:$0xff]  ;;  %v1914_v33 = vld [vmem:[%s3509_s1 + $0x118] sm:$0xff]  ;;  %v1913_v36 = vld [vmem:[%s3509_s1 + $0x110] sm:$0xff] }
  0x28   : > { %2333 = vmatprep.subr.mxu1 %v366_v52  ;;  %2290 = vmatpush3.msra.mxu0 %v1897_v51  ;;  %v3074_v32 = vld [vmem:[#allocation2 + $0x50] sm:$0xff]  ;;  %v1931_v34 = vld [vmem:[%s3509_s1 + $0x1a0] sm:$0xff]  ;;  %v1930_v37 = vld [vmem:[%s3509_s1 + $0x198] sm:$0xff] }
  0x29   : > { %2334 = vmatpush3.msra.mxu1 %v366_v52  ;;  %2291 = vmatprep.subr.mxu0 %v1896_v57  ;;  %v3086_v35 = vld [vmem:[#allocation2 + $0x60] sm:$0xff]  ;;  %v3094_v38 = vld [vmem:[#allocation2 + $0x70] sm:$0xff]  ;;  %v1912_v39 = vld [vmem:[%s3509_s1 + $0x108] sm:$0xff] }
  0x2a   : > { %2335 = vmatprep.subr.mxu1 %v365_v58  ;;  %2292 = vmatpush3.msra.mxu0 %v1896_v57  ;;  %v1929_v40 = vld [vmem:[%s3509_s1 + $0x190] sm:$0xff]  ;;  %v1911_v41 = vld [vmem:[%s3509_s1 + $0x100] sm:$0xff]  ;;  %v1928_v42 = vld [vmem:[%s3509_s1 + $0x188] sm:$0xff] }
  0x2b   : > { %2336 = vmatpush3.msra.mxu1 %v365_v58  ;;  %2293 = vmatprep.subr.mxu0 %v1895_v61  ;;  %v615_v43 = vld [vmem:[#allocation2 + $0x2] sm:$0xff]  ;;  %v3112_v45 = vld [vmem:[#allocation2 + $0x12] sm:$0xff] }
  0x2c   : > { %2337 = vmatprep.subr.mxu1 %v364_v62  ;;  %2294 = vmatpush3.msra.mxu0 %v1895_v61  ;;  %v1927_v46 = vld [vmem:[%s3509_s1 + $0x180] sm:$0xff]  ;;  %v1958_v47 = vld [vmem:[%s3509_s1 + $0x278] sm:$0xff]  ;;  %v1957_v49 = vld [vmem:[%s3509_s1 + $0x270] sm:$0xff] }
  0x2d   : > { %2295 = vmatprep.mubr.f32.mxu0 %v380_v63  ;;  %2338 = vmatpush3.msra.mxu1 %v364_v62  ;;  %v1974_v50 = vld [vmem:[%s3509_s1 + $0x2f8] sm:$0xff]  ;;  %v3128_v51 = vld [vmem:[#allocation2 + $0x22] sm:$0xff]  ;;  %v1973_v56 = vld [vmem:[%s3509_s1 + $0x2f0] sm:$0xff] }
  0x2e   : > { %2296 = vmatmul.mubr.f32.vlgmr.msra.gmra.mxu0 %v2909_v26  ;;  %2340 = vmatmul.mubr.f32.vlgmr.msra.gmra.mxu1 %v2985_v1  ;;  %v3131_v52 = vld [vmem:[#allocation2 + $0x32] sm:$0xff]  ;;  %v1956_v54 = vld [vmem:[%s3509_s1 + $0x268] sm:$0xff]  ;;  %v1955_v57 = vld [vmem:[%s3509_s1 + $0x260] sm:$0xff] }
  0x2f   : > { %2351 = vmatprep.subr.mxu0 %v1926_v3  ;;  %2395 = vmatprep.subr.mxu1 %v1942_v5  ;;  %v1972_v58 = vld [vmem:[%s3509_s1 + $0x2e8] sm:$0xff]  ;;  %v3150_v62 = vld [vmem:[#allocation2 + $0x52] sm:$0xff]  ;;  %v1971_v0 = vld [vmem:[%s3509_s1 + $0x2e0] sm:$0xff] }
  0x30   : > { %2352 = vmatpush3.msra.mxu0 %v1926_v3  ;;  %2396 = vmatpush3.msra.mxu1 %v1942_v5  ;;  %v3148_v61 = vld [vmem:[#allocation2 + $0x42] sm:$0xff]  ;;  %v1954_v63 = vld [vmem:[%s3509_s1 + $0x258] sm:$0xff] }
  0x31   : > { %2353 = vmatprep.subr.mxu0 %v1925_v7  ;;  %2397 = vmatprep.subr.mxu1 %v1941_v8  ;;  %v1970_v2 = vld [vmem:[%s3509_s1 + $0x2d8] sm:$0xff]  ;;  %v3168_v3 = vld [vmem:[#allocation2 + $0x62] sm:$0xff] }
  0x32   : > { %2354 = vmatpush3.msra.mxu0 %v1925_v7  ;;  %2398 = vmatpush3.msra.mxu1 %v1941_v8  ;;  %v3170_v5 = vld [vmem:[#allocation2 + $0x72] sm:$0xff]  ;;  %v1952_v6 = vld [vmem:[%s3509_s1 + $0x248] sm:$0xff]  ;;  %v1951_v8 = vld [vmem:[%s3509_s1 + $0x240] sm:$0xff] }
  0x33   : > { %2355 = vmatprep.subr.mxu0 %v1924_v4  ;;  %2399 = vmatprep.subr.mxu1 %v1940_v10  ;;  %v1969_v7 = vld [vmem:[%s3509_s1 + $0x2d0] sm:$0xff] }
  0x34   : > { %2356 = vmatpush3.msra.mxu0 %v1924_v4  ;;  %2400 = vmatpush3.msra.mxu1 %v1940_v10  ;;  %v3184_v4 = vld [vmem:[#allocation2 + $0x80] sm:$0xff]  ;;  %v1968_v10 = vld [vmem:[%s3509_s1 + $0x2c8] sm:$0xff] }
  0x35   : > { %2357 = vmatprep.subr.mxu0 %v1923_v11  ;;  %2401 = vmatprep.subr.mxu1 %v1939_v12 }
  0x36   : > { %2358 = vmatpush3.msra.mxu0 %v1923_v11  ;;  %2402 = vmatpush3.msra.mxu1 %v1939_v12  ;;  %v1950_v11 = vld [vmem:[%s3509_s1 + $0x238] sm:$0xff]  ;;  %v1967_v12 = vld [vmem:[%s3509_s1 + $0x2c0] sm:$0xff] }
  0x37   : > { %2359 = vmatprep.subr.mxu0 %v1922_v13  ;;  %2403 = vmatprep.subr.mxu1 %v1938_v14 }
  0x38   : > { %2360 = vmatpush3.msra.mxu0 %v1922_v13  ;;  %2404 = vmatpush3.msra.mxu1 %v1938_v14  ;;  %v1949_v13 = vld [vmem:[%s3509_s1 + $0x230] sm:$0xff]  ;;  %v1966_v14 = vld [vmem:[%s3509_s1 + $0x2b8] sm:$0xff] }
  0x39   : > { %2361 = vmatprep.subr.mxu0 %v1921_v15  ;;  %2405 = vmatprep.subr.mxu1 %v1937_v16 }
  0x3a   : > { %2362 = vmatpush3.msra.mxu0 %v1921_v15  ;;  %2406 = vmatpush3.msra.mxu1 %v1937_v16  ;;  %v1948_v15 = vld [vmem:[%s3509_s1 + $0x228] sm:$0xff]  ;;  %v1965_v16 = vld [vmem:[%s3509_s1 + $0x2b0] sm:$0xff] }
  0x3b   : > { %2363 = vmatprep.subr.mxu0 %v1920_v17  ;;  %2407 = vmatprep.subr.mxu1 %v1936_v18 }
  0x3c   : > { %2364 = vmatpush3.msra.mxu0 %v1920_v17  ;;  %2408 = vmatpush3.msra.mxu1 %v1936_v18  ;;  %v1947_v17 = vld [vmem:[%s3509_s1 + $0x220] sm:$0xff]  ;;  %v1964_v18 = vld [vmem:[%s3509_s1 + $0x2a8] sm:$0xff] }
  0x3d   : > { %2365 = vmatprep.subr.mxu0 %v1919_v19  ;;  %2409 = vmatprep.subr.mxu1 %v1935_v20 }
  0x3e   : > { %2366 = vmatpush3.msra.mxu0 %v1919_v19  ;;  %2410 = vmatpush3.msra.mxu1 %v1935_v20  ;;  %v1946_v19 = vld [vmem:[%s3509_s1 + $0x218] sm:$0xff]  ;;  %v1963_v20 = vld [vmem:[%s3509_s1 + $0x2a0] sm:$0xff] }
  0x3f   : > { %2367 = vmatprep.subr.mxu0 %v1918_v21  ;;  %2298 = vmatprep.mubr.f32.mxu0 %v2941_v44 }
  0x40   : > { %2368 = vmatpush3.msra.mxu0 %v1918_v21  ;;  %2342 = vmatprep.mubr.f32.mxu1 %v3046_v22  ;;  %v1945_v21 = vld [vmem:[%s3509_s1 + $0x210] sm:$0xff] }
  0x41   : > { %2369 = vmatprep.subr.mxu0 %v1917_v23  ;;  %2411 = vmatprep.subr.mxu1 %v1934_v24 }
  0x42   : > { %2299 = vmatmul.mubr.f32.gmra.mxu0 %v2946_v48  ;;  %2343 = vmatmul.mubr.f32.gmra.mxu1 %v3055_v25 }
  0x43   : > { %2370 = vmatpush3.msra.mxu0 %v1917_v23  ;;  %2412 = vmatpush3.msra.mxu1 %v1934_v24  ;;  %v1962_v23 = vld [vmem:[%s3509_s1 + $0x298] sm:$0xff]  ;;  %v1944_v24 = vld [vmem:[%s3509_s1 + $0x208] sm:$0xff] }
  0x44   : > { %2371 = vmatprep.subr.mxu0 %v1916_v27  ;;  %2413 = vmatprep.subr.mxu1 %v1933_v28 }
  0x45   : > { %2372 = vmatpush3.msra.mxu0 %v1916_v27  ;;  %2414 = vmatpush3.msra.mxu1 %v1933_v28  ;;  %v1961_v27 = vld [vmem:[%s3509_s1 + $0x290] sm:$0xff]  ;;  %v1943_v28 = vld [vmem:[%s3509_s1 + $0x200] sm:$0xff] }
  0x46   : > { %2301 = vmatprep.mubr.f32.mxu0 %v2957_v53  ;;  %2345 = vmatprep.mubr.f32.mxu1 %v3066_v29 }
  0x47   : > { %2373 = vmatprep.subr.mxu0 %v1915_v30  ;;  %2415 = vmatprep.subr.mxu1 %v1932_v31 }
  0x48   : > { %2302 = vmatmul.mubr.f32.gmra.mxu0 %v2961_v55  ;;  %2346 = vmatmul.mubr.f32.gmra.mxu1 %v3074_v32 }
  0x49   : > { %2374 = vmatpush3.msra.mxu0 %v1915_v30  ;;  %2416 = vmatpush3.msra.mxu1 %v1932_v31  ;;  %v1960_v30 = vld [vmem:[%s3509_s1 + $0x288] sm:$0xff]  ;;  %v1959_v31 = vld [vmem:[%s3509_s1 + $0x280] sm:$0xff] }
  0x4a   : > { %2375 = vmatprep.subr.mxu0 %v1914_v33  ;;  %2417 = vmatprep.subr.mxu1 %v1931_v34 }
  0x4b   : > { %2376 = vmatpush3.msra.mxu0 %v1914_v33  ;;  %2418 = vmatpush3.msra.mxu1 %v1931_v34  ;;  %v1990_v33 = vld [vmem:[%s3509_s1 + $0x378] sm:$0xff]  ;;  %v1989_v34 = vld [vmem:[%s3509_s1 + $0x370] sm:$0xff] }
  0x4c   : > { %2304 = vmatprep.mubr.f32.mxu0 %v2971_v59  ;;  %2348 = vmatprep.mubr.f32.mxu1 %v3086_v35 }
  0x4d   : > { %2377 = vmatprep.subr.mxu0 %v1913_v36  ;;  %2419 = vmatprep.subr.mxu1 %v1930_v37 }
  0x4e   : > { %2305 = vmatmul.mubr.f32.gmra.mxu0 %v2974_v60  ;;  %2349 = vmatmul.mubr.f32.gmra.mxu1 %v3094_v38 }
  0x4f   : > { %2378 = vmatpush3.msra.mxu0 %v1913_v36  ;;  %2420 = vmatpush3.msra.mxu1 %v1930_v37  ;;  %v2006_v36 = vld [vmem:[%s3509_s1 + $0x3f8] sm:$0xff]  ;;  %v2005_v37 = vld [vmem:[%s3509_s1 + $0x3f0] sm:$0xff] }
  0x50   : > { %2379 = vmatprep.subr.mxu0 %v1912_v39  ;;  %2421 = vmatprep.subr.mxu1 %v1929_v40 }
  0x51   : > { %2380 = vmatpush3.msra.mxu0 %v1912_v39  ;;  %2422 = vmatpush3.msra.mxu1 %v1929_v40  ;;  %v1987_v39 = vld [vmem:[%s3509_s1 + $0x360] sm:$0xff]  ;;  %v2004_v40 = vld [vmem:[%s3509_s1 + $0x3e8] sm:$0xff] }
  0x52   : > { %2381 = vmatprep.subr.mxu0 %v1911_v41  ;;  %2423 = vmatprep.subr.mxu1 %v1928_v42 }
  0x53   : > { %2382 = vmatpush3.msra.mxu0 %v1911_v41  ;;  %2383 = vmatprep.mubr.f32.mxu0 %v615_v43  ;;  %v1986_v41 = vld [vmem:[%s3509_s1 + $0x358] sm:$0xff]  ;;  %v1985_v43 = vld [vmem:[%s3509_s1 + $0x350] sm:$0xff] }
  0x54   : > { %2424 = vmatpush3.msra.mxu1 %v1928_v42  ;;  %2384 = vmatmul.mubr.f32.vlgmr.msra.gmra.mxu0 %v3112_v45  ;;  %v2003_v42 = vld [vmem:[%s3509_s1 + $0x3e0] sm:$0xff] }
  0x55   : > { %2425 = vmatprep.subr.mxu1 %v1927_v46  ;;  %2439 = vmatprep.subr.mxu0 %v1958_v47 }
  0x56   : > { %2426 = vmatpush3.msra.mxu1 %v1927_v46  ;;  %2427 = vmatprep.mubr.f32.mxu1 %v2985_v1  ;;  %v1953_v1 = vld [vmem:[%s3509_s1 + $0x250] sm:$0xff]  ;;  %v1984_v46 = vld [vmem:[%s3509_s1 + $0x348] sm:$0xff] }
  0x57   : > { %2440 = vmatpush3.msra.mxu0 %v1958_v47  ;;  %2428 = vmatmul.mubr.f32.vlgmr.msra.gmra.mxu1 %v3046_v22  ;;  %v2001_v47 = vld [vmem:[%s3509_s1 + $0x3d0] sm:$0xff] }
  0x58   : > { %2441 = vmatprep.subr.mxu0 %v1957_v49  ;;  %2483 = vmatprep.subr.mxu1 %v1974_v50 }
  0x59   : > { %2386 = vmatprep.mubr.f32.mxu0 %v3128_v51  ;;  %2442 = vmatpush3.msra.mxu0 %v1957_v49  ;;  %v1983_v49 = vld [vmem:[%s3509_s1 + $0x340] sm:$0xff] }
  0x5a   : > { %2484 = vmatpush3.msra.mxu1 %v1974_v50  ;;  %2387 = vmatmul.mubr.f32.gmra.mxu0 %v3131_v52  ;;  %v3298_v50 = vld [vmem:[#allocation2 + $0x82] sm:$0xff] }
  0x5b   : > { %2443 = vmatprep.subr.mxu0 %v1956_v54  ;;  %2485 = vmatprep.subr.mxu1 %v1973_v56 }
  0x5c   : > { %2430 = vmatprep.mubr.f32.mxu1 %v3055_v25  ;;  %2444 = vmatpush3.msra.mxu0 %v1956_v54  ;;  %v2000_v54 = vld [vmem:[%s3509_s1 + $0x3c8] sm:$0xff] }
  0x5d   : > { %2486 = vmatpush3.msra.mxu1 %v1973_v56  ;;  %2445 = vmatprep.subr.mxu0 %v1955_v57  ;;  %v1982_v56 = vld [vmem:[%s3509_s1 + $0x338] sm:$0xff] }
  0x5e   : > { %2431 = vmatmul.mubr.f32.gmra.mxu1 %v3066_v29  ;;  %2487 = vmatprep.subr.mxu1 %v1972_v58 }
  0x5f   : > { %2389 = vmatprep.mubr.f32.mxu0 %v3148_v61  ;;  %2446 = vmatpush3.msra.mxu0 %v1955_v57  ;;  %v1999_v57 = vld [vmem:[%s3509_s1 + $0x3c0] sm:$0xff] }
  0x60   : > { %2488 = vmatpush3.msra.mxu1 %v1972_v58  ;;  %2390 = vmatmul.mubr.f32.gmra.mxu0 %v3150_v62  ;;  %v1981_v58 = vld [vmem:[%s3509_s1 + $0x330] sm:$0xff] }
  0x61   : > { %2447 = vmatprep.subr.mxu0 %v1954_v63  ;;  %2489 = vmatprep.subr.mxu1 %v1971_v0 }
  0x62   : > { %2433 = vmatprep.mubr.f32.mxu1 %v3074_v32  ;;  %2448 = vmatpush3.msra.mxu0 %v1954_v63  ;;  %v1998_v63 = vld [vmem:[%s3509_s1 + $0x3b8] sm:$0xff] }
  0x63   : > { %2490 = vmatpush3.msra.mxu1 %v1971_v0  ;;  %2449 = vmatprep.subr.mxu0 %v1953_v1  ;;  %v1980_v0 = vld [vmem:[%s3509_s1 + $0x328] sm:$0xff] }
  0x64   : > { %2434 = vmatmul.mubr.f32.gmra.mxu1 %v3086_v35  ;;  %2491 = vmatprep.subr.mxu1 %v1970_v2 }
  0x65   : > { %2392 = vmatprep.mubr.f32.mxu0 %v3168_v3  ;;  %2450 = vmatpush3.msra.mxu0 %v1953_v1  ;;  %v1997_v1 = vld [vmem:[%s3509_s1 + $0x3b0] sm:$0xff] }
  0x66   : > { %2492 = vmatpush3.msra.mxu1 %v1970_v2  ;;  %2393 = vmatmul.mubr.f32.gmra.mxu0 %v3170_v5  ;;  %v1979_v2 = vld [vmem:[%s3509_s1 + $0x320] sm:$0xff] }
  0x67   : > { %2451 = vmatprep.subr.mxu0 %v1952_v6  ;;  %2493 = vmatprep.subr.mxu1 %v1969_v7 }
  0x68   : > { %2436 = vmatprep.mubr.f32.mxu1 %v3094_v38  ;;  %2452 = vmatpush3.msra.mxu0 %v1952_v6  ;;  %v1996_v6 = vld [vmem:[%s3509_s1 + $0x3a8] sm:$0xff] }
  0x69   : > { %2494 = vmatpush3.msra.mxu1 %v1969_v7  ;;  %2453 = vmatprep.subr.mxu0 %v1951_v8  ;;  %v1978_v7 = vld [vmem:[%s3509_s1 + $0x318] sm:$0xff] }
  0x6a   : > { %2437 = vmatmul.mubr.f32.gmra.mxu1 %v3184_v4  ;;  %2495 = vmatprep.subr.mxu1 %v1968_v10 }
  0x6b   : > { %2454 = vmatpush3.msra.mxu0 %v1951_v8  ;;  %2496 = vmatpush3.msra.mxu1 %v1968_v10  ;;  %v1995_v8 = vld [vmem:[%s3509_s1 + $0x3a0] sm:$0xff]  ;;  %v1977_v10 = vld [vmem:[%s3509_s1 + $0x310] sm:$0xff] }
  0x6c   : > { %2455 = vmatprep.subr.mxu0 %v1950_v11  ;;  %2497 = vmatprep.subr.mxu1 %v1967_v12 }
  0x6d   : > { %2456 = vmatpush3.msra.mxu0 %v1950_v11  ;;  %2498 = vmatpush3.msra.mxu1 %v1967_v12  ;;  %v1994_v11 = vld [vmem:[%s3509_s1 + $0x398] sm:$0xff]  ;;  %v1976_v12 = vld [vmem:[%s3509_s1 + $0x308] sm:$0xff] }
  0x6e   : > { %2457 = vmatprep.subr.mxu0 %v1949_v13  ;;  %2499 = vmatprep.subr.mxu1 %v1966_v14 }
  0x6f   : > { %2458 = vmatpush3.msra.mxu0 %v1949_v13  ;;  %2500 = vmatpush3.msra.mxu1 %v1966_v14  ;;  %v1993_v13 = vld [vmem:[%s3509_s1 + $0x390] sm:$0xff]  ;;  %v1975_v14 = vld [vmem:[%s3509_s1 + $0x300] sm:$0xff] }
  0x70   : > { %2459 = vmatprep.subr.mxu0 %v1948_v15  ;;  %2501 = vmatprep.subr.mxu1 %v1965_v16 }
  0x71   : > { %2460 = vmatpush3.msra.mxu0 %v1948_v15  ;;  %2502 = vmatpush3.msra.mxu1 %v1965_v16  ;;  %v1992_v15 = vld [vmem:[%s3509_s1 + $0x388] sm:$0xff]  ;;  %v1991_v16 = vld [vmem:[%s3509_s1 + $0x380] sm:$0xff] }
  0x72   : > { %2461 = vmatprep.subr.mxu0 %v1947_v17  ;;  %2503 = vmatprep.subr.mxu1 %v1964_v18 }
  0x73   : > { %2462 = vmatpush3.msra.mxu0 %v1947_v17  ;;  %2504 = vmatpush3.msra.mxu1 %v1964_v18  ;;  %v2022_v17 = vld [vmem:[%s3509_s1 + $0x478] sm:$0xff]  ;;  %v2021_v18 = vld [vmem:[%s3509_s1 + $0x470] sm:$0xff] }
  0x74   : > { %2463 = vmatprep.subr.mxu0 %v1946_v19  ;;  %2505 = vmatprep.subr.mxu1 %v1963_v20 }
  0x75   : > { %2464 = vmatpush3.msra.mxu0 %v1946_v19  ;;  %2506 = vmatpush3.msra.mxu1 %v1963_v20  ;;  %v2020_v19 = vld [vmem:[%s3509_s1 + $0x468] sm:$0xff]  ;;  %v1451_v20 = vld [vmem:[#allocation2 + $0x92] sm:$0xff] }
  0x76   : > { %2465 = vmatprep.subr.mxu0 %v1945_v21  ;;  %2507 = vmatprep.subr.mxu1 %v1962_v23 }
  0x77   : > { %2466 = vmatpush3.msra.mxu0 %v1945_v21  ;;  %2508 = vmatpush3.msra.mxu1 %v1962_v23 }
  0x78   : > { %2467 = vmatprep.subr.mxu0 %v1944_v24  ;;  %2509 = vmatprep.subr.mxu1 %v1961_v27 }
  0x79   : > { %2468 = vmatpush3.msra.mxu0 %v1944_v24  ;;  %2510 = vmatpush3.msra.mxu1 %v1961_v27 }
  0x7a   : > { %2469 = vmatprep.subr.mxu0 %v1943_v28  ;;  %2511 = vmatprep.subr.mxu1 %v1960_v30 }
  0x7b   : > { %2470 = vmatpush3.msra.mxu0 %v1943_v28  ;;  %2471 = vmatprep.mubr.f32.mxu0 %v2909_v26  ;;  %v1988_v26 = vld [vmem:[%s3509_s1 + $0x368] sm:$0xff] }
  0x7c   : > { %2512 = vmatpush3.msra.mxu1 %v1960_v30  ;;  %2472 = vmatmul.mubr.f32.vlgmr.msra.gmra.mxu0 %v2941_v44 }
  0x7d   : > { %2513 = vmatprep.subr.mxu1 %v1959_v31  ;;  %2527 = vmatprep.subr.mxu0 %v1990_v33 }
  0x7e   : > { %2514 = vmatpush3.msra.mxu1 %v1959_v31  ;;  %2515 = vmatprep.mubr.f32.mxu1 %v3112_v45  ;;  %v2002_v45 = vld [vmem:[%s3509_s1 + $0x3d8] sm:$0xff] }
  0x7f   : > { %2528 = vmatpush3.msra.mxu0 %v1990_v33  ;;  %2516 = vmatmul.mubr.f32.vlgmr.msra.gmra.mxu1 %v3128_v51 }
  0x80   : > { %2529 = vmatprep.subr.mxu0 %v1989_v34  ;;  %2571 = vmatprep.subr.mxu1 %v2006_v36 }
  0x81   : > { %2474 = vmatprep.mubr.f32.mxu0 %v2946_v48  ;;  %2530 = vmatpush3.msra.mxu0 %v1989_v34 }
  0x82   : > { %2572 = vmatpush3.msra.mxu1 %v2006_v36  ;;  %2475 = vmatmul.mubr.f32.gmra.mxu0 %v2957_v53 }
  0x83   : > { %2531 = vmatprep.subr.mxu0 %v1988_v26  ;;  %2573 = vmatprep.subr.mxu1 %v2005_v37 }
  0x84   : > { %2518 = vmatprep.mubr.f32.mxu1 %v3131_v52  ;;  %2532 = vmatpush3.msra.mxu0 %v1988_v26 }
  0x85   : > { %2574 = vmatpush3.msra.mxu1 %v2005_v37  ;;  %2533 = vmatprep.subr.mxu0 %v1987_v39 }
  0x86   : > { %2519 = vmatmul.mubr.f32.gmra.mxu1 %v3148_v61  ;;  %2575 = vmatprep.subr.mxu1 %v2004_v40 }
  0x87   : > { %2477 = vmatprep.mubr.f32.mxu0 %v2961_v55  ;;  %2534 = vmatpush3.msra.mxu0 %v1987_v39 }
  0x88   : > { %2576 = vmatpush3.msra.mxu1 %v2004_v40  ;;  %2478 = vmatmul.mubr.f32.gmra.mxu0 %v2971_v59 }
  0x89   : > { %2535 = vmatprep.subr.mxu0 %v1986_v41  ;;  %2577 = vmatprep.subr.mxu1 %v2003_v42 }
  0x8a   : > { %2521 = vmatprep.mubr.f32.mxu1 %v3150_v62  ;;  %2536 = vmatpush3.msra.mxu0 %v1986_v41 }
  0x8b   : > { %2578 = vmatpush3.msra.mxu1 %v2003_v42  ;;  %2537 = vmatprep.subr.mxu0 %v1985_v43 }
  0x8c   : > { %2522 = vmatmul.mubr.f32.gmra.mxu1 %v3168_v3  ;;  %2579 = vmatprep.subr.mxu1 %v2002_v45 }
  0x8d   : > { %2480 = vmatprep.mubr.f32.mxu0 %v2974_v60  ;;  %2538 = vmatpush3.msra.mxu0 %v1985_v43 }
  0x8e   : > { %2580 = vmatpush3.msra.mxu1 %v2002_v45  ;;  %2481 = vmatmul.mubr.f32.gmra.mxu0 %v3004_v9 }
  0x8f   : > { %2539 = vmatprep.subr.mxu0 %v1984_v46  ;;  %2581 = vmatprep.subr.mxu1 %v2001_v47 }
  0x90   : > { %2524 = vmatprep.mubr.f32.mxu1 %v3170_v5  ;;  %2540 = vmatpush3.msra.mxu0 %v1984_v46 }
  0x91   : > { %2582 = vmatpush3.msra.mxu1 %v2001_v47  ;;  %2541 = vmatprep.subr.mxu0 %v1983_v49 }
  0x92   : > { %2525 = vmatmul.mubr.f32.gmra.mxu1 %v3298_v50  ;;  %2583 = vmatprep.subr.mxu1 %v2000_v54 }
  0x93   : > { %2542 = vmatpush3.msra.mxu0 %v1983_v49  ;;  %2584 = vmatpush3.msra.mxu1 %v2000_v54 }
  0x94   : > { %2543 = vmatprep.subr.mxu0 %v1982_v56  ;;  %2585 = vmatprep.subr.mxu1 %v1999_v57 }
  0x95   : > { %2544 = vmatpush3.msra.mxu0 %v1982_v56  ;;  %2586 = vmatpush3.msra.mxu1 %v1999_v57 }
  0x96   : > { %2545 = vmatprep.subr.mxu0 %v1981_v58  ;;  %2587 = vmatprep.subr.mxu1 %v1998_v63 }
  0x97   : > { %2546 = vmatpush3.msra.mxu0 %v1981_v58  ;;  %2588 = vmatpush3.msra.mxu1 %v1998_v63 }
  0x98   : > { %2547 = vmatprep.subr.mxu0 %v1980_v0  ;;  %2589 = vmatprep.subr.mxu1 %v1997_v1 }
  0x99   : > { %2548 = vmatpush3.msra.mxu0 %v1980_v0  ;;  %2590 = vmatpush3.msra.mxu1 %v1997_v1 }
  0x9a   : > { %2549 = vmatprep.subr.mxu0 %v1979_v2  ;;  %2591 = vmatprep.subr.mxu1 %v1996_v6 }
  0x9b   : > { %2550 = vmatpush3.msra.mxu0 %v1979_v2  ;;  %2592 = vmatpush3.msra.mxu1 %v1996_v6 }
  0x9c   : > { %2551 = vmatprep.subr.mxu0 %v1978_v7  ;;  %2593 = vmatprep.subr.mxu1 %v1995_v8 }
  0x9d   : > { %2552 = vmatpush3.msra.mxu0 %v1978_v7  ;;  %2594 = vmatpush3.msra.mxu1 %v1995_v8 }
  0x9e   : > { %2553 = vmatprep.subr.mxu0 %v1977_v10  ;;  %2595 = vmatprep.subr.mxu1 %v1994_v11 }
  0x9f   : > { %2554 = vmatpush3.msra.mxu0 %v1977_v10  ;;  %2596 = vmatpush3.msra.mxu1 %v1994_v11 }
  0xa0   : > { %2555 = vmatprep.subr.mxu0 %v1976_v12  ;;  %2597 = vmatprep.subr.mxu1 %v1993_v13 }
  0xa1   : > { %2556 = vmatpush3.msra.mxu0 %v1976_v12  ;;  %2598 = vmatpush3.msra.mxu1 %v1993_v13 }
  0xa2   : > { %2557 = vmatprep.subr.mxu0 %v1975_v14  ;;  %2599 = vmatprep.subr.mxu1 %v1992_v15 }
  0xa3   : > { %2558 = vmatpush3.msra.mxu0 %v1975_v14  ;;  %2559 = vmatprep.mubr.f32.mxu0 %v3046_v22  ;;  %v2019_v22 = vld [vmem:[%s3509_s1 + $0x460] sm:$0xff] }
  0xa4   : > { %2600 = vmatpush3.msra.mxu1 %v1992_v15  ;;  %2560 = vmatmul.mubr.f32.vlgmr.msra.gmra.mxu0 %v3055_v25  ;;  %v3394_v25 = vld [vmem:[#allocation2] sm:$0xff] }
  0xa5   : > { %2601 = vmatprep.subr.mxu1 %v1991_v16  ;;  %2615 = vmatprep.subr.mxu0 %v2022_v17  ;;  %3516 = vst [vmem:[#allocation3_spill] sm:$0xff] %v3394_v25 }
  0xa6   : > { %2602 = vmatpush3.msra.mxu1 %v1991_v16  ;;  %2603 = vmatprep.mubr.f32.mxu1 %v2941_v44  ;;  %v2018_v44 = vld [vmem:[%s3509_s1 + $0x458] sm:$0xff] }
  0xa7   : > { %2616 = vmatpush3.msra.mxu0 %v2022_v17  ;;  %2604 = vmatmul.mubr.f32.vlgmr.msra.gmra.mxu1 %v2946_v48  ;;  %v2017_v48 = vld [vmem:[%s3509_s1 + $0x450] sm:$0xff] }
  0xa8   : > { %2617 = vmatprep.subr.mxu0 %v2021_v18  ;;  %2562 = vmatprep.mubr.f32.mxu0 %v3066_v29  ;;  %v2012_v29 = vld [vmem:[%s3509_s1 + $0x428] sm:$0xff] }
  0xa9   : > { %2618 = vmatpush3.msra.mxu0 %v2021_v18  ;;  %2606 = vmatprep.mubr.f32.mxu1 %v2957_v53  ;;  %v2016_v53 = vld [vmem:[%s3509_s1 + $0x448] sm:$0xff] }
  0xaa   : > { %2563 = vmatmul.mubr.f32.gmra.mxu0 %v3074_v32  ;;  %2619 = vmatprep.subr.mxu0 %v2020_v19  ;;  %v2011_v32 = vld [vmem:[%s3509_s1 + $0x420] sm:$0xff] }
  0xab   : > { %2620 = vmatpush3.msra.mxu0 %v2020_v19  ;;  %2607 = vmatmul.mubr.f32.gmra.mxu1 %v2961_v55  ;;  %v1313_v55 = vld [vmem:[#allocation2 + $0x91] sm:$0xff] }
  0xac   : > { %2621 = vmatprep.subr.mxu0 %v2019_v22  ;;  %2565 = vmatprep.mubr.f32.mxu0 %v3086_v35  ;;  %v2010_v35 = vld [vmem:[%s3509_s1 + $0x418] sm:$0xff] }
  0xad   : > { %2622 = vmatpush3.msra.mxu0 %v2019_v22  ;;  %2609 = vmatprep.mubr.f32.mxu1 %v2971_v59  ;;  %v2015_v59 = vld [vmem:[%s3509_s1 + $0x440] sm:$0xff] }
  0xae   : > { %2566 = vmatmul.mubr.f32.gmra.mxu0 %v3094_v38  ;;  %2623 = vmatprep.subr.mxu0 %v2018_v44  ;;  %v2009_v38 = vld [vmem:[%s3509_s1 + $0x410] sm:$0xff] }
  0xaf   : > { %2624 = vmatpush3.msra.mxu0 %v2018_v44  ;;  %2610 = vmatmul.mubr.f32.gmra.mxu1 %v2974_v60  ;;  %v2014_v60 = vld [vmem:[%s3509_s1 + $0x438] sm:$0xff] }
  0xb0   : > { %2625 = vmatprep.subr.mxu0 %v2017_v48  ;;  %2568 = vmatprep.mubr.f32.mxu0 %v3184_v4  ;;  %v2007_v4 = vld [vmem:[%s3509_s1 + $0x400] sm:$0xff] }
  0xb1   : > { %2626 = vmatpush3.msra.mxu0 %v2017_v48  ;;  %2612 = vmatprep.mubr.f32.mxu1 %v3004_v9  ;;  %v2013_v9 = vld [vmem:[%s3509_s1 + $0x430] sm:$0xff] }
  0xb2   : > { %2569 = vmatmul.mubr.f32.gmra.mxu0 %v3394_v25  ;;  %2627 = vmatprep.subr.mxu0 %v2016_v53 }
  0xb3   : > { %2628 = vmatpush3.msra.mxu0 %v2016_v53  ;;  %2613 = vmatmul.mubr.f32.gmra.mxu1 %v1313_v55 }
  0xb4   : > { %2629 = vmatprep.subr.mxu0 %v2015_v59  ;;  %2647 = vmatprep.mubr.f32.mxu0 %v3128_v51  ;;  %v2008_v51 = vld [vmem:[%s3509_s1 + $0x408] sm:$0xff] }
  0xb5   : > { %2630 = vmatpush3.msra.mxu0 %v2015_v59  ;;  %2659 = vmatprep.subr.mxu1 %v3394_v25 }
  0xb6   : > { %2631 = vmatprep.subr.mxu0 %v2014_v60  ;;  %2675 = vmatprep.mubr.msk.f32.mxu1 %vm2750_vm0, %v3394_v25 }
  0xb7   : > { %2632 = vmatpush3.msra.mxu0 %v2014_v60 }
  0xb8   : > { %2633 = vmatprep.subr.mxu0 %v2013_v9 }
  0xb9   : > { %2634 = vmatpush3.msra.mxu0 %v2013_v9 }
  0xba   : > { %2635 = vmatprep.subr.mxu0 %v2012_v29 }
  0xbb   : > { %2636 = vmatpush3.msra.mxu0 %v2012_v29 }
  0xbc   : > { %2637 = vmatprep.subr.mxu0 %v2011_v32 }
  0xbd   : > { %2638 = vmatpush3.msra.mxu0 %v2011_v32 }
  0xbe   : > { %2639 = vmatprep.subr.mxu0 %v2010_v35 }
  0xbf   : > { %2640 = vmatpush3.msra.mxu0 %v2010_v35 }
  0xc0   : > { %2641 = vmatprep.subr.mxu0 %v2009_v38 }
  0xc1   : > { %2642 = vmatpush3.msra.mxu0 %v2009_v38 }
  0xc2   : > { %2643 = vmatprep.subr.mxu0 %v2008_v51 }
  0xc3   : > { %2644 = vmatpush3.msra.mxu0 %v2008_v51 }
  0xc4   : > { %2645 = vmatprep.subr.mxu0 %v2007_v4 }
  0xc5   : > { %2646 = vmatpush3.msra.mxu0 %v2007_v4 }
  0xc6   : > { %2648 = vmatmul.mubr.f32.vlgmr.msra.gmra.mxu0 %v3131_v52 }
  0xc7   : > { %2650 = vmatprep.mubr.f32.mxu0 %v3148_v61 }
  0xca   : > { %2651 = vmatmul.mubr.f32.gmra.mxu0 %v3150_v62 }
  0xcb   : > { %2653 = vmatprep.mubr.f32.mxu0 %v3168_v3 }
  0xce   : > { %2654 = vmatmul.mubr.f32.gmra.mxu0 %v3170_v5 }
  0xcf   : > { %2656 = vmatprep.mubr.f32.mxu0 %v3298_v50 }
  0xd2   : > { %2657 = vmatmul.mubr.f32.gmra.mxu0 %v1451_v20 }
  0xee   : > { %v2297_v21 = vpop.f32.mrf.mxu0  ;;  %v2341_v28 = vpop.f32.mrf.mxu1 }
  0xef   : > { %v582_v53 = vadd.f32 %v2341_v28, %v2297_v21 }
  0xf0   : > { %v471_v23 = vpop.f32.mrf.mxu0  ;;  %v576_v31 = vpop.f32.mrf.mxu1 }
  0xf1   : > { %v577_v60 = vadd.f32 %v576_v31, %v471_v23 }
 0x102   : > { %v2300_v24 = vpop.f32.mrf.mxu0  ;;  %v2344_v33 = vpop.f32.mrf.mxu1 }
 0x103   : > { %v592_v29 = vadd.f32 %v2344_v33, %v2300_v24 }
 0x104   : > { %v481_v27 = vpop.f32.mrf.mxu0  ;;  %v586_v62 = vpop.f32.mrf.mxu1 }
 0x105   : > { %v587_v51 = vadd.f32 %v586_v62, %v481_v27 }
 0x108   : > { %v2303_v30 = vpop.f32.mrf.mxu0  ;;  %v2347_v5 = vpop.f32.mrf.mxu1 }
 0x109   : > { %v602_v25 = vadd.f32 %v2347_v5, %v2303_v30 }
 0x10a   : > { %v491_v52 = vpop.f32.mrf.mxu0  ;;  %v596_v36 = vpop.f32.mrf.mxu1 }
 0x10e   : > { %v3431_v61 = vpop.f32.mrf.mxu0  ;;  %v2350_v37 = vpop.f32.mrf.mxu1 }
 0x10f   : > { %3517 = vst [vmem:[#allocation4_spill] sm:$0xff] %v3431_v61 }
 0x110   : > { %v3433_v3 = vpop.f32.mrf.mxu0  ;;  %v606_v40 = vpop.f32.mrf.mxu1 }
 0x111   : > { %3518 = vst [vmem:[#allocation5_spill] sm:$0xff] %v3433_v3 }
 0x114   : > { %v2385_v34 = vpop.f32.mrf.mxu0 }
 0x115   : > { %v746_v9 = vadd.f32 %v2385_v34, %v582_v53 }
 0x116   : > { %v706_v26 = vpop.f32.mrf.mxu0  ;;  %v3523_v34 = vld [vmem:[#allocation4_spill] sm:$0xff] }
 0x117   : > { %v2429_v41 = vpop.f32.mrf.mxu1  ;;  %v745_v32 = vadd.f32 %v706_v26, %v577_v60  ;;  %v612_v53 = vadd.f32 %v2350_v37, %v3523_v34 }
 0x118   : > { %v884_v4 = vadd.f32 %v2429_v41, %v746_v9  ;;  %v3524_v60 = vld [vmem:[#allocation5_spill] sm:$0xff] }
 0x119   : > { %v844_v43 = vpop.f32.mrf.mxu1  ;;  %v607_v27 = vadd.f32 %v606_v40, %v3524_v60 }
 0x11a   : > { %v2388_v39 = vpop.f32.mrf.mxu0 }
 0x11b   : > { %v748_v20 = vadd.f32 %v2388_v39, %v592_v29 }
 0x11c   : > { %v716_v42 = vpop.f32.mrf.mxu0 }
 0x11e   : > { %v2432_v46 = vpop.f32.mrf.mxu1 }
 0x11f   : > { %v886_v28 = vadd.f32 %v2432_v46, %v748_v20 }
 0x120   : > { %v2391_v45 = vpop.f32.mrf.mxu0  ;;  %v854_v49 = vpop.f32.mrf.mxu1 }
 0x121   : > { %v750_v61 = vadd.f32 %v2391_v45, %v602_v25 }
 0x122   : > { %v726_v47 = vpop.f32.mrf.mxu0 }
 0x124   : > { %v2435_v54 = vpop.f32.mrf.mxu1 }
 0x125   : > { %v888_v62 = vadd.f32 %v2435_v54, %v750_v61 }
 0x126   : > { %v2394_v50 = vpop.f32.mrf.mxu0  ;;  %v864_v58 = vpop.f32.mrf.mxu1 }
 0x127   : > { %v752_v5 = vadd.f32 %v2394_v50, %v612_v53 }
 0x128   : > { %v736_v56 = vpop.f32.mrf.mxu0 }
 0x12a   : > { %v2438_v0 = vpop.f32.mrf.mxu1 }
 0x12c   : > { %v3435_v2 = vpop.f32.mrf.mxu1 }
 0x12d   : > { %3519 = vst [vmem:[#allocation6_spill] sm:$0xff] %v3435_v2  ;;  %v747_v2 = vadd.f32 %v716_v42, %v587_v51 }
 0x12f   : > { %v885_v24 = vadd.f32 %v854_v49, %v747_v2 }
 0x134   : > { %v3525_v61 = vld [vmem:[#allocation6_spill] sm:$0xff] }
 0x13c   : > { %v2473_v57 = vpop.f32.mrf.mxu0 }
 0x13d   : > { %v1022_v3 = vadd.f32 %v2473_v57, %v884_v4 }
 0x13e   : > { %v982_v63 = vpop.f32.mrf.mxu0 }
 0x13f   : > { %v2517_v6 = vpop.f32.mrf.mxu1 }
 0x140   : > { %v1160_v33 = vadd.f32 %v2517_v6, %v1022_v3  ;;  %v890_v3 = vadd.f32 %v2438_v0, %v752_v5 }
 0x141   : > { %v1120_v8 = vpop.f32.mrf.mxu1 }
 0x142   : > { %v2476_v1 = vpop.f32.mrf.mxu0 }
 0x143   : > { %v1024_v26 = vadd.f32 %v2476_v1, %v886_v28 }
 0x144   : > { %v992_v7 = vpop.f32.mrf.mxu0 }
 0x145   : > { %v1023_v42 = vadd.f32 %v992_v7, %v885_v24 }
 0x146   : > { %v2520_v11 = vpop.f32.mrf.mxu1 }
 0x147   : > { %v1162_v45 = vadd.f32 %v2520_v11, %v1024_v26  ;;  %v3529_v26 = vld [vmem:[#allocation3_spill] sm:$0xff] }
 0x148   : > { %v2479_v10 = vpop.f32.mrf.mxu0  ;;  %v1130_v13 = vpop.f32.mrf.mxu1 }
 0x149   : > { %v1161_v57 = vadd.f32 %v1130_v13, %v1023_v42 }
 0x14a   : > { %v1002_v12 = vpop.f32.mrf.mxu0 }
 0x14c   : > { %v2523_v15 = vpop.f32.mrf.mxu1 }
 0x14e   : > { %v2482_v14 = vpop.f32.mrf.mxu0  ;;  %v1140_v18 = vpop.f32.mrf.mxu1 }
 0x150   : > { %v3437_v16 = vpop.f32.mrf.mxu0 }
 0x151   : > { %3520 = vst [vmem:[#allocation7_spill] sm:$0xff] %v3437_v16  ;;  %v883_v16 = vadd.f32 %v844_v43, %v745_v32  ;;  %v1026_v43 = vadd.f32 %v2479_v10, %v888_v62 }
 0x152   : > { %v3439_v22 = vpop.f32.mrf.mxu1 }
 0x153   : > { %3521 = vst [vmem:[#allocation8_spill] sm:$0xff] %v3439_v22  ;;  %v597_v22 = vadd.f32 %v596_v36, %v491_v52  ;;  %v1021_v23 = vadd.f32 %v982_v63, %v883_v16  ;;  %v751_v36 = vadd.f32 %v736_v56, %v607_v27  ;;  %v1164_v1 = vadd.f32 %v2523_v15, %v1026_v43 }
 0x154   : > { %v3441_v48 = vpop.f32.mrf.mxu1  ;;  %v1028_v56 = vadd.f32 %v2482_v14, %v890_v3  ;;  %v2751_v27 = vmov 1.0  }
 0x155   : > { %3522 = vst [vmem:[#allocation9_spill] sm:$0xff] %v3441_v48  ;;  %v749_v31 = vadd.f32 %v726_v47, %v597_v22  ;;  %v1159_v41 = vadd.f32 %v1120_v8, %v1021_v23  ;;  %v889_v54 = vadd.f32 %v3525_v61, %v751_v36 }
 0x157   : > { %v887_v52 = vadd.f32 %v864_v58, %v749_v31 }
 0x158   : > { %v3526_v10 = vld [vmem:[#allocation7_spill] sm:$0xff] }
 0x159   : > { %v1025_v47 = vadd.f32 %v1002_v12, %v887_v52  ;;  %v1027_v11 = vadd.f32 %v3526_v10, %v889_v54 }
 0x15b   : > { %v1163_v0 = vadd.f32 %v1140_v18, %v1025_v47 }
 0x164   : > { %v2561_v17 = vpop.f32.mrf.mxu0 }
 0x165   : > { %v1299_v25 = vadd.f32 %v2561_v17, %v1160_v33  ;;  %v3527_v17 = vld [vmem:[#allocation8_spill] sm:$0xff] }
 0x166   : > { %v1259_v19 = vpop.f32.mrf.mxu0  ;;  %v1166_v14 = vadd.f32 %v3527_v17, %v1028_v56 }
 0x167   : > { %v2605_v55 = vpop.f32.mrf.mxu1  ;;  %v1298_v46 = vadd.f32 %v1259_v19, %v1159_v41 }
 0x168   : > { %v1437_v63 = vadd.f32 %v2605_v55, %v1299_v25 }
 0x169   : > { %v1397_v35 = vpop.f32.mrf.mxu1 }
 0x16a   : > { %v2564_v44 = vpop.f32.mrf.mxu0  ;;  %v1436_v58 = vadd.f32 %v1397_v35, %v1298_v46 }
 0x16b   : > { %v2608_v48 = vpop.f32.mrf.mxu1  ;;  %v1301_v40 = vadd.f32 %v2564_v44, %v1162_v45 }
 0x16c   : > { %v1269_v59 = vpop.f32.mrf.mxu0 }
 0x16d   : > { %v1407_v39 = vpop.f32.mrf.mxu1  ;;  %v1300_v2 = vadd.f32 %v1269_v59, %v1161_v57  ;;  %v1439_v12 = vadd.f32 %v2608_v48, %v1301_v40  ;;  %v3528_v59 = vld [vmem:[#allocation9_spill] sm:$0xff] }
 0x16e   : > { %v2567_v38 = vpop.f32.mrf.mxu0  ;;  %v1165_v9 = vadd.f32 %v3528_v59, %v1027_v11 }
 0x16f   : > { %v2611_v37 = vpop.f32.mrf.mxu1  ;;  %v1303_v13 = vadd.f32 %v2567_v38, %v1164_v1  ;;  %v1438_v19 = vadd.f32 %v1407_v39, %v1300_v2 }
 0x170   : > { %v1279_v21 = vpop.f32.mrf.mxu0 }
 0x171   : > { %v1417_v7 = vpop.f32.mrf.mxu1  ;;  %v1302_v22 = vadd.f32 %v1279_v21, %v1163_v0  ;;  %v1441_v48 = vadd.f32 %v2611_v37, %v1303_v13 }
 0x172   : > { %v2570_v30 = vpop.f32.mrf.mxu0 }
 0x173   : > { %v2614_v44 = vpop.f32.mrf.mxu1  ;;  %v1305_v29 = vadd.f32 %v2570_v30, %v1166_v14  ;;  %v1440_v38 = vadd.f32 %v1417_v7, %v1302_v22 }
 0x174   : > { %v1289_v49 = vpop.f32.mrf.mxu0 }
 0x175   : > { %v1304_v51 = vadd.f32 %v1289_v49, %v1165_v9  ;;  %v1427_v20 = vpop.f32.mrf.mxu1  ;;  %v1443_v28 = vadd.f32 %v2614_v44, %v1305_v29 }
 0x177   : > { %v1442_v34 = vadd.f32 %v1427_v20, %v1304_v51 }
 0x186   : > { %v2649_v50 = vpop.f32.mrf.mxu0 }
 0x187   : > { %v3453_v6 = vadd.f32 %v2649_v50, %v1437_v63 }
 0x188   : > { %v1535_v8 = vpop.f32.mrf.mxu0 }
 0x189   : > { %1583 = vst [vmem:[%s3451_s16 + $0x8] sm:$0xff] %v3453_v6  ;;  %v3458_v15 = vadd.f32 %v1535_v8, %v1436_v58  ;;  %v1665_v42 = vmul.f32 %v3453_v6, %v3453_v6 }
 0x18a   : > { %v2652_v16 = vpop.f32.mrf.mxu0 }
 0x18b   : > { %1582 = vst [vmem:[%s3451_s16] sm:$0xff] %v3458_v15  ;;  %v1577_v18 = vadd.f32 %v2652_v16, %v1439_v12  ;;  %v1664_v25 = vmul.f32 %v3458_v15, %v3458_v15 }
 0x18c   : > { %v1545_v55 = vpop.f32.mrf.mxu0 }
 0x18d   : > { %1585 = vst [vmem:[%s3451_s16 + $0x18] sm:$0xff] %v1577_v18  ;;  %v1576_v32 = vadd.f32 %v1545_v55, %v1438_v19  ;;  %v1667_v5 = vmul.f32 %v1577_v18, %v1577_v18 }
 0x18e   : > { %v2655_v35 = vpop.f32.mrf.mxu0 }
 0x18f   : > { %1584 = vst [vmem:[%s3451_s16 + $0x10] sm:$0xff] %v1576_v32  ;;  %v1579_v4 = vadd.f32 %v2655_v35, %v1441_v48  ;;  %v1666_v41 = vmul.f32 %v1576_v32, %v1576_v32 }
 0x190   : > { %v1555_v21 = vpop.f32.mrf.mxu0 }
 0x191   : > { %1587 = vst [vmem:[%s3451_s16 + $0x28] sm:$0xff] %v1579_v4  ;;  %v1578_v23 = vadd.f32 %v1555_v21, %v1440_v38  ;;  %v1669_v39 = vmul.f32 %v1579_v4, %v1579_v4 }
 0x192   : > { %v2658_v31 = vpop.f32.mrf.mxu0 }
 0x193   : > { %1586 = vst [vmem:[%s3451_s16 + $0x20] sm:$0xff] %v1578_v23  ;;  %v1581_v53 = vadd.f32 %v2658_v31, %v1443_v28  ;;  %v1668_v30 = vmul.f32 %v1578_v23, %v1578_v23 }
 0x194   : > { %v1565_v24 = vpop.f32.mrf.mxu0 }
 0x195   : > { %1589 = vst [vmem:[%s3451_s16 + $0x38] sm:$0xff] %v1581_v53  ;;  %v1580_v33 = vadd.f32 %v1565_v24, %v1442_v34  ;;  %2660 = vmatpush3.msra.mxu1 %v1581_v53  ;;  %v1671_v60 = vmul.f32 %v1581_v53, %v1581_v53 }
 0x196   : > { %2661 = vmatprep.subr.mxu1 %v3529_v26 }
 0x197   : > { %1588 = vst [vmem:[%s3451_s16 + $0x30] sm:$0xff] %v1580_v33  ;;  %2662 = vmatpush3.msra.mxu1 %v1580_v33  ;;  %v1670_v62 = vmul.f32 %v1580_v33, %v1580_v33 }
 0x198   : > { %2663 = vmatprep.subr.mxu1 %v3529_v26 }
 0x199   : > { %2664 = vmatpush3.msra.mxu1 %v1579_v4 }
 0x19a   : > { %2665 = vmatprep.subr.mxu1 %v3529_v26 }
 0x19b   : > { %2666 = vmatpush3.msra.mxu1 %v1578_v23 }
 0x19c   : > { %2667 = vmatprep.subr.mxu1 %v3529_v26 }
 0x19d   : > { %2668 = vmatpush3.msra.mxu1 %v1577_v18 }
 0x19e   : > { %2669 = vmatprep.subr.mxu1 %v3529_v26 }
 0x19f   : > { %2670 = vmatpush3.msra.mxu1 %v1576_v32 }
 0x1a0   : > { %2671 = vmatprep.subr.mxu1 %v3529_v26 }
 0x1a1   : > { %2672 = vmatpush3.msra.mxu1 %v3453_v6 }
 0x1a2   : > { %2673 = vmatprep.subr.mxu1 %v3529_v26 }
 0x1a3   : > { %2674 = vmatpush3.msra.mxu1 %v3458_v15 }
 0x1a4   : > { %2676 = vmatmul.mubr.msk.f32.vlgmr.msra.gmra.mxu1 %vm1590_vm1, %v2751_v27  ;;  %2678 = vmatprep.subr.mxu1 %v3529_v26 }
 0x1a5   : > { %2679 = vmatpush3.msra.mxu1 %v1671_v60  ;;  %2694 = vmatprep.mubr.msk.f32.mxu1 %vm2750_vm0, %v3529_v26 }
 0x1a6   : > { %2680 = vmatprep.subr.mxu1 %v3529_v26 }
 0x1a7   : > { %2681 = vmatpush3.msra.mxu1 %v1670_v62 }
 0x1a8   : > { %2682 = vmatprep.subr.mxu1 %v3529_v26 }
 0x1a9   : > { %2683 = vmatpush3.msra.mxu1 %v1669_v39 }
 0x1aa   : > { %2684 = vmatprep.subr.mxu1 %v3529_v26 }
 0x1ab   : > { %2685 = vmatpush3.msra.mxu1 %v1668_v30 }
 0x1ac   : > { %2686 = vmatprep.subr.mxu1 %v3529_v26 }
 0x1ad   : > { %2687 = vmatpush3.msra.mxu1 %v1667_v5 }
 0x1ae   : > { %2688 = vmatprep.subr.mxu1 %v3529_v26 }
 0x1af   : > { %2689 = vmatpush3.msra.mxu1 %v1666_v41 }
 0x1b0   : > { %2690 = vmatprep.subr.mxu1 %v3529_v26 }
 0x1b1   : > { %2691 = vmatpush3.msra.mxu1 %v1665_v42 }
 0x1b2   : > { %2692 = vmatprep.subr.mxu1 %v3529_v26 }
 0x1b3   : > { %2693 = vmatpush3.msra.mxu1 %v1664_v25 }
 0x1b4   : > { %2695 = vmatmul.mubr.msk.f32.vlgmr.msra.gmra.mxu1 %vm1590_vm1, %v2751_v27 }
 0x264   : > { %v1660_v52 = vpop.f32.mrf.mxu1 }
 0x266   : > { %v2677_v36 = vpop.f32.mrf.mxu1 }
 0x274   : > { %v1738_v43 = vpop.f32.mrf.mxu1 }
 0x275   : > { %v1743_v45 = vrot.slane %v1738_v43, 7 }
 0x276   : > { %v2696_v46 = vpop.f32.mrf.mxu1 }
 0x277   : > { %v1746_v47 = vsel %vm1745_vm2, %v1660_v52, %v1743_v45 }
 0x278   : > { %1747 = vst [vmem:[%s280_s23] sm:$0x3] %v1746_v47 }
 0x279 PF: > { %s16_s20 = sadd.s32 1, %s2747_s20   ;;  %s3530_s18 = smov %s2743_s19 }
 0x27a   : > { %p13_p5 = scmp.ge.s32.totalorder %s16_s20, 4   ;;  %s3531_s19 = smov %s3533_s21 }
 0x27c   :  { %15 = sbr.rel (!%p13_p5) target bundleno = 2 (0x2), region = 91 }

</bundles_post_ra>
